<compile_context>
chip_gen: v7x
topology: tpu7x:2x2x1
jax: 0.10.0
libtpu: 0.0.40
codegen_flags: <defaults>
</compile_context>

<pallas_src>
import functools

import jax
import jax.numpy as jnp
from jax.experimental import pallas as pl
from jax.experimental.pallas import tpu as pltpu

C_IN = 100
C_PAD = 128          # C_IN zero-padded to the lane width
C_MID = 512
C_OUT = 3
HALO = 4             # halo rows per side (>=2 needed for the 2 stacked k=3
                     # convs; 4 keeps the window a multiple of 8 sublanes)
MAX_TT = 1016        # max time-tile rows -> window W = tt + 2*HALO <= 1024


def tem_kernel(x_ref, w1_ref, b1_ref, w2_ref, b2_ref, w3_ref, b3_ref, o_ref,
               *, bb, win, tt, t_true):
    """One grid step: `bb` halo'd time-windows of `win` rows each.

    Correctness invariant: each window carries its own left/right halo rows
    (real neighbours or zero padding, built in the wrapper), so the rolls need
    no per-tap masks; the only mask is zeroing h1 at global time indices
    outside [0, T) so layer 2 sees PyTorch's zero padding at sequence ends.
    Wrap-around rows of the rolls (local rows 0 and win-1) are never consumed
    by emitted output rows (local rows [HALO, HALO+tt))."""
    m = bb * win
    x = x_ref[...].reshape(m, C_PAD)                     # (M, 128) bf16

    # Per-row global time index -> validity mask (computed in-kernel, no DMA).
    j = pl.program_id(1)
    g = (j * tt - HALO) + jax.lax.broadcasted_iota(jnp.int32, (bb, win, 1), 1)
    g = g.reshape(m, 1)
    valid = (g >= 0) & (g < t_true)                      # (M, 1) bool

    # ---- layer 1: k=3 conv == one (M, 384) @ (384, 512) bf16 matmul ----
    x32 = x.astype(jnp.float32)
    xp = pltpu.roll(x32, shift=1, axis=0).astype(jnp.bfloat16)      # row t-1 -> t
    xn = pltpu.roll(x32, shift=m - 1, axis=0).astype(jnp.bfloat16)  # row t+1 -> t
    x3 = jnp.concatenate([xp, x, xn], axis=-1)                      # (M, 384) bf16
    h1 = jnp.dot(x3, w1_ref[...], preferred_element_type=jnp.float32)
    h1 = jnp.maximum(h1 + b1_ref[...], 0.0)
    h1 = jnp.where(valid, h1, 0.0)                                  # (M, 512) f32

    # ---- layer 2: k=3 conv as three accumulating K=512 dots (no concat) ----
    h1p = pltpu.roll(h1, shift=1, axis=0).astype(jnp.bfloat16)
    h1n = pltpu.roll(h1, shift=m - 1, axis=0).astype(jnp.bfloat16)
    h2 = jnp.dot(h1p, w2_ref[0], preferred_element_type=jnp.float32)
    h2 = h2 + jnp.dot(h1.astype(jnp.bfloat16), w2_ref[1],
                      preferred_element_type=jnp.float32)
    h2 = h2 + jnp.dot(h1n, w2_ref[2], preferred_element_type=jnp.float32)
    h2 = jnp.maximum(h2 + b2_ref[...], 0.0)                         # (M, 512) f32

    # ---- layer 3: k=1 conv == plain matmul, then sigmoid(0.1 * y) ----
    y = jnp.dot(h2.astype(jnp.bfloat16), w3_ref[...],
                preferred_element_type=jnp.float32) + b3_ref[...]   # (M, 3)
    o_ref[...] = jax.nn.sigmoid(0.1 * y).reshape(bb, 1, win, C_OUT).astype(o_ref.dtype)


def _choose_block_batch(batch, n_t, win):
    """~1024 conv rows per grid step (amortize the ~0.35 us step overhead);
    keep >=2 total grid steps when possible so both v7x TensorCores get work
    (single-TC v5e/v6e lose nothing measurable)."""
    bb = max(1, 1024 // win)
    bb = min(bb, batch)
    # balance the batch steps so the last one isn't mostly padding
    n_b = -(-batch // bb)
    bb = -(-batch // n_b)
    if n_b * n_t < 2 and batch > 1 and (-(-batch // 2)) * win >= 512:
        bb = -(-batch // 2)
    return max(bb, 1)


def tem_forward(x_ncw, params, *, t_block=None):
    """x_ncw: (B, 100, T) float32 -> (B, 3, T) float32."""
    w1, b1, w2, b2, w3, b3 = params
    B, C, T = x_ncw.shape
    assert C == C_IN

    # Time tile size (multiple of 8), capped so per-step rows stay ~1024.
    t_ceil = -(-T // 8) * 8
    tt = t_ceil if t_block is None else min(-(-t_block // 8) * 8, t_ceil)
    tt = min(tt, MAX_TT)
    win = tt + 2 * HALO                       # window rows per tile (mult of 8)
    n_t = -(-T // tt)                         # time tiles per sequence

    bb = _choose_block_batch(B, n_t, win)
    n_b_steps = -(-B // bb)
    b_pad = n_b_steps * bb

    # Prepass in bf16: NCW -> NWC, pad channels 100->128, pad time with the
    # halo (front) and up to n_t*tt + halo (back), pad batch to b_pad.
    x = jnp.transpose(x_ncw, (0, 2, 1)).astype(jnp.bfloat16)        # (B, T, 100)
    x = jnp.pad(x, ((0, b_pad - B),
                    (HALO, n_t * tt + HALO - T),
                    (0, C_PAD - C_IN)))                             # (b_pad, L, 128)
    # Overlapping halo'd windows: window j covers time [j*tt - HALO, j*tt + tt + HALO)
    x = jnp.stack([x[:, j * tt: j * tt + win, :] for j in range(n_t)], axis=1)
    # -> (b_pad, n_t, win, 128) bf16

    # Weights: fuse the 3 taps of layer 1 into one contraction axis; bf16.
    w1c = jnp.pad(w1, ((0, 0), (0, C_PAD - C_IN), (0, 0)))
    w1c = w1c.reshape(3 * C_PAD, C_MID).astype(jnp.bfloat16)        # (384, 512)
    w2b = w2.astype(jnp.bfloat16)                                   # (3, 512, 512)
    w3b = w3.astype(jnp.bfloat16)                                   # (512, 3)

    kernel = functools.partial(tem_kernel, bb=bb, win=win, tt=tt, t_true=T)
    out = pl.pallas_call(
        kernel,
        out_shape=jax.ShapeDtypeStruct((b_pad, n_t, win, C_OUT), jnp.float32),
        grid_spec=pltpu.PrefetchScalarGridSpec(
            num_scalar_prefetch=0,
            grid=(n_b_steps, n_t),
            in_specs=[
                pl.BlockSpec((bb, 1, win, C_PAD), lambda ib, j: (ib, j, 0, 0)),
                pl.BlockSpec((3 * C_PAD, C_MID), lambda ib, j: (0, 0)),
                pl.BlockSpec((1, C_MID), lambda ib, j: (0, 0)),
                pl.BlockSpec((3, C_MID, C_MID), lambda ib, j: (0, 0, 0)),
                pl.BlockSpec((1, C_MID), lambda ib, j: (0, 0)),
                pl.BlockSpec((C_MID, C_OUT), lambda ib, j: (0, 0)),
                pl.BlockSpec((1, C_OUT), lambda ib, j: (0, 0)),
            ],
            out_specs=pl.BlockSpec((bb, 1, win, C_OUT), lambda ib, j: (ib, j, 0, 0)),
        ),
        compiler_params=pltpu.CompilerParams(
            dimension_semantics=("parallel", "parallel"),
            vmem_limit_bytes=32 * 1024 * 1024,
        ),
    )(x, w1c, b1, w2b, b2, w3b, b3)

    out = out[:B, :, HALO:HALO + tt, :]                  # drop halos / batch pad
    out = out.reshape(B, n_t * tt, C_OUT)[:, :T, :]      # drop time padding
    return jnp.transpose(out, (0, 2, 1))                 # (B, 3, T)


def init_params(key):
    """Deterministic synthetic parameters (shapes match the PyTorch module).

    Conv weights are stored as (k, Cin, Cout): w[k, i, o] = W_torch[o, i, k].
    """
    ks = jax.random.split(key, 6)
    scale1 = 1.0 / jnp.sqrt(C_IN * 3.0)
    scale2 = 1.0 / jnp.sqrt(C_MID * 3.0)
    scale3 = 1.0 / jnp.sqrt(C_MID * 1.0)
    w1 = jax.random.uniform(ks[0], (3, C_IN, C_MID), jnp.float32, -scale1, scale1)
    b1 = jax.random.uniform(ks[1], (1, C_MID), jnp.float32, -scale1, scale1)
    w2 = jax.random.uniform(ks[2], (3, C_MID, C_MID), jnp.float32, -scale2, scale2)
    b2 = jax.random.uniform(ks[3], (1, C_MID), jnp.float32, -scale2, scale2)
    w3 = jax.random.uniform(ks[4], (C_MID, C_OUT), jnp.float32, -scale3, scale3)
    b3 = jax.random.uniform(ks[5], (1, C_OUT), jnp.float32, -scale3, scale3)
    return w1, b1, w2, b2, w3, b3


def tem_reference(x_ncw, params):
    """Plain-JAX f32 reference (NCW conv via conv_general_dilated)."""
    w1, b1, w2, b2, w3, b3 = params
    k1 = jnp.transpose(w1, (2, 1, 0))
    k2 = jnp.transpose(w2, (2, 1, 0))
    k3 = jnp.transpose(w3, (1, 0))[:, :, None]
    dn = ("NCW", "OIW", "NCW")
    h = jax.lax.conv_general_dilated(x_ncw, k1, (1,), [(1, 1)], dimension_numbers=dn)
    h = jnp.maximum(h + b1[0][None, :, None], 0.0)
    h = jax.lax.conv_general_dilated(h, k2, (1,), [(1, 1)], dimension_numbers=dn)
    h = jnp.maximum(h + b2[0][None, :, None], 0.0)
    y = jax.lax.conv_general_dilated(h, k3, (1,), [(0, 0)], dimension_numbers=dn)
    y = y + b3[0][None, :, None]
    return jax.nn.sigmoid(0.1 * y)


if __name__ == "__main__":
    key = jax.random.PRNGKey(0)
    k_x, k_p = jax.random.split(key)
    params = init_params(k_p)

    # Main small test.
    B, T = 2, 16
    x = jax.random.normal(k_x, (B, C_IN, T), dtype=jnp.float32)
    out = jax.block_until_ready(tem_forward(x, params))
    ref = tem_reference(x, params)
    assert out.shape == (B, C_OUT, T)
    max_err = float(jnp.max(jnp.abs(out - ref)))
    # bf16 matmuls (f32 accumulation) vs f32 reference; output is a sigmoid in [0,1]
    assert max_err < 5e-3, max_err

    # Sanity-check the time-blocked (multi-tile halo) path at a small shape.
    x2 = jax.random.normal(k_x, (1, C_IN, 40), dtype=jnp.float32)
    out2 = jax.block_until_ready(tem_forward(x2, params, t_block=16))
    ref2 = tem_reference(x2, params)
    max_err2 = float(jnp.max(jnp.abs(out2 - ref2)))
    assert max_err2 < 5e-3, max_err2

    print("KERNEL_OK")
</pallas_src>

<mosaic_0001>
module attributes {stable_mosaic.version = 11 : i64} {
  func.func @tem_kernel(%arg0: i32, %arg1: i32, %arg2: memref<2x1x24x128xbf16, #tpu.memory_space<vmem>>, %arg3: memref<384x512xbf16, #tpu.memory_space<vmem>>, %arg4: memref<1x512xf32, #tpu.memory_space<vmem>>, %arg5: memref<3x512x512xbf16, #tpu.memory_space<vmem>>, %arg6: memref<1x512xf32, #tpu.memory_space<vmem>>, %arg7: memref<512x3xbf16, #tpu.memory_space<vmem>>, %arg8: memref<1x3xf32, #tpu.memory_space<vmem>>, %arg9: memref<2x1x24x3xf32, #tpu.memory_space<vmem>>) attributes {dimension_semantics = [#tpu.dimension_semantics<parallel>, #tpu.dimension_semantics<parallel>], iteration_bounds = array<i64: 1, 1>, scalar_prefetch = 0 : i64, scratch_operands = 0 : i64, tpu.core_type = #tpu.core_type<tc>, window_params = [{transform_indices = @transform_0, window_bounds = array<i64: 2, 1, 24, 128>}, {pipeline_mode = #tpu.pipeline_mode<synchronous>, transform_indices = @transform_1, window_bounds = array<i64: 384, 512>}, {pipeline_mode = #tpu.pipeline_mode<synchronous>, transform_indices = @transform_2, window_bounds = array<i64: 1, 512>}, {pipeline_mode = #tpu.pipeline_mode<synchronous>, transform_indices = @transform_3, window_bounds = array<i64: 3, 512, 512>}, {pipeline_mode = #tpu.pipeline_mode<synchronous>, transform_indices = @transform_4, window_bounds = array<i64: 1, 512>}, {pipeline_mode = #tpu.pipeline_mode<synchronous>, transform_indices = @transform_5, window_bounds = array<i64: 512, 3>}, {pipeline_mode = #tpu.pipeline_mode<synchronous>, transform_indices = @transform_6, window_bounds = array<i64: 1, 3>}, {transform_indices = @transform_7, window_bounds = array<i64: 2, 1, 24, 3>}]} {
    %c0 = arith.constant 0 : index
    %c0_0 = arith.constant 0 : index
    %c0_1 = arith.constant 0 : index
    %c0_2 = arith.constant 0 : index
    %0 = vector.load %arg2[%c0, %c0_0, %c0_1, %c0_2] : memref<2x1x24x128xbf16, #tpu.memory_space<vmem>>, vector<2x1x24x128xbf16>
    %1 = vector.shape_cast %0 : vector<2x1x24x128xbf16> to vector<48x128xbf16>
    %c16_i32 = arith.constant 16 : i32
    %2 = arith.muli %arg1, %c16_i32 : i32
    %c4_i32 = arith.constant 4 : i32
    %3 = arith.subi %2, %c4_i32 : i32
    %4 = tpu.iota {dimensions = array<i32: 1>} : vector<2x24x1xi32>
    %5 = vector.broadcast %3 : i32 to vector<2x24x1xi32>
    %6 = arith.addi %5, %4 : vector<2x24x1xi32>
    %7 = vector.shape_cast %6 : vector<2x24x1xi32> to vector<48x1xi32>
    %c0_i32 = arith.constant 0 : i32
    %8 = vector.broadcast %c0_i32 : i32 to vector<48x1xi32>
    %9 = arith.cmpi sge, %7, %8 : vector<48x1xi32>
    %c16_i32_3 = arith.constant 16 : i32
    %10 = vector.broadcast %c16_i32_3 : i32 to vector<48x1xi32>
    %11 = arith.cmpi slt, %7, %10 : vector<48x1xi32>
    %12 = arith.andi %9, %11 : vector<48x1xi1>
    %13 = arith.extf %1 : vector<48x128xbf16> to vector<48x128xf32>
    %c1_i32 = arith.constant 1 : i32
    %14 = tpu.dynamic_rotate %13 by %c1_i32 dim 0 : vector<48x128xf32>, i32 -> vector<48x128xf32>
    %15 = arith.truncf %14 : vector<48x128xf32> to vector<48x128xbf16>
    %c47_i32 = arith.constant 47 : i32
    %16 = tpu.dynamic_rotate %13 by %c47_i32 dim 0 : vector<48x128xf32>, i32 -> vector<48x128xf32>
    %17 = arith.truncf %16 : vector<48x128xf32> to vector<48x128xbf16>
    %18 = tpu.concatenate %15, %1, %17 in 1 : vector<48x128xbf16>, vector<48x128xbf16>, vector<48x128xbf16> -> vector<48x384xbf16>
    %c0_4 = arith.constant 0 : index
    %c0_5 = arith.constant 0 : index
    %19 = vector.load %arg3[%c0_4, %c0_5] : memref<384x512xbf16, #tpu.memory_space<vmem>>, vector<384x512xbf16>
    %cst = arith.constant dense<0.000000e+00> : vector<48x512xf32>
    %20 = tpu.matmul %18, %19, %cst {dimension_numbers = #tpu.dot_dimension_numbers<[1], [0], [0], [1], [0, 0, 1, 1], [], []>} : vector<48x384xbf16>, vector<384x512xbf16>, vector<48x512xf32> -> vector<48x512xf32>
    %c0_6 = arith.constant 0 : index
    %c0_7 = arith.constant 0 : index
    %21 = vector.load %arg4[%c0_6, %c0_7] : memref<1x512xf32, #tpu.memory_space<vmem>>, vector<1x512xf32>
    %22 = vector.broadcast %21 : vector<1x512xf32> to vector<48x512xf32>
    %23 = arith.addf %20, %22 : vector<48x512xf32>
    %cst_8 = arith.constant 0.000000e+00 : f32
    %24 = vector.broadcast %cst_8 : f32 to vector<48x512xf32>
    %25 = arith.maximumf %23, %24 : vector<48x512xf32>
    %cst_9 = arith.constant 0.000000e+00 : f32
    %26 = vector.shape_cast %12 : vector<48x1xi1> to vector<48x1xi1>
    %27 = vector.broadcast %26 : vector<48x1xi1> to vector<48x512xi1>
    %28 = vector.broadcast %cst_9 : f32 to vector<48x512xf32>
    %29 = arith.select %27, %25, %28 : vector<48x512xi1>, vector<48x512xf32>
    %c1_i32_10 = arith.constant 1 : i32
    %30 = tpu.dynamic_rotate %29 by %c1_i32_10 dim 0 : vector<48x512xf32>, i32 -> vector<48x512xf32>
    %31 = arith.truncf %30 : vector<48x512xf32> to vector<48x512xbf16>
    %c47_i32_11 = arith.constant 47 : i32
    %32 = tpu.dynamic_rotate %29 by %c47_i32_11 dim 0 : vector<48x512xf32>, i32 -> vector<48x512xf32>
    %33 = arith.truncf %32 : vector<48x512xf32> to vector<48x512xbf16>
    %c0_12 = arith.constant 0 : index
    %c0_13 = arith.constant 0 : index
    %c0_14 = arith.constant 0 : index
    %34 = vector.load %arg5[%c0_12, %c0_13, %c0_14] : memref<3x512x512xbf16, #tpu.memory_space<vmem>>, vector<1x512x512xbf16>
    %35 = vector.shape_cast %34 : vector<1x512x512xbf16> to vector<512x512xbf16>
    %cst_15 = arith.constant dense<0.000000e+00> : vector<48x512xf32>
    %36 = tpu.matmul %31, %35, %cst_15 {dimension_numbers = #tpu.dot_dimension_numbers<[1], [0], [0], [1], [0, 0, 1, 1], [], []>} : vector<48x512xbf16>, vector<512x512xbf16>, vector<48x512xf32> -> vector<48x512xf32>
    %37 = arith.truncf %29 : vector<48x512xf32> to vector<48x512xbf16>
    %c1 = arith.constant 1 : index
    %c0_16 = arith.constant 0 : index
    %c0_17 = arith.constant 0 : index
    %38 = vector.load %arg5[%c1, %c0_16, %c0_17] : memref<3x512x512xbf16, #tpu.memory_space<vmem>>, vector<1x512x512xbf16>
    %39 = vector.shape_cast %38 : vector<1x512x512xbf16> to vector<512x512xbf16>
    %cst_18 = arith.constant dense<0.000000e+00> : vector<48x512xf32>
    %40 = tpu.matmul %37, %39, %cst_18 {dimension_numbers = #tpu.dot_dimension_numbers<[1], [0], [0], [1], [0, 0, 1, 1], [], []>} : vector<48x512xbf16>, vector<512x512xbf16>, vector<48x512xf32> -> vector<48x512xf32>
    %41 = arith.addf %36, %40 : vector<48x512xf32>
    %c2 = arith.constant 2 : index
    %c0_19 = arith.constant 0 : index
    %c0_20 = arith.constant 0 : index
    %42 = vector.load %arg5[%c2, %c0_19, %c0_20] : memref<3x512x512xbf16, #tpu.memory_space<vmem>>, vector<1x512x512xbf16>
    %43 = vector.shape_cast %42 : vector<1x512x512xbf16> to vector<512x512xbf16>
    %cst_21 = arith.constant dense<0.000000e+00> : vector<48x512xf32>
    %44 = tpu.matmul %33, %43, %cst_21 {dimension_numbers = #tpu.dot_dimension_numbers<[1], [0], [0], [1], [0, 0, 1, 1], [], []>} : vector<48x512xbf16>, vector<512x512xbf16>, vector<48x512xf32> -> vector<48x512xf32>
    %45 = arith.addf %41, %44 : vector<48x512xf32>
    %c0_22 = arith.constant 0 : index
    %c0_23 = arith.constant 0 : index
    %46 = vector.load %arg6[%c0_22, %c0_23] : memref<1x512xf32, #tpu.memory_space<vmem>>, vector<1x512xf32>
    %47 = vector.broadcast %46 : vector<1x512xf32> to vector<48x512xf32>
    %48 = arith.addf %45, %47 : vector<48x512xf32>
    %cst_24 = arith.constant 0.000000e+00 : f32
    %49 = vector.broadcast %cst_24 : f32 to vector<48x512xf32>
    %50 = arith.maximumf %48, %49 : vector<48x512xf32>
    %51 = arith.truncf %50 : vector<48x512xf32> to vector<48x512xbf16>
    %c0_25 = arith.constant 0 : index
    %c0_26 = arith.constant 0 : index
    %52 = vector.load %arg7[%c0_25, %c0_26] : memref<512x3xbf16, #tpu.memory_space<vmem>>, vector<512x3xbf16>
    %cst_27 = arith.constant dense<0.000000e+00> : vector<48x3xf32>
    %53 = tpu.matmul %51, %52, %cst_27 {dimension_numbers = #tpu.dot_dimension_numbers<[1], [0], [0], [1], [0, 0, 1, 1], [], []>} : vector<48x512xbf16>, vector<512x3xbf16>, vector<48x3xf32> -> vector<48x3xf32>
    %c0_28 = arith.constant 0 : index
    %c0_29 = arith.constant 0 : index
    %54 = vector.load %arg8[%c0_28, %c0_29] : memref<1x3xf32, #tpu.memory_space<vmem>>, vector<1x3xf32>
    %55 = vector.broadcast %54 : vector<1x3xf32> to vector<48x3xf32>
    %56 = arith.addf %53, %55 : vector<48x3xf32>
    %cst_30 = arith.constant 1.000000e-01 : f32
    %57 = vector.broadcast %cst_30 : f32 to vector<48x3xf32>
    %58 = arith.mulf %57, %56 : vector<48x3xf32>
    %59 = arith.negf %58 : vector<48x3xf32>
    %60 = math.exp %59 : vector<48x3xf32>
    %cst_31 = arith.constant 1.000000e+00 : f32
    %61 = vector.broadcast %cst_31 : f32 to vector<48x3xf32>
    %62 = arith.addf %61, %60 : vector<48x3xf32>
    %63 = arith.divf %61, %62 : vector<48x3xf32>
    %64 = vector.shape_cast %63 : vector<48x3xf32> to vector<2x1x24x3xf32>
    %c0_32 = arith.constant 0 : index
    %c0_33 = arith.constant 0 : index
    %c0_34 = arith.constant 0 : index
    %c0_35 = arith.constant 0 : index
    %65 = vector.load %arg9[%c0_32, %c0_33, %c0_34, %c0_35] : memref<2x1x24x3xf32, #tpu.memory_space<vmem>>, vector<2x1x24x3xf32>
    tpu.vector_store %arg9[%c0_32, %c0_33, %c0_34, %c0_35], %64 {strides = array<i32>} : memref<2x1x24x3xf32, #tpu.memory_space<vmem>>, vector<2x1x24x3xf32>,
    return
  }
  func.func @transform_0(%arg0: i32, %arg1: i32) -> (i32, i32, i32, i32) {
    %c0_i32 = arith.constant 0 : i32
    %c0_i32_0 = arith.constant 0 : i32
    %c0_i32_1 = arith.constant 0 : i32
    return %arg0, %arg1, %c0_i32, %c0_i32_0 : i32, i32, i32, i32
  }
  func.func @transform_1(%arg0: i32, %arg1: i32) -> (i32, i32) {
    %c0_i32 = arith.constant 0 : i32
    %c0_i32_0 = arith.constant 0 : i32
    %c0_i32_1 = arith.constant 0 : i32
    return %c0_i32, %c0_i32_0 : i32, i32
  }
  func.func @transform_2(%arg0: i32, %arg1: i32) -> (i32, i32) {
    %c0_i32 = arith.constant 0 : i32
    %c0_i32_0 = arith.constant 0 : i32
    %c0_i32_1 = arith.constant 0 : i32
    return %c0_i32, %c0_i32_0 : i32, i32
  }
  func.func @transform_3(%arg0: i32, %arg1: i32) -> (i32, i32, i32) {
    %c0_i32 = arith.constant 0 : i32
    %c0_i32_0 = arith.constant 0 : i32
    %c0_i32_1 = arith.constant 0 : i32
    %c0_i32_2 = arith.constant 0 : i32
    return %c0_i32, %c0_i32_0, %c0_i32_1 : i32, i32, i32
  }
  func.func @transform_4(%arg0: i32, %arg1: i32) -> (i32, i32) {
    %c0_i32 = arith.constant 0 : i32
    %c0_i32_0 = arith.constant 0 : i32
    %c0_i32_1 = arith.constant 0 : i32
    return %c0_i32, %c0_i32_0 : i32, i32
  }
  func.func @transform_5(%arg0: i32, %arg1: i32) -> (i32, i32) {
    %c0_i32 = arith.constant 0 : i32
    %c0_i32_0 = arith.constant 0 : i32
    %c0_i32_1 = arith.constant 0 : i32
    return %c0_i32, %c0_i32_0 : i32, i32
  }
  func.func @transform_6(%arg0: i32, %arg1: i32) -> (i32, i32) {
    %c0_i32 = arith.constant 0 : i32
    %c0_i32_0 = arith.constant 0 : i32
    %c0_i32_1 = arith.constant 0 : i32
    return %c0_i32, %c0_i32_0 : i32, i32
  }
  func.func @transform_7(%arg0: i32, %arg1: i32) -> (i32, i32, i32, i32) {
    %c0_i32 = arith.constant 0 : i32
    %c0_i32_0 = arith.constant 0 : i32
    %c0_i32_1 = arith.constant 0 : i32
    return %arg0, %arg1, %c0_i32, %c0_i32_0 : i32, i32, i32, i32
  }
}

</mosaic_0001>

<bundles_post_ra>
// kernel: tpu_custom_call.1
= control target key start
LH: loop header
LB: loop body
LE: loop exit
PB: predicated region body
PF: predicated region fallthrough
CT: control target
= control target key end

     0   :  { %12 = vsyncpa [#allocation3], 0  ;;  %s7599_s0 = inlined_call_operand.hbm [shape: bf16[2,1,24,128], index: 0, kind: input, shape index: {}]   ;;  %s7600_s1 = inlined_call_operand.hbm [shape: bf16[384,512], index: 1, kind: input, shape index: {}]   ;;  %s7601_s2 = inlined_call_operand.hbm [shape: f32[1,512], index: 2, kind: input, shape index: {}]   ;;  %s7602_s3 = inlined_call_operand.hbm [shape: bf16[3,512,512], index: 3, kind: input, shape index: {}]   ;;  %s7603_s4 = inlined_call_operand.hbm [shape: f32[1,512], index: 4, kind: input, shape index: {}]   ;;  %s7604_s5 = inlined_call_operand.vmem [shape: bf16[512,3], index: 5, kind: input, shape index: {}]   ;;  %s7605_s6 = inlined_call_operand.hbm [shape: f32[1,3], index: 6, kind: input, shape index: {}]   ;;  %s7606_s7 = inlined_call_operand.vmem [shape: f32[2,1,24,3], index: 7, kind: output, shape index: {}]  }
   0x1   :  { %13 = vsyncpa [#allocation5], 0 }
   0x2   :  { %14 = vsyncpa [#allocation8], 0 }
   0x3   :  { %15 = vsyncpa [#allocation11], 0  ;;  %s6586_s24 = smov [#allocation4]   ;;  %s6446_s28 = scalar_lea.hbm %s7600_s1, 12288 }
   0x4   :  { %s33_s25 = sshll.u32 %s6586_s24, 4  ;;  %p6447_p0 = scmp.ne.s32.totalorder %s7600_s1, %s6446_s28  ;;  %s34_s25 = int_to_ptr.vmem [resolvable:$true] %s33_s25 }
   0x5   :  { %p6450_p1 = scmp.lt.u32.totalorder %s6446_s28, %s7600_s1 }
   0x7   :  { %p6452_p2 = pnand %p6450_p1, %p6447_p0 }
   0x9   :  { %6455 = shalt.err (!%p6452_p2)
}
   0xa   :  { %s6456_s10 = scalar_lea.vmem %s34_s25, 12288  ;;  %p6461_p4 = scmp.lt.s32.totalorder %s34_s25, %s34_s25 }
   0xb   :  { %p6457_p3 = scmp.ne.s32.totalorder %s34_s25, %s6456_s10  ;;  %p6462_p5 = scmp.lt.s32.totalorder %s6456_s10, %s6456_s10 }
   0xd   :  { %p6463_p6 = por %p6462_p5, %p6461_p4 }
   0xf   :  { %p6464_p7 = pnand %p6463_p6, %p6457_p3 }
  0x11   :  { %6467 = shalt.err (!%p6464_p7)
}
  0x12   :  { %s6587_s11 = smov 256   ;;  %s6588_s12 = smov 16  }
  0x13   :  { %39 = dma.hbm_to_vmem [thread:$0]  %s7600_s1, 12288, %s34_s25, [#allocation5], %s6587_s11, %s6587_s11, %s6588_s12  }
  0x14   :  { %s6589_s15 = smov [#allocation7]   ;;  %s6590_s17 = smov [#allocation2]  }
  0x15   :  { %s55_s16 = sshll.u32 %s6589_s15, 4  ;;  %s21_s18 = sshll.u32 %s6590_s17, 4  ;;  %s56_s16 = int_to_ptr.vmem [resolvable:$true] %s55_s16  ;;  %s22_s18 = int_to_ptr.vmem [resolvable:$true] %s21_s18 }
  0x16   :  { %s6468_s21 = scalar_lea.hbm %s7602_s3, 49152 }
  0x17   :  { %p6469_p8 = scmp.ne.s32.totalorder %s7602_s3, %s6468_s21  ;;  %p6472_p9 = scmp.lt.u32.totalorder %s6468_s21, %s7602_s3 }
  0x19   :  { %p6474_p10 = pnand %p6472_p9, %p6469_p8 }
  0x1b   :  { %6477 = shalt.err (!%p6474_p10)
}
  0x1c   :  { %s6478_s1 = scalar_lea.vmem %s56_s16, 49152  ;;  %p6483_p12 = scmp.lt.s32.totalorder %s56_s16, %s56_s16 }
  0x1d   :  { %p6479_p11 = scmp.ne.s32.totalorder %s56_s16, %s6478_s1  ;;  %p6484_p13 = scmp.lt.s32.totalorder %s6478_s1, %s6478_s1 }
  0x1f   :  { %p6485_p0 = por %p6484_p13, %p6483_p12 }
  0x21   :  { %p6486_p1 = pnand %p6485_p0, %p6479_p11 }
  0x23   :  { %6489 = shalt.err (!%p6486_p1)
}
  0x24   :  { %61 = dma.hbm_to_vmem [thread:$0]  %s7602_s3, 49152, %s56_s16, [#allocation8], %s6587_s11, %s6587_s11, %s6588_s12  }
  0x25   :  { %s6490_s30 = scalar_lea.hbm %s7599_s0, 384 }
  0x26   :  { %p6491_p2 = scmp.ne.s32.totalorder %s7599_s0, %s6490_s30  ;;  %p6494_p3 = scmp.lt.u32.totalorder %s6490_s30, %s7599_s0 }
  0x28   :  { %p6496_p4 = pnand %p6494_p3, %p6491_p2 }
  0x2a   :  { %6499 = shalt.err (!%p6496_p4)
}
  0x2b   :  { %s6500_s14 = scalar_lea.vmem %s22_s18, 384  ;;  %p6505_p6 = scmp.lt.s32.totalorder %s22_s18, %s22_s18 }
  0x2c   :  { %p6501_p5 = scmp.ne.s32.totalorder %s22_s18, %s6500_s14  ;;  %p6506_p7 = scmp.lt.s32.totalorder %s6500_s14, %s6500_s14 }
  0x2e   :  { %p6507_p8 = por %p6506_p7, %p6505_p6 }
  0x30   :  { %p6508_p9 = pnand %p6507_p8, %p6501_p5 }
  0x32   :  { %6511 = shalt.err (!%p6508_p9)
}
  0x33   :  { %s6591_s3 = smov 64   ;;  %s6592_s11 = smov 4  }
  0x34   :  { %27 = dma.hbm_to_vmem [thread:$0]  %s7599_s0, 384, %s22_s18, [#allocation3], %s6591_s3, %s6591_s3, %s6592_s11  }
  0x35   :  { %s6593_s16 = smov [#allocation6]   ;;  %s6594_s19 = smov [#allocation9]  }
  0x36   :  { %s46_s17 = sshll.u32 %s6593_s16, 4  ;;  %s68_s20 = sshll.u32 %s6594_s19, 4  ;;  %s47_s17 = int_to_ptr.vmem [resolvable:$true] %s46_s17  ;;  %s69_s20 = int_to_ptr.vmem [resolvable:$true] %s68_s20 }
  0x37   :  { %s6512_s23 = scalar_lea.hbm %s7601_s2, 64 }
  0x38   :  { %p6513_p10 = scmp.ne.s32.totalorder %s7601_s2, %s6512_s23  ;;  %p6516_p11 = scmp.lt.u32.totalorder %s6512_s23, %s7601_s2 }
  0x3a   :  { %p6518_p12 = pnand %p6516_p11, %p6513_p10 }
  0x3c   :  { %6521 = shalt.err (!%p6518_p12)
}
  0x3d   :  { %s6522_s0 = scalar_lea.vmem %s47_s17, 64  ;;  %p6527_p0 = scmp.lt.s32.totalorder %s47_s17, %s47_s17 }
  0x3e   :  { %p6523_p13 = scmp.ne.s32.totalorder %s47_s17, %s6522_s0  ;;  %p6528_p1 = scmp.lt.s32.totalorder %s6522_s0, %s6522_s0 }
  0x40   :  { %p6529_p2 = por %p6528_p1, %p6527_p0 }
  0x42   :  { %p6530_p3 = pnand %p6529_p2, %p6523_p13 }
  0x44   :  { %6533 = shalt.err (!%p6530_p3)
}
  0x45   :  { %49 = dma.hbm_to_vmem [thread:$0]  %s7601_s2, 64, %s47_s17, [#allocation5]  }
  0x46   :  { %s6534_s30 = scalar_lea.hbm %s7603_s4, 64 }
  0x47   :  { %p6535_p4 = scmp.ne.s32.totalorder %s7603_s4, %s6534_s30  ;;  %p6538_p5 = scmp.lt.u32.totalorder %s6534_s30, %s7603_s4 }
  0x49   :  { %p6540_p6 = pnand %p6538_p5, %p6535_p4 }
  0x4b   :  { %6543 = shalt.err (!%p6540_p6)
}
  0x4c   :  { %s6544_s14 = scalar_lea.vmem %s69_s20, 64  ;;  %p6549_p8 = scmp.lt.s32.totalorder %s69_s20, %s69_s20 }
  0x4d   :  { %p6545_p7 = scmp.ne.s32.totalorder %s69_s20, %s6544_s14  ;;  %p6550_p9 = scmp.lt.s32.totalorder %s6544_s14, %s6544_s14 }
  0x4f   :  { %p6551_p10 = por %p6550_p9, %p6549_p8 }
  0x51   :  { %p6552_p11 = pnand %p6551_p10, %p6545_p7 }
  0x53   :  { %6555 = shalt.err (!%p6552_p11)
}
  0x54   :  { %71 = dma.hbm_to_vmem [thread:$0]  %s7603_s4, 64, %s69_s20, [#allocation8]  }
  0x55   :  { %s6595_s11 = smov [#allocation10]   ;;  %s6556_s17 = scalar_lea.hbm %s7605_s6, 16 }
  0x56   :  { %s80_s12 = sshll.u32 %s6595_s11, 4  ;;  %p6557_p12 = scmp.ne.s32.totalorder %s7605_s6, %s6556_s17  ;;  %s81_s12 = int_to_ptr.vmem [resolvable:$true] %s80_s12 }
  0x57   :  { %p6560_p13 = scmp.lt.u32.totalorder %s6556_s17, %s7605_s6 }
  0x59   :  { %p6562_p0 = pnand %p6560_p13, %p6557_p12 }
  0x5b   :  { %6565 = shalt.err (!%p6562_p0)
}
  0x5c   :  { %s6566_s24 = scalar_lea.vmem %s81_s12, 16  ;;  %s6570_s4 = scalar_lea.vmem %s81_s12, 32 }
  0x5d   :  { %p6567_p1 = scmp.ne.s32.totalorder %s81_s12, %s6566_s24  ;;  %p6571_p2 = scmp.lt.s32.totalorder %s81_s12, %s81_s12 }
  0x5e   :  { %p6572_p3 = scmp.lt.s32.totalorder %s6570_s4, %s6566_s24 }
  0x60   :  { %p6573_p4 = por %p6572_p3, %p6571_p2 }
  0x62   :  { %p6574_p5 = pnand %p6573_p4, %p6567_p1 }
  0x64   :  { %6577 = shalt.err (!%p6574_p5)
}
  0x65   :  { %83 = dma.hbm_to_vmem [thread:$0]  %s7605_s6, 16, %s81_s12, [#allocation11]  }
  0x66   :  { %6578 = dma.done.wait [#allocation3], 384  }
  0x67   :  { %6579 = vsyncadd [#allocation3], 4294966912 }
  0x68   :  { %6580 = dma.done.wait [#allocation5], 12352  }
  0x69   :  { %6581 = vsyncadd [#allocation5], 4294954944 }
  0x6a   :  { %6582 = dma.done.wait [#allocation8], 49216  }
  0x6b   :  { %6583 = vsyncadd [#allocation8], 4294918080 }
  0x6c   :  { %6584 = dma.done.wait [#allocation11], 16  }
  0x6d   :  { %6585 = vsyncadd [#allocation11], 4294967280  ;;  %v5664_v0 = vld [vmem:[#allocation4 + $0x4] ss:$16 sps:$4 sm:$0xff]   ;;  %v5666_v1 = vld [vmem:[#allocation4] ss:$16 sps:$4 sm:$0xff]   ;;  %v111_v51 = vlaneseq }
  0x6e   :  { %782 = vmatprep.subr.bf16.mxu0 %v5664_v0  ;;  %v5667_v2 = vld [vmem:[#allocation4 + $0x24] ss:$16 sps:$4 sm:$0xff]   ;;  %v5669_v3 = vld [vmem:[#allocation4 + $0x20] ss:$16 sps:$4 sm:$0xff]   ;;  %v5676_v5 = vld [vmem:[#allocation4 + $0xc] ss:$16 sps:$4 sm:$0xff]  }
  0x6f   :  { %783 = vmatpush1.bf16.msra.mxu0 %v5666_v1  ;;  %v5670_v4 = vld [vmem:[#allocation4 + $0x44] ss:$16 sps:$4 sm:$0xff]   ;;  %v5678_v6 = vld [vmem:[#allocation4 + $0x8] ss:$16 sps:$4 sm:$0xff]   ;;  %v5672_v7 = vld [vmem:[#allocation4 + $0x40] ss:$16 sps:$4 sm:$0xff]   ;;  %908 = vmatprep.subr.bf16.mxu1 %v5676_v5 }
  0x70   :  { %784 = vmatprep.subr.bf16.mxu0 %v5667_v2  ;;  %v5673_v8 = vld [vmem:[#allocation4 + $0x64] ss:$16 sps:$4 sm:$0xff]   ;;  %v5682_v9 = vld [vmem:[#allocation4 + $0x2c] ss:$16 sps:$4 sm:$0xff]   ;;  %909 = vmatpush1.bf16.msra.mxu1 %v5678_v6  ;;  %v5684_v10 = vld [vmem:[#allocation4 + $0x28] ss:$16 sps:$4 sm:$0xff]  }
  0x71   :  { %910 = vmatprep.subr.bf16.mxu1 %v5682_v9  ;;  %v5675_v11 = vld [vmem:[#allocation4 + $0x60] ss:$16 sps:$4 sm:$0xff]   ;;  %v5688_v12 = vld [vmem:[#allocation4 + $0x4c] ss:$16 sps:$4 sm:$0xff]   ;;  %v5679_v13 = vld [vmem:[#allocation4 + $0x84] ss:$16 sps:$4 sm:$0xff]  }
  0x72   :  { %v5690_v14 = vld [vmem:[#allocation4 + $0x48] ss:$16 sps:$4 sm:$0xff]   ;;  %v5694_v15 = vld [vmem:[#allocation4 + $0x6c] ss:$16 sps:$4 sm:$0xff]   ;;  %v5681_v16 = vld [vmem:[#allocation4 + $0x80] ss:$16 sps:$4 sm:$0xff]  }
  0x73   :  { %785 = vmatpush1.bf16.msra.mxu0 %v5669_v3  ;;  %v5685_v17 = vld [vmem:[#allocation4 + $0xa4] ss:$16 sps:$4 sm:$0xff]   ;;  %v5696_v18 = vld [vmem:[#allocation4 + $0x68] ss:$16 sps:$4 sm:$0xff]   ;;  %v5700_v19 = vld [vmem:[#allocation4 + $0x8c] ss:$16 sps:$4 sm:$0xff]  }
  0x74   :  { %786 = vmatprep.subr.bf16.mxu0 %v5670_v4  ;;  %911 = vmatpush1.bf16.msra.mxu1 %v5684_v10  ;;  %v5687_v20 = vld [vmem:[#allocation4 + $0xa0] ss:$16 sps:$4 sm:$0xff]   ;;  %v5691_v21 = vld [vmem:[#allocation4 + $0xc4] ss:$16 sps:$4 sm:$0xff]   ;;  %v5702_v22 = vld [vmem:[#allocation4 + $0x88] ss:$16 sps:$4 sm:$0xff]  }
  0x75   :  { %912 = vmatprep.subr.bf16.mxu1 %v5688_v12  ;;  %v5706_v23 = vld [vmem:[#allocation4 + $0xac] ss:$16 sps:$4 sm:$0xff]   ;;  %v5693_v24 = vld [vmem:[#allocation4 + $0xc0] ss:$16 sps:$4 sm:$0xff]   ;;  %v5697_v25 = vld [vmem:[#allocation4 + $0xe4] ss:$16 sps:$4 sm:$0xff]  }
  0x76   :  { %v5708_v26 = vld [vmem:[#allocation4 + $0xa8] ss:$16 sps:$4 sm:$0xff]   ;;  %v5712_v27 = vld [vmem:[#allocation4 + $0xcc] ss:$16 sps:$4 sm:$0xff]   ;;  %v5699_v28 = vld [vmem:[#allocation4 + $0xe0] ss:$16 sps:$4 sm:$0xff]  }
  0x77   :  { %787 = vmatpush1.bf16.msra.mxu0 %v5672_v7  ;;  %v5703_v29 = vld [vmem:[#allocation4 + $0x104] ss:$16 sps:$4 sm:$0xff]   ;;  %v5714_v30 = vld [vmem:[#allocation4 + $0xc8] ss:$16 sps:$4 sm:$0xff]   ;;  %v5718_v31 = vld [vmem:[#allocation4 + $0xec] ss:$16 sps:$4 sm:$0xff]  }
  0x78   :  { %788 = vmatprep.subr.bf16.mxu0 %v5673_v8  ;;  %913 = vmatpush1.bf16.msra.mxu1 %v5690_v14  ;;  %v5705_v32 = vld [vmem:[#allocation4 + $0x100] ss:$16 sps:$4 sm:$0xff]   ;;  %v5709_v33 = vld [vmem:[#allocation4 + $0x124] ss:$16 sps:$4 sm:$0xff]   ;;  %v5720_v34 = vld [vmem:[#allocation4 + $0xe8] ss:$16 sps:$4 sm:$0xff]  }
  0x79   :  { %914 = vmatprep.subr.bf16.mxu1 %v5694_v15  ;;  %v5724_v35 = vld [vmem:[#allocation4 + $0x10c] ss:$16 sps:$4 sm:$0xff]   ;;  %v5711_v36 = vld [vmem:[#allocation4 + $0x120] ss:$16 sps:$4 sm:$0xff]   ;;  %v5715_v37 = vld [vmem:[#allocation4 + $0x144] ss:$16 sps:$4 sm:$0xff]  }
  0x7a   :  { %v5726_v38 = vld [vmem:[#allocation4 + $0x108] ss:$16 sps:$4 sm:$0xff]   ;;  %v5730_v39 = vld [vmem:[#allocation4 + $0x12c] ss:$16 sps:$4 sm:$0xff]   ;;  %v5717_v41 = vld [vmem:[#allocation4 + $0x140] ss:$16 sps:$4 sm:$0xff]  }
  0x7b   :  { %789 = vmatpush1.bf16.msra.mxu0 %v5675_v11  ;;  %v6710_v40 = vld [vmem:[#allocation2] sm:$0xff]   ;;  %v5721_v42 = vld [vmem:[#allocation4 + $0x164] ss:$16 sps:$4 sm:$0xff]   ;;  %v5723_v45 = vld [vmem:[#allocation4 + $0x160] ss:$16 sps:$4 sm:$0xff]   ;;  %v6719_v60 = vshrl.u32 %v111_v51, 7 }
  0x7c   :  { %790 = vmatprep.subr.bf16.mxu0 %v5679_v13  ;;  %915 = vmatpush1.bf16.msra.mxu1 %v5696_v18  ;;  %v5732_v43 = vld [vmem:[#allocation4 + $0x128] ss:$16 sps:$4 sm:$0xff]   ;;  %v5736_v44 = vld [vmem:[#allocation4 + $0x14c] ss:$16 sps:$4 sm:$0xff]   ;;  %v5727_v46 = vld [vmem:[#allocation4 + $0x184] ss:$16 sps:$4 sm:$0xff]   ;;  %v128_v56 = vunpack.c.l.bf16 %v6710_v40  ;;  %v129_v57 = vunpack.c.h.bf16 %v6710_v40 }
  0x7d   :  { %916 = vmatprep.subr.bf16.mxu1 %v5700_v19  ;;  %814 = vmatprep.mubr.bf16.mxu0 %v6710_v40  ;;  %v5738_v47 = vld [vmem:[#allocation4 + $0x148] ss:$16 sps:$4 sm:$0xff]   ;;  %v5742_v48 = vld [vmem:[#allocation4 + $0x16c] ss:$16 sps:$4 sm:$0xff]   ;;  %v5729_v49 = vld [vmem:[#allocation4 + $0x180] ss:$16 sps:$4 sm:$0xff]  }
  0x7e   :  { %940 = vmatprep.mubr.bf16.mxu1 %v6710_v40  ;;  %v5733_v50 = vld [vmem:[#allocation4 + $0x1a4] ss:$16 sps:$4 sm:$0xff]   ;;  %v6714_v52 = vld [vmem:[#allocation2 + $0x10] sm:$0xff]   ;;  %v5735_v55 = vld [vmem:[#allocation4 + $0x1a0] ss:$16 sps:$4 sm:$0xff]   ;;  %v134_v0 = vrot.slane %v128_v56, 7 }
  0x7f   :  { %791 = vmatpush1.bf16.msra.mxu0 %v5681_v16  ;;  %v5744_v53 = vld [vmem:[#allocation4 + $0x168] ss:$16 sps:$4 sm:$0xff]   ;;  %v5748_v54 = vld [vmem:[#allocation4 + $0x18c] ss:$16 sps:$4 sm:$0xff]   ;;  %v133_v58 = vunpack.c.h.bf16 %v6714_v52  ;;  %v5739_v59 = vld [vmem:[#allocation4 + $0x1c4] ss:$16 sps:$4 sm:$0xff]  }
  0x80   :  { %792 = vmatprep.subr.bf16.mxu0 %v5685_v17  ;;  %917 = vmatpush1.bf16.msra.mxu1 %v5702_v22  ;;  %v5741_v61 = vld [vmem:[#allocation4 + $0x1c0] ss:$16 sps:$4 sm:$0xff]   ;;  %v5750_v62 = vld [vmem:[#allocation4 + $0x188] ss:$16 sps:$4 sm:$0xff]   ;;  %v5755_v63 = vld [vmem:[#allocation4 + $0x1ac] ss:$16 sps:$4 sm:$0xff]  }
  0x81   :  { %918 = vmatprep.subr.bf16.mxu1 %v5706_v23  ;;  %v135_v1 = vrot.slane %v129_v57, 7  ;;  %v139_v2 = vrot.slane %v133_v58, 7  ;;  %v5745_v3 = vld [vmem:[#allocation4 + $0x1e4] ss:$16 sps:$4 sm:$0xff]   ;;  %vm140_vm0 = vcmp.lt.s32.totalorder %v6719_v60, 1  ;;  %v6758_v51 = vrot.slane %v128_v56, 1 }
  0x82   :  { %v6728_v4 = vld [vmem:[#allocation2 + $0x8] sm:$0xff]   ;;  %v5757_v5 = vld [vmem:[#allocation4 + $0x1a8] ss:$16 sps:$4 sm:$0xff]   ;;  %v5761_v6 = vld [vmem:[#allocation4 + $0x1cc] ss:$16 sps:$4 sm:$0xff]   ;;  %vm156_vm1 = vcmp.lt.s32.totalorder %v6719_v60, 7 }
  0x83   :  { %793 = vmatpush1.bf16.msra.mxu0 %v5687_v20  ;;  %v5747_v7 = vld [vmem:[#allocation4 + $0x1e0] ss:$16 sps:$4 sm:$0xff]   ;;  %v145_v8 = vsel %vm140_vm0, %v134_v0, %v135_v1  ;;  %v146_v9 = vsel %vm140_vm0, %v139_v2, %v134_v0  ;;  %v130_v10 = vunpack.c.l.bf16 %v6728_v4  ;;  %v131_v11 = vunpack.c.h.bf16 %v6728_v4  ;;  %v5754_v12 = vld [vmem:[#allocation4 + $0x204] ss:$16 sps:$4 sm:$0xff]   ;;  %v5763_v13 = vld [vmem:[#allocation4 + $0x1c8] ss:$16 sps:$4 sm:$0xff]  }
  0x84   :  { %794 = vmatprep.subr.bf16.mxu0 %v5691_v21  ;;  %919 = vmatpush1.bf16.msra.mxu1 %v5708_v26  ;;  %v147_v14 = vpack.c.bf16 %v145_v8, %v146_v9  ;;  %v5767_v15 = vld [vmem:[#allocation4 + $0x1ec] ss:$16 sps:$4 sm:$0xff]   ;;  %v5752_v16 = vld [vmem:[#allocation4 + $0x200] ss:$16 sps:$4 sm:$0xff]   ;;  %v5760_v19 = vld [vmem:[#allocation4 + $0x224] ss:$16 sps:$4 sm:$0xff]  }
  0x85   :  { %920 = vmatprep.subr.bf16.mxu1 %v5712_v27  ;;  %v136_v17 = vrot.slane %v130_v10, 7  ;;  %v137_v18 = vrot.slane %v131_v11, 7  ;;  %v5769_v20 = vld [vmem:[#allocation4 + $0x1e8] ss:$16 sps:$4 sm:$0xff]   ;;  %v5775_v21 = vld [vmem:[#allocation4 + $0x20c] ss:$16 sps:$4 sm:$0xff]  }
  0x86   :  { %v5758_v22 = vld [vmem:[#allocation4 + $0x220] ss:$16 sps:$4 sm:$0xff]   ;;  %v5766_v26 = vld [vmem:[#allocation4 + $0x244] ss:$16 sps:$4 sm:$0xff]   ;;  %v5773_v27 = vld [vmem:[#allocation4 + $0x208] ss:$16 sps:$4 sm:$0xff]  }
  0x87   :  { %795 = vmatpush1.bf16.msra.mxu0 %v5693_v24  ;;  %v143_v23 = vsel %vm140_vm0, %v136_v17, %v137_v18  ;;  %v144_v24 = vsel %vm140_vm0, %v135_v1, %v136_v17  ;;  %v5807_v56 = vld [vmem:[#allocation4 + $0x2cc] ss:$16 sps:$4 sm:$0xff]   ;;  %v5813_v0 = vld [vmem:[#allocation7 + $0x404] ss:$16 sps:$4 sm:$0xff]   ;;  %v155_v17 = vrot.slane %v133_v58, 1  ;;  %vm6597_vm3 = vmmov 1  }
  0x88   :  { %796 = vmatprep.subr.bf16.mxu0 %v5697_v25  ;;  %921 = vmatpush1.bf16.msra.mxu1 %v5714_v30  ;;  %v132_v25 = vunpack.c.l.bf16 %v6714_v52  ;;  %v5764_v30 = vld [vmem:[#allocation4 + $0x240] ss:$16 sps:$4 sm:$0xff]   ;;  %v5805_v1 = vld [vmem:[#allocation4 + $0x2c8] ss:$16 sps:$4 sm:$0xff]   ;;  %vm4807_vm8 = vcmask 23552  }
  0x89   :  { %922 = vmatprep.subr.bf16.mxu1 %v5718_v31  ;;  %v5819_v8 = vld [vmem:[#allocation7 + $0x424] ss:$16 sps:$4 sm:$0xff]   ;;  %v162_v58 = vsel %vm156_vm1, %v155_v17, %v6758_v51 }
  0x8a   :  { %v138_v31 = vrot.slane %v132_v25, 7  ;;  %v5808_v9 = vld [vmem:[#allocation4 + $0x2e8] ss:$16 sps:$4 sm:$0xff]  }
  0x8b   :  { %797 = vmatpush1.bf16.msra.mxu0 %v5699_v28  ;;  %v148_v28 = vpack.c.bf16 %v143_v23, %v144_v24  ;;  %v5837_v23 = vld [vmem:[#allocation7 + $0x484] ss:$16 sps:$4 sm:$0xff]   ;;  %v5826_v24 = vld [vmem:[#allocation7 + $0x448] ss:$16 sps:$4 sm:$0xff]  }
  0x8c   :  { %798 = vmatprep.subr.bf16.mxu0 %v5703_v29  ;;  %923 = vmatpush1.bf16.msra.mxu1 %v5720_v34  ;;  %v5782_v29 = vld [vmem:[#allocation4 + $0x22c] ss:$16 sps:$4 sm:$0xff]  }
  0x8d   :  { %924 = vmatprep.subr.bf16.mxu1 %v5724_v35  ;;  %v5788_v34 = vld [vmem:[#allocation4 + $0x24c] ss:$16 sps:$4 sm:$0xff]   ;;  %v5770_v35 = vld [vmem:[#allocation4 + $0x260] ss:$16 sps:$4 sm:$0xff]  }
  0x8f   :  { %799 = vmatpush1.bf16.msra.mxu0 %v5705_v32  ;;  %v5772_v32 = vld [vmem:[#allocation4 + $0x264] ss:$16 sps:$4 sm:$0xff]  }
  0x90   :  { %800 = vmatprep.subr.bf16.mxu0 %v5709_v33  ;;  %925 = vmatpush1.bf16.msra.mxu1 %v5726_v38  ;;  %v5780_v33 = vld [vmem:[#allocation4 + $0x228] ss:$16 sps:$4 sm:$0xff]   ;;  %v5779_v38 = vld [vmem:[#allocation4 + $0x284] ss:$16 sps:$4 sm:$0xff]  }
  0x91   :  { %926 = vmatprep.subr.bf16.mxu1 %v5730_v39  ;;  %v5786_v39 = vld [vmem:[#allocation4 + $0x248] ss:$16 sps:$4 sm:$0xff]  }
  0x93   :  { %801 = vmatpush1.bf16.msra.mxu0 %v5711_v36  ;;  %v141_v36 = vsel %vm140_vm0, %v138_v31, %v139_v2 }
  0x94   :  { %802 = vmatprep.subr.bf16.mxu0 %v5715_v37  ;;  %927 = vmatpush1.bf16.msra.mxu1 %v5732_v43  ;;  %v142_v37 = vsel %vm140_vm0, %v137_v18, %v138_v31  ;;  %v5777_v43 = vld [vmem:[#allocation4 + $0x280] ss:$16 sps:$4 sm:$0xff]   ;;  %v5820_v18 = vld [vmem:[#allocation7 + $0x428] ss:$16 sps:$4 sm:$0xff]   ;;  %v5841_v31 = vld [vmem:[#allocation7 + $0x4a0] ss:$16 sps:$4 sm:$0xff]  }
  0x95   :  { %928 = vmatprep.subr.bf16.mxu1 %v5736_v44  ;;  %v5785_v44 = vld [vmem:[#allocation4 + $0x2a4] ss:$16 sps:$4 sm:$0xff]  }
  0x97   :  { %803 = vmatpush1.bf16.msra.mxu0 %v5717_v41  ;;  %v149_v41 = vpack.c.bf16 %v141_v36, %v142_v37  ;;  %v5855_v36 = vld [vmem:[#allocation7 + $0x4e4] ss:$16 sps:$4 sm:$0xff]   ;;  %v5844_v37 = vld [vmem:[#allocation7 + $0x4a8] ss:$16 sps:$4 sm:$0xff]  }
  0x98   :  { %804 = vmatprep.subr.bf16.mxu0 %v5721_v42  ;;  %929 = vmatpush1.bf16.msra.mxu1 %v5738_v47  ;;  %v5795_v42 = vld [vmem:[#allocation4 + $0x26c] ss:$16 sps:$4 sm:$0xff]   ;;  %v5783_v47 = vld [vmem:[#allocation4 + $0x2a0] ss:$16 sps:$4 sm:$0xff]  }
  0x99   :  { %930 = vmatprep.subr.bf16.mxu1 %v5742_v48  ;;  %v6596_v48 = vmov 0  }
  0x9b   :  { %805 = vmatpush1.bf16.msra.mxu0 %v5723_v45  ;;  %v5793_v45 = vld [vmem:[#allocation4 + $0x268] ss:$16 sps:$4 sm:$0xff]  }
  0x9c   :  { %806 = vmatprep.subr.bf16.mxu0 %v5727_v46  ;;  %931 = vmatpush1.bf16.msra.mxu1 %v5744_v53  ;;  %v5801_v46 = vld [vmem:[#allocation4 + $0x28c] ss:$16 sps:$4 sm:$0xff]  }
  0x9d   :  { %932 = vmatprep.subr.bf16.mxu1 %v5748_v54  ;;  %v5804_v53 = vld [vmem:[#allocation4 + $0x2ac] ss:$16 sps:$4 sm:$0xff]   ;;  %v151_v54 = vrot.slane %v129_v57, 1 }
  0x9f   :  { %807 = vmatpush1.bf16.msra.mxu0 %v5729_v49  ;;  %v5792_v49 = vld [vmem:[#allocation4 + $0x2c4] ss:$16 sps:$4 sm:$0xff]   ;;  %v161_v40 = vsel %vm156_vm1, %v6758_v51, %v151_v54  ;;  %v5870_v51 = vld [vmem:[#allocation7 + $0x52c] ss:$16 sps:$4 sm:$0xff]  }
  0xa0   :  { %808 = vmatprep.subr.bf16.mxu0 %v5733_v50  ;;  %933 = vmatpush1.bf16.msra.mxu1 %v5750_v62  ;;  %v5799_v50 = vld [vmem:[#allocation4 + $0x288] ss:$16 sps:$4 sm:$0xff]  }
  0xa1   :  { %934 = vmatprep.subr.bf16.mxu1 %v5755_v63  ;;  %v5802_v62 = vld [vmem:[#allocation4 + $0x2a8] ss:$16 sps:$4 sm:$0xff]   ;;  %v5796_v63 = vld [vmem:[#allocation4 + $0x2e0] ss:$16 sps:$4 sm:$0xff]  }
  0xa3   :  { %809 = vmatpush1.bf16.msra.mxu0 %v5735_v55  ;;  %v152_v55 = vrot.slane %v130_v10, 1  ;;  %v5816_v10 = vld [vmem:[#allocation7 + $0x40c] ss:$16 sps:$4 sm:$0xff]  }
  0xa4   :  { %810 = vmatprep.subr.bf16.mxu0 %v5739_v59  ;;  %935 = vmatpush1.bf16.msra.mxu1 %v5757_v5  ;;  %v5790_v59 = vld [vmem:[#allocation4 + $0x2c0] ss:$16 sps:$4 sm:$0xff]   ;;  %v153_v5 = vrot.slane %v131_v11, 1  ;;  %v5817_v11 = vld [vmem:[#allocation7 + $0x420] ss:$16 sps:$4 sm:$0xff]  }
  0xa5   :  { %936 = vmatprep.subr.bf16.mxu1 %v5761_v6  ;;  %v160_v57 = vsel %vm156_vm1, %v151_v54, %v152_v55  ;;  %v154_v6 = vrot.slane %v132_v25, 1  ;;  %v5834_v25 = vld [vmem:[#allocation7 + $0x46c] ss:$16 sps:$4 sm:$0xff]   ;;  %v5879_v54 = vld [vmem:[#allocation7 + $0x564] ss:$16 sps:$4 sm:$0xff]  }
  0xa6   :  { %v163_v2 = vpack.c.bf16 %v160_v57, %v161_v40  ;;  %v5882_v40 = vld [vmem:[#allocation7 + $0x56c] ss:$16 sps:$4 sm:$0xff]   ;;  %v5883_v57 = vld [vmem:[#allocation7 + $0x580] ss:$16 sps:$4 sm:$0xff]  }
  0xa7   :  { %811 = vmatpush1.bf16.msra.mxu0 %v5741_v61  ;;  %v5798_v61 = vld [vmem:[#allocation4 + $0x2e4] ss:$16 sps:$4 sm:$0xff]  }
  0xa8   :  { %812 = vmatprep.subr.bf16.mxu0 %v5745_v3  ;;  %937 = vmatpush1.bf16.msra.mxu1 %v5763_v13  ;;  %v5810_v3 = vld [vmem:[#allocation4 + $0x2ec] ss:$16 sps:$4 sm:$0xff]   ;;  %v5825_v13 = vld [vmem:[#allocation7 + $0x444] ss:$16 sps:$4 sm:$0xff]  }
  0xa9   :  { %938 = vmatprep.subr.bf16.mxu1 %v5767_v15 }
  0xab   :  { %813 = vmatpush1.bf16.msra.mxu0 %v5747_v7  ;;  %v5811_v7 = vld [vmem:[#allocation7 + $0x400] ss:$16 sps:$4 sm:$0xff]  }
  0xac   :  { %845 = vmatprep.subr.bf16.mxu0 %v5754_v12  ;;  %939 = vmatpush1.bf16.msra.mxu1 %v5769_v20  ;;  %v158_v12 = vsel %vm156_vm1, %v153_v5, %v154_v6  ;;  %v5831_v20 = vld [vmem:[#allocation7 + $0x464] ss:$16 sps:$4 sm:$0xff]  }
  0xad   :  { %971 = vmatprep.subr.bf16.mxu1 %v5775_v21  ;;  %v5828_v21 = vld [vmem:[#allocation7 + $0x44c] ss:$16 sps:$4 sm:$0xff]  }
  0xae   :  { %815 = vmatmul.mubr.bf16.vlgmr.msra.gmra.mrb[0].mxu0 %v147_v14 }
  0xaf   :  { %846 = vmatpush1.bf16.msra.mxu0 %v5752_v16  ;;  %824 = vmatprep.mubr.bf16.mxu0 %v6728_v4  ;;  %v5822_v16 = vld [vmem:[#allocation7 + $0x42c] ss:$16 sps:$4 sm:$0xff]  }
  0xb0   :  { %847 = vmatprep.subr.bf16.mxu0 %v5760_v19  ;;  %941 = vmatmul.mubr.bf16.vlgmr.msra.gmra.mrb[0].mxu1 %v147_v14  ;;  %v5814_v14 = vld [vmem:[#allocation7 + $0x408] ss:$16 sps:$4 sm:$0xff]   ;;  %v5823_v19 = vld [vmem:[#allocation7 + $0x440] ss:$16 sps:$4 sm:$0xff]  }
  0xb1   :  { %972 = vmatpush1.bf16.msra.mxu1 %v5773_v27  ;;  %950 = vmatprep.mubr.bf16.mxu1 %v6728_v4  ;;  %v159_v4 = vsel %vm156_vm1, %v152_v55, %v153_v5  ;;  %v5868_v55 = vld [vmem:[#allocation7 + $0x528] ss:$16 sps:$4 sm:$0xff]   ;;  %v5894_v5 = vld [vmem:[#allocation7 + $0x5ac] ss:$16 sps:$4 sm:$0xff]  }
  0xb2   :  { %973 = vmatprep.subr.bf16.mxu1 %v5782_v29  ;;  %v164_v15 = vpack.c.bf16 %v158_v12, %v159_v4  ;;  %v5832_v29 = vld [vmem:[#allocation7 + $0x468] ss:$16 sps:$4 sm:$0xff]   ;;  %v5903_v12 = vld [vmem:[#allocation7 + $0x5e4] ss:$16 sps:$4 sm:$0xff]   ;;  %v5906_v4 = vld [vmem:[#allocation7 + $0x5ec] ss:$16 sps:$4 sm:$0xff]  }
  0xb3   :  { %848 = vmatpush1.bf16.msra.mxu0 %v5758_v22  ;;  %v5829_v22 = vld [vmem:[#allocation7 + $0x460] ss:$16 sps:$4 sm:$0xff]  }
  0xb4   :  { %849 = vmatprep.subr.bf16.mxu0 %v5766_v26  ;;  %v5835_v26 = vld [vmem:[#allocation7 + $0x480] ss:$16 sps:$4 sm:$0xff]  }
  0xb5   :  { %974 = vmatpush1.bf16.msra.mxu1 %v5780_v33  ;;  %v5838_v33 = vld [vmem:[#allocation7 + $0x488] ss:$16 sps:$4 sm:$0xff]  }
  0xb6   :  { %825 = vmatmul.mubr.bf16.gmra.mrb[4].mxu0 %v148_v28  ;;  %975 = vmatprep.subr.bf16.mxu1 %v5788_v34  ;;  %v5846_v34 = vld [vmem:[#allocation7 + $0x4ac] ss:$16 sps:$4 sm:$0xff]  }
  0xb7   :  { %850 = vmatpush1.bf16.msra.mxu0 %v5764_v30  ;;  %834 = vmatprep.mubr.bf16.mxu0 %v6714_v52  ;;  %v5840_v30 = vld [vmem:[#allocation7 + $0x48c] ss:$16 sps:$4 sm:$0xff]  }
  0xb8   :  { %851 = vmatprep.subr.bf16.mxu0 %v5772_v32  ;;  %951 = vmatmul.mubr.bf16.gmra.mrb[4].mxu1 %v148_v28  ;;  %v5843_v28 = vld [vmem:[#allocation7 + $0x4a4] ss:$16 sps:$4 sm:$0xff]  }
  0xb9   :  { %976 = vmatpush1.bf16.msra.mxu1 %v5786_v39  ;;  %960 = vmatprep.mubr.bf16.mxu1 %v6714_v52  ;;  %v157_v52 = vsel %vm156_vm1, %v154_v6, %v155_v17  ;;  %v5849_v32 = vld [vmem:[#allocation7 + $0x4c4] ss:$16 sps:$4 sm:$0xff]   ;;  %v5853_v39 = vld [vmem:[#allocation7 + $0x4e0] ss:$16 sps:$4 sm:$0xff]   ;;  %v5892_v6 = vld [vmem:[#allocation7 + $0x5a8] ss:$16 sps:$4 sm:$0xff]  }
  0xba   :  { %977 = vmatprep.subr.bf16.mxu1 %v5795_v42  ;;  %v165_v27 = vpack.c.bf16 %v162_v58, %v157_v52  ;;  %v5850_v42 = vld [vmem:[#allocation7 + $0x4c8] ss:$16 sps:$4 sm:$0xff]   ;;  %v280_v17 = vld [vmem:[#allocation6] sm:$0xf]  ;;  %v114_v58 = vadd.s32 16, %v6719_v60 }
  0xbb   :  { %852 = vmatpush1.bf16.msra.mxu0 %v5770_v35  ;;  %v5847_v35 = vld [vmem:[#allocation7 + $0x4c0] ss:$16 sps:$4 sm:$0xff]  }
  0xbc   :  { %853 = vmatprep.subr.bf16.mxu0 %v5779_v38  ;;  %v5852_v38 = vld [vmem:[#allocation7 + $0x4cc] ss:$16 sps:$4 sm:$0xff]  }
  0xbd   :  { %978 = vmatpush1.bf16.msra.mxu1 %v5793_v45  ;;  %v5867_v45 = vld [vmem:[#allocation7 + $0x524] ss:$16 sps:$4 sm:$0xff]  }
  0xbe   :  { %835 = vmatmul.mubr.bf16.gmra.mrb[8].mxu0 %v149_v41  ;;  %979 = vmatprep.subr.bf16.mxu1 %v5801_v46  ;;  %v5856_v46 = vld [vmem:[#allocation7 + $0x4e8] ss:$16 sps:$4 sm:$0xff]  }
  0xbf   :  { %854 = vmatpush1.bf16.msra.mxu0 %v5777_v43  ;;  %877 = vmatprep.mubr.bf16.mxu0 %v6596_v48  ;;  %v5858_v43 = vld [vmem:[#allocation7 + $0x4ec] ss:$16 sps:$4 sm:$0xff]  }
  0xc0   :  { %855 = vmatprep.subr.bf16.mxu0 %v5785_v44  ;;  %961 = vmatmul.mubr.bf16.gmra.mrb[8].mxu1 %v149_v41  ;;  %v5861_v41 = vld [vmem:[#allocation7 + $0x504] ss:$16 sps:$4 sm:$0xff]   ;;  %v5859_v44 = vld [vmem:[#allocation7 + $0x500] ss:$16 sps:$4 sm:$0xff]  }
  0xc1   :  { %980 = vmatpush1.bf16.msra.mxu1 %v5799_v50  ;;  %1003 = vmatprep.mubr.bf16.mxu1 %v6596_v48  ;;  %v5862_v50 = vld [vmem:[#allocation7 + $0x508] ss:$16 sps:$4 sm:$0xff]  }
  0xc2   :  { %981 = vmatprep.subr.bf16.mxu1 %v5804_v53  ;;  %v5871_v53 = vld [vmem:[#allocation7 + $0x540] ss:$16 sps:$4 sm:$0xff]  }
  0xc3   :  { %856 = vmatpush1.bf16.msra.mxu0 %v5783_v47  ;;  %v5864_v47 = vld [vmem:[#allocation7 + $0x50c] ss:$16 sps:$4 sm:$0xff]  }
  0xc4   :  { %857 = vmatprep.subr.bf16.mxu0 %v5792_v49  ;;  %v5873_v49 = vld [vmem:[#allocation7 + $0x544] ss:$16 sps:$4 sm:$0xff]  }
  0xc5   :  { %982 = vmatpush1.bf16.msra.mxu1 %v5802_v62  ;;  %v5885_v62 = vld [vmem:[#allocation7 + $0x584] ss:$16 sps:$4 sm:$0xff]  }
  0xc6   :  { %983 = vmatprep.subr.bf16.mxu1 %v5807_v56  ;;  %v5874_v56 = vld [vmem:[#allocation7 + $0x548] ss:$16 sps:$4 sm:$0xff]  }
  0xc7   :  { %858 = vmatpush1.bf16.msra.mxu0 %v5790_v59  ;;  %v5876_v59 = vld [vmem:[#allocation7 + $0x54c] ss:$16 sps:$4 sm:$0xff]  }
  0xc8   :  { %859 = vmatprep.subr.bf16.mxu0 %v5798_v61  ;;  %v5877_v61 = vld [vmem:[#allocation7 + $0x560] ss:$16 sps:$4 sm:$0xff]  }
  0xc9   :  { %984 = vmatpush1.bf16.msra.mxu1 %v5805_v1  ;;  %v5888_v1 = vld [vmem:[#allocation7 + $0x58c] ss:$16 sps:$4 sm:$0xff]  }
  0xca   :  { %985 = vmatprep.subr.bf16.mxu1 %v5810_v3  ;;  %v5886_v3 = vld [vmem:[#allocation7 + $0x588] ss:$16 sps:$4 sm:$0xff]  }
  0xcb   :  { %860 = vmatpush1.bf16.msra.mxu0 %v5796_v63  ;;  %v5891_v63 = vld [vmem:[#allocation7 + $0x5a4] ss:$16 sps:$4 sm:$0xff]  }
  0xcc   :  { %2117 = vmatprep.subr.bf16.mxu0 %v5813_v0  ;;  %v5880_v0 = vld [vmem:[#allocation7 + $0x568] ss:$16 sps:$4 sm:$0xff]  }
  0xcd   :  { %986 = vmatpush1.bf16.msra.mxu1 %v5808_v9  ;;  %v5895_v9 = vld [vmem:[#allocation7 + $0x5c0] ss:$16 sps:$4 sm:$0xff]  }
  0xce   :  { %878 = vmatmul.mubr.bf16.vlgmr.msra.gmra.mrb[0].mxu0 %v163_v2  ;;  %2243 = vmatprep.subr.bf16.mxu1 %v5816_v10  ;;  %v5898_v10 = vld [vmem:[#allocation7 + $0x5c8] ss:$16 sps:$4 sm:$0xff]  }
  0xcf   :  { %887 = vmatprep.mubr.bf16.mxu0 %v6596_v48  ;;  %2118 = vmatpush1.bf16.msra.mxu0 %v5811_v7  ;;  %v5897_v7 = vld [vmem:[#allocation7 + $0x5c4] ss:$16 sps:$4 sm:$0xff]  }
  0xd0   :  { %2119 = vmatprep.subr.bf16.mxu0 %v5819_v8  ;;  %1004 = vmatmul.mubr.bf16.vlgmr.msra.gmra.mrb[0].mxu1 %v163_v2  ;;  %v5889_v2 = vld [vmem:[#allocation7 + $0x5a0] ss:$16 sps:$4 sm:$0xff]   ;;  %v5900_v8 = vld [vmem:[#allocation7 + $0x5cc] ss:$16 sps:$4 sm:$0xff]  }
  0xd1   :  { %1013 = vmatprep.mubr.bf16.mxu1 %v6596_v48  ;;  %2244 = vmatpush1.bf16.msra.mxu1 %v5814_v14  ;;  %v5909_v14 = vld [vmem:[#allocation7 + $0x604] ss:$16 sps:$4 sm:$0xff]  }
  0xd2   :  { %2245 = vmatprep.subr.bf16.mxu1 %v5822_v16  ;;  %v7610_v16 = vsub.s32 0, %v6719_v60 }
  0xd3   :  { %2120 = vmatpush1.bf16.msra.mxu0 %v5817_v11  ;;  %v5901_v11 = vld [vmem:[#allocation7 + $0x5e0] ss:$16 sps:$4 sm:$0xff]  }
  0xd4   :  { %2121 = vmatprep.subr.bf16.mxu0 %v5825_v13  ;;  %v5904_v13 = vld [vmem:[#allocation7 + $0x5e8] ss:$16 sps:$4 sm:$0xff]  }
  0xd5   :  { %2246 = vmatpush1.bf16.msra.mxu1 %v5820_v18  ;;  %v7608_v18 = vsub.s32 1, %v6719_v60 }
  0xd6   :  { %888 = vmatmul.mubr.bf16.gmra.mrb[4].mxu0 %v164_v15  ;;  %2247 = vmatprep.subr.bf16.mxu1 %v5828_v21 }
  0xd7   :  { %897 = vmatprep.mubr.bf16.mxu0 %v6596_v48  ;;  %2122 = vmatpush1.bf16.msra.mxu0 %v5823_v19  ;;  %v6794_v19 = vrot.slane %v280_v17, %v7610_v16  ;;  %v6801_v21 = vrot.slane %v280_v17, %v7608_v18 }
  0xd8   :  { %2123 = vmatprep.subr.bf16.mxu0 %v5831_v20  ;;  %1014 = vmatmul.mubr.bf16.gmra.mrb[4].mxu1 %v164_v15  ;;  %v5912_v15 = vld [vmem:[#allocation7 + $0x60c] ss:$16 sps:$4 sm:$0xff]   ;;  %v6797_v20 = vadd.s32 4294967292, %v6719_v60 }
  0xd9   :  { %1023 = vmatprep.mubr.bf16.mxu1 %v6596_v48  ;;  %2248 = vmatpush1.bf16.msra.mxu1 %v5826_v24  ;;  %v5865_v48 = vld [vmem:[#allocation7 + $0x520] ss:$16 sps:$4 sm:$0xff]   ;;  %v7609_v24 = vsub.s32 2, %v6719_v60 }
  0xda   :  { %2249 = vmatprep.subr.bf16.mxu1 %v5834_v25  ;;  %vm119_vm2 = vcmp.ge.s32.totalorder %v6797_v20, 0 }
  0xdb   :  { %2124 = vmatpush1.bf16.msra.mxu0 %v5829_v22  ;;  %vm6832_vm4 = vmpackc.low %vm6597_vm3, %vm119_vm2 }
  0xdc   :  { %2125 = vmatprep.subr.bf16.mxu0 %v5837_v23 }
  0xdd   :  { %2250 = vmatpush1.bf16.msra.mxu1 %v5832_v29 }
  0xde   :  { %898 = vmatmul.mubr.bf16.gmra.mrb[8].mxu0 %v165_v27  ;;  %2251 = vmatprep.subr.bf16.mxu1 %v5840_v30 }
  0xdf   :  { %2126 = vmatpush1.bf16.msra.mxu0 %v5835_v26 }
  0xe0   :  { %2127 = vmatprep.subr.bf16.mxu0 %v5843_v28  ;;  %1024 = vmatmul.mubr.bf16.gmra.mrb[8].mxu1 %v165_v27 }
  0xe1   :  { %2252 = vmatpush1.bf16.msra.mxu1 %v5838_v33 }
  0xe2   :  { %2253 = vmatprep.subr.bf16.mxu1 %v5846_v34  ;;  %v6817_v34 = vadd.s32 4294967292, %v114_v58 }
  0xe3   :  { %2128 = vmatpush1.bf16.msra.mxu0 %v5841_v31  ;;  %v7607_v31 = vsub.s32 3, %v6719_v60 }
  0xe4   :  { %2129 = vmatprep.subr.bf16.mxu0 %v5849_v32  ;;  %vm124_vm5 = vcmp.lt.s32.totalorder %v6817_v34, 16 }
  0xe5   :  { %2254 = vmatpush1.bf16.msra.mxu1 %v5844_v37  ;;  %vm6914_vm6 = vmpackc.low %vm119_vm2, %vm124_vm5 }
  0xe6   :  { %2255 = vmatprep.subr.bf16.mxu1 %v5852_v38  ;;  %vm7000_vm7 = vmpackc.low %vm124_vm5, %vm6597_vm3 }
  0xe7   :  { %2130 = vmatpush1.bf16.msra.mxu0 %v5847_v35  ;;  %v6821_v35 = vrot.slane %v280_v17, %v7609_v24 }
  0xe8   :  { %2131 = vmatprep.subr.bf16.mxu0 %v5855_v36 }
  0xe9   :  { %2256 = vmatpush1.bf16.msra.mxu1 %v5850_v42 }
  0xea   :  { %2257 = vmatprep.subr.bf16.mxu1 %v5858_v43 }
  0xeb   :  { %2132 = vmatpush1.bf16.msra.mxu0 %v5853_v39 }
  0xec   :  { %2133 = vmatprep.subr.bf16.mxu0 %v5861_v41 }
  0xed   :  { %2258 = vmatpush1.bf16.msra.mxu1 %v5856_v46 }
  0xee   :  { %2259 = vmatprep.subr.bf16.mxu1 %v5864_v47 }
  0xef   :  { %2134 = vmatpush1.bf16.msra.mxu0 %v5859_v44  ;;  %v6015_v44 = vld [vmem:[#allocation7 + $0x40] ss:$16 sps:$4 sm:$0xff]  }
  0xf0   :  { %2135 = vmatprep.subr.bf16.mxu0 %v5867_v45 }
  0xf1   :  { %2260 = vmatpush1.bf16.msra.mxu1 %v5862_v50  ;;  %v5910_v50 = vld [vmem:[#allocation7 + $0x608] ss:$16 sps:$4 sm:$0xff]  }
  0xf2   :  { %2261 = vmatprep.subr.bf16.mxu1 %v5870_v51  ;;  %v6840_v51 = vrot.slane %v280_v17, %v7607_v31 }
  0xf3   :  { %2136 = vmatpush1.bf16.msra.mxu0 %v5865_v48 }
  0xf4   :  { %2137 = vmatprep.subr.bf16.mxu0 %v5873_v49  ;;  %v5907_v49 = vld [vmem:[#allocation7 + $0x600] ss:$16 sps:$4 sm:$0xff]  }
  0xf5   :  { %2262 = vmatpush1.bf16.msra.mxu1 %v5868_v55 }
  0xf6   :  { %2263 = vmatprep.subr.bf16.mxu1 %v5876_v59 }
  0xf7   :  { %2138 = vmatpush1.bf16.msra.mxu0 %v5871_v53 }
  0xf8   :  { %2139 = vmatprep.subr.bf16.mxu0 %v5879_v54 }
  0xf9   :  { %2264 = vmatpush1.bf16.msra.mxu1 %v5874_v56  ;;  %v5918_v56 = vld [vmem:[#allocation7 + $0x62c] ss:$16 sps:$4 sm:$0xff]  }
  0xfa   :  { %2265 = vmatprep.subr.bf16.mxu1 %v5882_v40 }
  0xfb   :  { %2140 = vmatpush1.bf16.msra.mxu0 %v5877_v61 }
  0xfc   :  { %2141 = vmatprep.subr.bf16.mxu0 %v5885_v62  ;;  %v5915_v62 = vld [vmem:[#allocation7 + $0x624] ss:$16 sps:$4 sm:$0xff]  }
  0xfd   :  { %2266 = vmatpush1.bf16.msra.mxu1 %v5880_v0 }
  0xfe   :  { %2267 = vmatprep.subr.bf16.mxu1 %v5888_v1 }
  0xff   :  { %2142 = vmatpush1.bf16.msra.mxu0 %v5883_v57 }
 0x100   :  { %2143 = vmatprep.subr.bf16.mxu0 %v5891_v63 }
 0x101   :  { %2268 = vmatpush1.bf16.msra.mxu1 %v5886_v3 }
 0x102   :  { %2269 = vmatprep.subr.bf16.mxu1 %v5894_v5 }
 0x103   :  { %2144 = vmatpush1.bf16.msra.mxu0 %v5889_v2 }
 0x104   :  { %2145 = vmatprep.subr.bf16.mxu0 %v5897_v7 }
 0x105   :  { %2270 = vmatpush1.bf16.msra.mxu1 %v5892_v6  ;;  %v5913_v6 = vld [vmem:[#allocation7 + $0x620] ss:$16 sps:$4 sm:$0xff]  }
 0x106   :  { %2271 = vmatprep.subr.bf16.mxu1 %v5900_v8 }
 0x107   :  { %2146 = vmatpush1.bf16.msra.mxu0 %v5895_v9 }
 0x108   :  { %2147 = vmatprep.subr.bf16.mxu0 %v5903_v12  ;;  %v5916_v12 = vld [vmem:[#allocation7 + $0x628] ss:$16 sps:$4 sm:$0xff]  }
 0x109   :  { %2272 = vmatpush1.bf16.msra.mxu1 %v5898_v10 }
 0x10a   :  { %2273 = vmatprep.subr.bf16.mxu1 %v5906_v4  ;;  %v5921_v4 = vld [vmem:[#allocation7 + $0x644] ss:$16 sps:$4 sm:$0xff]  }
 0x10b   :  { %2148 = vmatpush1.bf16.msra.mxu0 %v5901_v11 }
 0x10c   :  { %2180 = vmatprep.subr.bf16.mxu0 %v5909_v14 }
 0x10d   :  { %2274 = vmatpush1.bf16.msra.mxu1 %v5904_v13 }
 0x10e   :  { %2306 = vmatprep.subr.bf16.mxu1 %v5912_v15  ;;  %v5931_v15 = vld [vmem:[#allocation7 + $0x680] ss:$16 sps:$4 sm:$0xff]  }
 0x1a1   :  { %v879_v22 = vpop.f32.mrb[0].mxu0 }
 0x1a2   :  { %v5484_v23 = vadd.f32 %v879_v22, %v6794_v19  ;;  %v881_v52 = vpop.f32.mrb[1].mxu0 }
 0x1a3   :  { %v5485_v25 = vadd.f32 %v881_v52, %v6801_v21  ;;  %v883_v26 = vpop.f32.mrb[2].mxu0  ;;  %v1005_v41 = vpop.f32.mrb[0].mxu1 }
 0x1a4   :  { %v1034_v27 = vmax.f32 %v5484_v23, 0.0  ;;  %v5486_v28 = vadd.f32 %v883_v26, %v6794_v19  ;;  %v885_v29 = vpop.f32.mrb[3].mxu0  ;;  %v1007_v45 = vpop.f32.mrb[1].mxu1  ;;  %v6856_v40 = vadd.f32 %v1005_v41, %v6821_v35  ;;  %v5924_v23 = vld [vmem:[#allocation7 + $0x64c] ss:$16 sps:$4 sm:$0xff]  }
 0x1a5   :  { %v5487_v30 = vadd.f32 %v885_v29, %v6801_v21  ;;  %v1035_v38 = vmax.f32 %v5485_v25, 0.0  ;;  %v1009_v53 = vpop.f32.mrb[2].mxu1  ;;  %v6877_v11 = vadd.f32 %v1007_v45, %v6840_v51 }
 0x1a6   :  { %v6813_v32 = vsel %vm119_vm2, %v1034_v27, 0.0  ;;  %v6815_v33 = vmax.f32 %v5486_v28, 0.0  ;;  %v1011_v57 = vpop.f32.mrb[3].mxu1  ;;  %v1036_v7 = vmax.f32 %v6856_v40, 0.0  ;;  %v5498_v8 = vadd.f32 %v1009_v53, %v6821_v35  ;;  %v5934_v28 = vld [vmem:[#allocation7 + $0x688] ss:$16 sps:$4 sm:$0xff]  }
 0x1a7   :  { %v1088_v36 = vrot.slane %v6813_v32, 7  ;;  %v7612_v37 = vrot.slane %v6813_v32, 1  ;;  %v6825_v39 = vmax.f32 %v5487_v30, 0.0  ;;  %v6860_v63 = vsel %vm119_vm2, %v1035_v38, 0.0  ;;  %v5919_v30 = vld [vmem:[#allocation7 + $0x640] ss:$16 sps:$4 sm:$0xff]  }
 0x1a8   :  { %v1092_v42 = vrot.slane %v6815_v33, 7  ;;  %v1152_v43 = vrot.slane %v6815_v33, 1  ;;  %v5053_v46 = vpack.c.bf16 %v6815_v33, %v1034_v27  ;;  %v5499_v13 = vadd.f32 %v1011_v57, %v6840_v51 }
 0x1a9   :  { %v5050_v47 = vpack.c.bf16 %v6825_v39, %v1035_v38  ;;  %v889_v48 = vpop.f32.mrb[4].mxu0  ;;  %v1089_v14 = vrot.slane %v6860_v63, 7  ;;  %v1093_v52 = vrot.slane %v6825_v39, 7  ;;  %v5922_v38 = vld [vmem:[#allocation7 + $0x648] ss:$16 sps:$4 sm:$0xff]   ;;  %v6899_v41 = vsel %vm119_vm2, %v1036_v7, 0.0 }
 0x1aa   :  { %v6848_v54 = vsel %vm140_vm0, %v1088_v36, %v1092_v42  ;;  %v1188_v55 = vsel %vm156_vm1, %v7612_v37, %v1152_v43  ;;  %v5488_v59 = vadd.f32 %v889_v48, %v6794_v19  ;;  %v891_v61 = vpop.f32.mrb[5].mxu0  ;;  %v6901_v45 = vmax.f32 %v5498_v8, 0.0 }
 0x1ab   :  { %v5489_v0 = vadd.f32 %v891_v61, %v6801_v21  ;;  %v893_v1 = vpop.f32.mrb[6].mxu0  ;;  %5051 = vmatprep.mubr.msk.bf16.mxu0 %vm6832_vm4, %v5050_v47  ;;  %5087 = vmatprep.mubr.msk.bf16.mxu1 %vm6832_vm4, %v5050_v47  ;;  %v6892_v27 = vpop.f32.mrb[4].mxu1  ;;  %v1037_v53 = vmax.f32 %v6877_v11, 0.0  ;;  %v7611_v8 = vrot.slane %v6899_v41, 1 }
 0x1ac   :  { %v1042_v2 = vmax.f32 %v5488_v59, 0.0  ;;  %v5490_v3 = vadd.f32 %v893_v1, %v6794_v19  ;;  %v895_v5 = vpop.f32.mrb[7].mxu0  ;;  %5054 = vmatmul.mubr.msk.bf16.vlgmr.msra.gmra.mrb[12].mxu0 %vm6832_vm4, %v5053_v46  ;;  %5090 = vmatmul.mubr.msk.bf16.vlgmr.msra.gmra.mrb[12].mxu1 %vm6832_vm4, %v5053_v46  ;;  %v6903_v46 = vpop.f32.mrb[5].mxu1  ;;  %v6919_v59 = vmax.f32 %v5499_v13, 0.0  ;;  %v5927_v1 = vld [vmem:[#allocation7 + $0x664] ss:$16 sps:$4 sm:$0xff]   ;;  %v6991_v37 = vpack.c.bf16 %v6901_v45, %v1036_v7 }
 0x1ad   :  { %v1043_v9 = vmax.f32 %v5489_v0, 0.0  ;;  %v5491_v10 = vadd.f32 %v895_v5, %v6801_v21  ;;  %2181 = vmatpush1.bf16.msra.mxu0 %v5907_v49  ;;  %2307 = vmatpush1.bf16.msra.mxu1 %v5910_v50  ;;  %v6921_v61 = vpop.f32.mrb[6].mxu1  ;;  %v5925_v13 = vld [vmem:[#allocation7 + $0x660] ss:$16 sps:$4 sm:$0xff]   ;;  %v5501_v11 = vadd.f32 %v6903_v46, %v6840_v51 }
 0x1ae   :  { %v6884_v17 = vsel %vm124_vm5, %v1042_v2, 0.0  ;;  %v1046_v22 = vmax.f32 %v5490_v3, 0.0  ;;  %2182 = vmatprep.subr.bf16.mxu0 %v5915_v62  ;;  %2308 = vmatprep.subr.bf16.mxu1 %v5918_v56  ;;  %v6027_v50 = vld [vmem:[#allocation7 + $0x80] ss:$16 sps:$4 sm:$0xff]  }
 0x1af   :  { %v7613_v58 = vrot.slane %v6884_v17, 1  ;;  %v6890_v25 = vsel %vm124_vm5, %v1043_v9, 0.0  ;;  %v1047_v26 = vmax.f32 %v5491_v10, 0.0  ;;  %v1096_v47 = vrot.slane %v6884_v17, 7  ;;  %v5930_v10 = vld [vmem:[#allocation7 + $0x66c] ss:$16 sps:$4 sm:$0xff]  }
 0x1b0   :  { %v5059_v29 = vpack.c.bf16 %v1046_v22, %v1042_v2  ;;  %v6928_v56 = vsel %vm119_vm2, %v1046_v22, 0.0  ;;  %v6930_v2 = vpop.f32.mrb[7].mxu1  ;;  %v7614_v22 = vrot.slane %v6901_v45, 7 }
 0x1b1   :  { %v1184_v48 = vsel %vm156_vm1, %v1152_v43, %v7613_v58  ;;  %2183 = vmatpush1.bf16.msra.mxu0 %v5913_v6  ;;  %2309 = vmatpush1.bf16.msra.mxu1 %v5916_v12  ;;  %v899_v49 = vpop.f32.mrb[8].mxu0  ;;  %v1097_v43 = vrot.slane %v6890_v25, 7  ;;  %v5056_v57 = vpack.c.bf16 %v1047_v26, %v1043_v9  ;;  %v6938_v12 = vsel %vm119_vm2, %v1047_v26, 0.0 }
 0x1b2   :  { %v6923_v62 = vpack.c.bf16 %v1184_v48, %v1188_v55  ;;  %v901_v0 = vpop.f32.mrb[9].mxu0  ;;  %2184 = vmatprep.subr.bf16.mxu0 %v5921_v4  ;;  %2310 = vmatprep.subr.bf16.mxu1 %v5924_v23  ;;  %v5492_v3 = vadd.f32 %v899_v49, %v6794_v19  ;;  %v1090_v55 = vrot.slane %v6899_v41, 7  ;;  %v1154_v23 = vrot.slane %v6901_v45, 1 }
 0x1b3   :  { %v5493_v5 = vadd.f32 %v901_v0, %v6801_v21  ;;  %v903_v6 = vpop.f32.mrb[10].mxu0  ;;  %5057 = vmatprep.mubr.msk.bf16.mxu0 %vm6914_vm6, %v5056_v57  ;;  %5093 = vmatprep.mubr.msk.bf16.mxu1 %vm6914_vm6, %v5056_v57  ;;  %v1100_v49 = vrot.slane %v6928_v56, 7  ;;  %v5928_v57 = vld [vmem:[#allocation7 + $0x668] ss:$16 sps:$4 sm:$0xff]   ;;  %v1025_v18 = vpop.f32.mrb[8].mxu1  ;;  %v5503_v46 = vadd.f32 %v6930_v2, %v6840_v51  ;;  %v1125_v34 = vsel %vm140_vm0, %v1093_v52, %v1097_v43 }
 0x1b4   :  { %v5494_v9 = vadd.f32 %v903_v6, %v6794_v19  ;;  %v905_v4 = vpop.f32.mrb[11].mxu0  ;;  %v6949_v26 = vmax.f32 %v5492_v3, 0.0  ;;  %5060 = vmatmul.mubr.msk.bf16.gmra.mrb[16].mxu0 %vm6914_vm6, %v5059_v29  ;;  %5096 = vmatmul.mubr.msk.bf16.gmra.mrb[16].mxu1 %vm6914_vm6, %v5059_v29  ;;  %v6960_v6 = vsel %vm119_vm2, %v1037_v53, 0.0  ;;  %v6976_v29 = vsel %vm156_vm1, %v7611_v8, %v1154_v23  ;;  %v1027_v58 = vpop.f32.mrb[9].mxu1  ;;  %v5948_v3 = vld [vmem:[#allocation7 + $0x6cc] ss:$16 sps:$4 sm:$0xff]  }
 0x1b5   :  { %v5495_v19 = vadd.f32 %v905_v4, %v6801_v21  ;;  %2185 = vmatpush1.bf16.msra.mxu0 %v5919_v30  ;;  %2311 = vmatpush1.bf16.msra.mxu1 %v5922_v38  ;;  %v6968_v21 = vsel %vm140_vm0, %v1090_v55, %v7614_v22  ;;  %v5933_v30 = vld [vmem:[#allocation7 + $0x684] ss:$16 sps:$4 sm:$0xff]   ;;  %v5936_v38 = vld [vmem:[#allocation7 + $0x68c] ss:$16 sps:$4 sm:$0xff]   ;;  %v6981_v31 = vmax.f32 %v5493_v5, 0.0  ;;  %v1029_v40 = vpop.f32.mrb[10].mxu1  ;;  %v5068_v4 = vpack.c.bf16 %v6919_v59, %v1037_v53 }
 0x1b6   :  { %v1054_v0 = vmax.f32 %v5494_v9, 0.0  ;;  %v1101_v9 = vrot.slane %v6938_v12, 7  ;;  %2186 = vmatprep.subr.bf16.mxu0 %v5927_v1  ;;  %2312 = vmatprep.subr.bf16.mxu1 %v5930_v10  ;;  %v5500_v10 = vadd.f32 %v6892_v27, %v6821_v35  ;;  %v1031_v48 = vpop.f32.mrb[11].mxu1  ;;  %v5939_v27 = vld [vmem:[#allocation7 + $0x6a4] ss:$16 sps:$4 sm:$0xff]  }
 0x1b7   :  { %v1055_v8 = vmax.f32 %v5495_v19, 0.0  ;;  %v1105_v22 = vrot.slane %v6981_v31, 7  ;;  %v5942_v53 = vld [vmem:[#allocation7 + $0x6ac] ss:$16 sps:$4 sm:$0xff]  }
 0x1b8   :  { %v6985_v24 = vsel %vm124_vm5, %v1054_v0, 0.0  ;;  %v5065_v16 = vpack.c.bf16 %v1054_v0, %v6949_v26  ;;  %v1044_v7 = vmax.f32 %v5500_v10, 0.0  ;;  %v1045_v10 = vmax.f32 %v5501_v11, 0.0  ;;  %v5945_v11 = vld [vmem:[#allocation7 + $0x6c4] ss:$16 sps:$4 sm:$0xff]  }
 0x1b9   :  { %v7615_v5 = vrot.slane %v6985_v24, 7  ;;  %v5062_v19 = vpack.c.bf16 %v1055_v8, %v6981_v31  ;;  %2187 = vmatpush1.bf16.msra.mxu0 %v5925_v13  ;;  %2313 = vmatpush1.bf16.msra.mxu1 %v5928_v57  ;;  %v1117_v33 = vsel %vm140_vm0, %v1101_v9, %v1105_v22  ;;  %v6047_v0 = vld [vmem:[#allocation7 + $0xe4] ss:$16 sps:$4 sm:$0xff]  }
 0x1ba   :  { %2188 = vmatprep.subr.bf16.mxu0 %v5933_v30  ;;  %2314 = vmatprep.subr.bf16.mxu1 %v5936_v38  ;;  %v5937_v30 = vld [vmem:[#allocation7 + $0x6a0] ss:$16 sps:$4 sm:$0xff]   ;;  %v7045_v2 = vsel %vm124_vm5, %v1044_v7, 0.0 }
 0x1bb   :  { %v1132_v13 = vsel %vm140_vm0, %v7615_v5, %v1088_v36  ;;  %5063 = vmatprep.mubr.msk.bf16.mxu0 %vm7000_vm7, %v5062_v19  ;;  %5099 = vmatprep.mubr.msk.bf16.mxu1 %vm7000_vm7, %v5062_v19  ;;  %v5502_v36 = vadd.f32 %v6921_v61, %v6821_v35  ;;  %v5504_v19 = vadd.f32 %v1025_v18, %v6821_v35  ;;  %v5940_v61 = vld [vmem:[#allocation7 + $0x6a8] ss:$16 sps:$4 sm:$0xff]   ;;  %v7616_v1 = vrot.slane %v7045_v2, 1 }
 0x1bc   :  { %v7022_v57 = vpack.c.bf16 %v6848_v54, %v1132_v13  ;;  %v7035_v54 = vsel %vm124_vm5, %v1055_v8, 0.0  ;;  %5066 = vmatmul.mubr.msk.bf16.gmra.mrb[20].mxu0 %vm7000_vm7, %v5065_v16  ;;  %5102 = vmatmul.mubr.msk.bf16.gmra.mrb[20].mxu1 %vm7000_vm7, %v5065_v16  ;;  %v5505_v8 = vadd.f32 %v1027_v58, %v6840_v51  ;;  %v7051_v16 = vsel %vm124_vm5, %v1045_v10, 0.0 }
 0x1bd   :  { %v1048_v38 = vmax.f32 %v5502_v36, 0.0  ;;  %2189 = vmatpush1.bf16.msra.mxu0 %v5931_v15  ;;  %2315 = vmatpush1.bf16.msra.mxu1 %v5934_v28  ;;  %v1049_v18 = vmax.f32 %v5503_v46, 0.0  ;;  %v5506_v13 = vadd.f32 %v1029_v40, %v6821_v35  ;;  %v1109_v5 = vrot.slane %v7035_v54, 7  ;;  %v5946_v46 = vld [vmem:[#allocation7 + $0x6c8] ss:$16 sps:$4 sm:$0xff]  }
 0x1be   :  { %2190 = vmatprep.subr.bf16.mxu0 %v5939_v27  ;;  %2316 = vmatprep.subr.bf16.mxu1 %v5942_v53  ;;  %v5507_v58 = vadd.f32 %v1031_v48, %v6840_v51  ;;  %v1186_v35 = vsel %vm156_vm1, %v1154_v23, %v7616_v1  ;;  %v7071_v40 = vmax.f32 %v5504_v19, 0.0  ;;  %v5943_v51 = vld [vmem:[#allocation7 + $0x6c0] ss:$16 sps:$4 sm:$0xff]   ;;  %v5951_v15 = vld [vmem:[#allocation7 + $0x6e4] ss:$16 sps:$4 sm:$0xff]  }
 0x1bf   :  { %v7056_v28 = vpack.c.bf16 %v1048_v38, %v1044_v7  ;;  %5069 = vmatprep.mubr.msk.bf16.mxu0 %vm6832_vm4, %v5068_v4  ;;  %5105 = vmatprep.mubr.msk.bf16.mxu1 %vm6832_vm4, %v5068_v4  ;;  %v7074_v48 = vpack.c.bf16 %v1186_v35, %v6976_v29  ;;  %v7079_v4 = vsel %vm119_vm2, %v1048_v38, 0.0  ;;  %v7081_v36 = vpack.c.bf16 %v1049_v18, %v1045_v10  ;;  %v5954_v1 = vld [vmem:[#allocation7 + $0x6ec] ss:$16 sps:$4 sm:$0xff]   ;;  %v5957_v53 = vld [vmem:[#allocation7 + $0x704] ss:$16 sps:$4 sm:$0xff]  }
 0x1c0   :  { %v7086_v19 = vsel %vm119_vm2, %v1049_v18, 0.0  ;;  %v7088_v29 = vmax.f32 %v5505_v8, 0.0  ;;  %v1056_v35 = vmax.f32 %v5506_v13, 0.0  ;;  %v1057_v38 = vmax.f32 %v5507_v58, 0.0  ;;  %v5960_v10 = vld [vmem:[#allocation7 + $0x70c] ss:$16 sps:$4 sm:$0xff]  }
 0x1c1   :  { %2191 = vmatpush1.bf16.msra.mxu0 %v5937_v30  ;;  %2317 = vmatpush1.bf16.msra.mxu1 %v5940_v61  ;;  %v1129_v30 = vsel %vm140_vm0, %v1089_v14, %v1093_v52  ;;  %v1133_v20 = vsel %vm140_vm0, %v1109_v5, %v1089_v14  ;;  %v1103_v14 = vrot.slane %v7086_v19, 7  ;;  %v5952_v61 = vld [vmem:[#allocation7 + $0x6e8] ss:$16 sps:$4 sm:$0xff]   ;;  %v1124_v52 = vsel %vm140_vm0, %v1092_v42, %v1096_v47  ;;  %v5955_v42 = vld [vmem:[#allocation7 + $0x700] ss:$16 sps:$4 sm:$0xff]  }
 0x1c2   :  { %2192 = vmatprep.subr.bf16.mxu0 %v5945_v11  ;;  %2318 = vmatprep.subr.bf16.mxu1 %v5948_v3  ;;  %v1121_v3 = vsel %vm140_vm0, %v1097_v43, %v1101_v9  ;;  %v7110_v13 = vsel %vm124_vm5, %v1056_v35, 0.0  ;;  %v7113_v8 = vpack.c.bf16 %v1056_v35, %v7071_v40  ;;  %v5949_v11 = vld [vmem:[#allocation7 + $0x6e0] ss:$16 sps:$4 sm:$0xff]   ;;  %v7119_v58 = vsel %vm124_vm5, %v1057_v38, 0.0 }
 0x1c3   :  { %v1110_v18 = vrot.slane %v7110_v13, 7  ;;  %v7122_v23 = vpack.c.bf16 %v1057_v38, %v7088_v29  ;;  %v1107_v27 = vrot.slane %v7088_v29, 7  ;;  %v1111_v35 = vrot.slane %v7119_v58, 7 }
 0x1c4   :  { %v7126_v7 = vpack.c.bf16 %v1129_v30, %v1133_v20  ;;  %v1106_v38 = vrot.slane %v7071_v40, 7  ;;  %v7623_v30 = vrot.slane %v6985_v24, 7  ;;  %v7624_v20 = vrot.slane %v6949_v26, 7 }
 0x1c5   :  { %2193 = vmatpush1.bf16.msra.mxu0 %v5943_v51  ;;  %2319 = vmatpush1.bf16.msra.mxu1 %v5946_v46  ;;  %v1134_v51 = vsel %vm140_vm0, %v1110_v18, %v1090_v55  ;;  %v7138_v46 = vpack.c.bf16 %v1121_v3, %v1125_v34  ;;  %v1163_v9 = vrot.slane %v7086_v19, 1 }
 0x1c6   :  { %2194 = vmatprep.subr.bf16.mxu0 %v5951_v15  ;;  %2320 = vmatprep.subr.bf16.mxu1 %v5954_v1  ;;  %v1120_v1 = vsel %vm140_vm0, %v1096_v47, %v1100_v49  ;;  %v7153_v43 = vpack.c.bf16 %v6968_v21, %v1134_v51  ;;  %v1113_v15 = vsel %vm140_vm0, %v1105_v22, %v1109_v5  ;;  %v5958_v47 = vld [vmem:[#allocation7 + $0x708] ss:$16 sps:$4 sm:$0xff]   ;;  %v7626_v51 = vrot.slane %v6919_v59, 7 }
 0x1c7   :  { %v7155_v55 = vpack.c.bf16 %v1120_v1, %v1124_v52  ;;  %v7168_v21 = vpack.c.bf16 %v1113_v15, %v1117_v33  ;;  %v1112_v5 = vsel %vm140_vm0, %v7624_v20, %v7623_v30  ;;  %v7625_v3 = vmov %v7624_v20 }
 0x1c8   :  { %v1116_v22 = vsel %vm140_vm0, %v1100_v49, %v7625_v3  ;;  %v7627_v1 = vrot.slane %v6960_v6, 7  ;;  %v7631_v30 = vmov %v7626_v51  ;;  %v7633_v3 = vrot.slane %v7045_v2, 7 }
 0x1c9   :  { %2195 = vmatpush1.bf16.msra.mxu0 %v5949_v11  ;;  %2321 = vmatpush1.bf16.msra.mxu1 %v5952_v61  ;;  %v5963_v61 = vld [vmem:[#allocation7 + $0x724] ss:$16 sps:$4 sm:$0xff]   ;;  %v5966_v11 = vld [vmem:[#allocation7 + $0x72c] ss:$16 sps:$4 sm:$0xff]   ;;  %v7183_v34 = vpack.c.bf16 %v1112_v5, %v1116_v22  ;;  %v7632_v5 = vrot.slane %v7079_v4, 7 }
 0x1ca   :  { %2196 = vmatprep.subr.bf16.mxu0 %v5957_v53  ;;  %2322 = vmatprep.subr.bf16.mxu1 %v5960_v10  ;;  %v1131_v52 = vsel %vm140_vm0, %v7627_v1, %v7626_v51  ;;  %v7628_v15 = vmov %v7627_v1  ;;  %v7629_v53 = vrot.slane %v7051_v16, 7  ;;  %v7634_v1 = vmov %v7633_v3 }
 0x1cb   :  { %v1135_v49 = vsel %vm140_vm0, %v1111_v35, %v7628_v15  ;;  %v1122_v22 = vsel %vm140_vm0, %v7633_v3, %v7632_v5  ;;  %v1167_v3 = vrot.slane %v7088_v29, 1  ;;  %v7640_v29 = vrot.slane %v6860_v63, 1 }
 0x1cc   :  { %v7195_v33 = vpack.c.bf16 %v1131_v52, %v1135_v49  ;;  %v1123_v19 = vsel %vm140_vm0, %v7629_v53, %v1103_v14  ;;  %v7630_v10 = vmov %v7629_v53  ;;  %v7635_v52 = vrot.slane %v6901_v45, 7 }
 0x1cd   :  { %v1127_v20 = vsel %vm140_vm0, %v7631_v30, %v7630_v10  ;;  %v1115_v49 = vsel %vm140_vm0, %v1107_v27, %v1111_v35  ;;  %v1119_v53 = vsel %vm140_vm0, %v1103_v14, %v1107_v27  ;;  %v1166_v10 = vrot.slane %v7071_v40, 1  ;;  %2197 = vmatpush1.bf16.msra.mxu0 %v5955_v42  ;;  %2323 = vmatpush1.bf16.msra.mxu1 %v5958_v47  ;;  %v5961_v30 = vld [vmem:[#allocation7 + $0x720] ss:$16 sps:$4 sm:$0xff]   ;;  %v5969_v35 = vld [vmem:[#allocation7 + $0x744] ss:$16 sps:$4 sm:$0xff]  }
 0x1ce   :  { %v7213_v51 = vpack.c.bf16 %v1123_v19, %v1127_v20  ;;  %v1126_v15 = vsel %vm140_vm0, %v7635_v52, %v7634_v1  ;;  %v5964_v19 = vld [vmem:[#allocation7 + $0x728] ss:$16 sps:$4 sm:$0xff]   ;;  %v7228_v5 = vpack.c.bf16 %v1115_v49, %v1119_v53  ;;  %v1114_v45 = vsel %vm140_vm0, %v1106_v38, %v1110_v18  ;;  %2198 = vmatprep.subr.bf16.mxu0 %v5963_v61  ;;  %v5972_v1 = vld [vmem:[#allocation7 + $0x74c] ss:$16 sps:$4 sm:$0xff]  }
 0x1cf   :  { %v7226_v20 = vpack.c.bf16 %v1122_v22, %v1126_v15  ;;  %2324 = vmatprep.subr.bf16.mxu1 %v5966_v11  ;;  %v7636_v27 = vrot.slane %v7079_v4, 7  ;;  %v7637_v14 = vrot.slane %v6890_v25, 1  ;;  %v7638_v42 = vrot.slane %v6825_v39, 1 }
 0x1d0   :  { %v7642_v52 = vrot.slane %v6938_v12, 1  ;;  %v7649_v25 = vrot.slane %v7035_v54, 1 }
 0x1d1   :  { %v1118_v40 = vsel %vm140_vm0, %v7636_v27, %v1106_v38  ;;  %v1185_v47 = vsel %vm156_vm1, %v7638_v42, %v7637_v14  ;;  %v7639_v18 = vmov %v7638_v42  ;;  %v7641_v38 = vrot.slane %v6981_v31, 1  ;;  %2199 = vmatpush1.bf16.msra.mxu0 %v5961_v30  ;;  %2325 = vmatpush1.bf16.msra.mxu1 %v5964_v19  ;;  %v5975_v19 = vld [vmem:[#allocation7 + $0x764] ss:$16 sps:$4 sm:$0xff]  }
 0x1d2   :  { %v1189_v61 = vsel %vm156_vm1, %v7640_v29, %v7639_v18  ;;  %v7249_v11 = vpack.c.bf16 %v1114_v45, %v1118_v40  ;;  %v7643_v49 = vmov %v7642_v52  ;;  %v7644_v39 = vmov %v7637_v14  ;;  %2200 = vmatprep.subr.bf16.mxu0 %v5969_v35  ;;  %2326 = vmatprep.subr.bf16.mxu1 %v5972_v1 }
 0x1d3   :  { %v7251_v22 = vpack.c.bf16 %v1185_v47, %v1189_v61  ;;  %v1177_v15 = vsel %vm156_vm1, %v7642_v52, %v7641_v38  ;;  %v1181_v53 = vsel %vm156_vm1, %v7644_v39, %v7643_v49  ;;  %v7645_v45 = vrot.slane %v6949_v26, 1  ;;  %v5970_v52 = vld [vmem:[#allocation7 + $0x748] ss:$16 sps:$4 sm:$0xff]  }
 0x1d4   :  { %v7265_v27 = vpack.c.bf16 %v1177_v15, %v1181_v53  ;;  %v7646_v40 = vrot.slane %v6928_v56, 1  ;;  %v7648_v47 = vrot.slane %v6884_v17, 1  ;;  %v7650_v18 = vmov %v7641_v38  ;;  %v5967_v38 = vld [vmem:[#allocation7 + $0x740] ss:$16 sps:$4 sm:$0xff]   ;;  %v5978_v53 = vld [vmem:[#allocation7 + $0x76c] ss:$16 sps:$4 sm:$0xff]  }
 0x1d5   :  { %v1173_v29 = vsel %vm156_vm1, %v7650_v18, %v7649_v25  ;;  %v1171_v61 = vrot.slane %v7119_v58, 1  ;;  %v7651_v17 = vrot.slane %v6860_v63, 1  ;;  %v7652_v56 = vmov %v7649_v25  ;;  %2201 = vmatpush1.bf16.msra.mxu0 %v5967_v38  ;;  %2327 = vmatpush1.bf16.msra.mxu1 %v5970_v52 }
 0x1d6   :  { %v1176_v14 = vsel %vm156_vm1, %v7646_v40, %v7645_v45  ;;  %v7647_v42 = vmov %v7646_v40  ;;  %v7653_v31 = vrot.slane %v6985_v24, 1  ;;  %v7654_v39 = vmov %v7645_v45  ;;  %2202 = vmatprep.subr.bf16.mxu0 %v5975_v19  ;;  %2328 = vmatprep.subr.bf16.mxu1 %v5978_v53  ;;  %v5987_v19 = vld [vmem:[#allocation7 + $0x7a4] ss:$16 sps:$4 sm:$0xff]   ;;  %v5990_v53 = vld [vmem:[#allocation7 + $0x7ac] ss:$16 sps:$4 sm:$0xff]  }
 0x1d7   :  { %v1180_v12 = vsel %vm156_vm1, %v7648_v47, %v7647_v42  ;;  %v1193_v49 = vsel %vm156_vm1, %v7652_v56, %v7651_v17  ;;  %v1170_v30 = vrot.slane %v7110_v13, 1  ;;  %v7655_v63 = vrot.slane %v6813_v32, 1 }
 0x1d8   :  { %v7286_v15 = vpack.c.bf16 %v1176_v14, %v1180_v12  ;;  %v1172_v58 = vsel %vm156_vm1, %v7654_v39, %v7653_v31  ;;  %v7301_v45 = vpack.c.bf16 %v1193_v49, %v1173_v29  ;;  %v7656_v54 = vmov %v7653_v31 }
 0x1d9   :  { %v1192_v40 = vsel %vm156_vm1, %v7656_v54, %v7655_v63  ;;  %v7657_v26 = vrot.slane %v7051_v16, 1  ;;  %v7658_v14 = vrot.slane %v6919_v59, 1  ;;  %v7660_v42 = vrot.slane %v6960_v6, 1  ;;  %v5973_v16 = vld [vmem:[#allocation7 + $0x760] ss:$16 sps:$4 sm:$0xff]  }
 0x1da   :  { %v7315_v35 = vpack.c.bf16 %v1192_v40, %v1172_v58  ;;  %v1179_v24 = vsel %vm156_vm1, %v1163_v9, %v1167_v3  ;;  %v7662_v29 = vrot.slane %v7079_v4, 1  ;;  %v7664_v56 = vrot.slane %v7045_v2, 1  ;;  %v5981_v2 = vld [vmem:[#allocation7 + $0x784] ss:$16 sps:$4 sm:$0xff]   ;;  %v5984_v4 = vld [vmem:[#allocation7 + $0x78c] ss:$16 sps:$4 sm:$0xff]   ;;  %2203 = vmatpush1.bf16.msra.mxu0 %v5973_v16 }
 0x1db   :  { %v1187_v13 = vsel %vm156_vm1, %v7658_v14, %v7657_v26  ;;  %v7659_v1 = vmov %v7658_v14  ;;  %v7661_v47 = vmov %v7657_v26  ;;  %v1175_v39 = vsel %vm156_vm1, %v1167_v3, %v1171_v61  ;;  %v5979_v6 = vld [vmem:[#allocation7 + $0x780] ss:$16 sps:$4 sm:$0xff]   ;;  %2204 = vmatprep.subr.bf16.mxu0 %v5981_v2  ;;  %v5988_v14 = vld [vmem:[#allocation7 + $0x7a8] ss:$16 sps:$4 sm:$0xff]  }
 0x1dc   :  { %v1191_v32 = vsel %vm156_vm1, %v7660_v42, %v7659_v1  ;;  %v1183_v12 = vsel %vm156_vm1, %v7661_v47, %v1163_v9  ;;  %v1178_v59 = vsel %vm156_vm1, %v7662_v29, %v1166_v10  ;;  %v7663_v17 = vmov %v7662_v29  ;;  %v5976_v9 = vld [vmem:[#allocation7 + $0x768] ss:$16 sps:$4 sm:$0xff]   ;;  %v5985_v26 = vld [vmem:[#allocation7 + $0x7a0] ss:$16 sps:$4 sm:$0xff]   ;;  %v5999_v1 = vld [vmem:[#allocation7 + $0x7e4] ss:$16 sps:$4 sm:$0xff]  }
 0x1dd   :  { %v7329_v25 = vpack.c.bf16 %v1187_v13, %v1191_v32  ;;  %v7331_v18 = vpack.c.bf16 %v1179_v24, %v1183_v12  ;;  %v1182_v49 = vsel %vm156_vm1, %v7664_v56, %v7663_v17  ;;  %v7665_v58 = vmov %v7660_v42  ;;  %2329 = vmatpush1.bf16.msra.mxu1 %v5976_v9  ;;  %v5994_v13 = vld [vmem:[#allocation7 + $0x7c8] ss:$16 sps:$4 sm:$0xff]   ;;  %v6002_v42 = vld [vmem:[#allocation7 + $0x7ec] ss:$16 sps:$4 sm:$0xff]   ;;  %v5997_v32 = vld [vmem:[#allocation7 + $0x7e0] ss:$16 sps:$4 sm:$0xff]  }
 0x1de   :  { %v7343_v31 = vpack.c.bf16 %v1178_v59, %v1182_v49  ;;  %v1195_v63 = vsel %vm156_vm1, %v1171_v61, %v7665_v58  ;;  %v1174_v38 = vsel %vm156_vm1, %v1166_v10, %v1170_v30  ;;  %v7666_v52 = vrot.slane %v6899_v41, 1  ;;  %v5982_v61 = vld [vmem:[#allocation7 + $0x788] ss:$16 sps:$4 sm:$0xff]   ;;  %2330 = vmatprep.subr.bf16.mxu1 %v5984_v4  ;;  %2205 = vmatpush1.bf16.msra.mxu0 %v5979_v6  ;;  %v5993_v41 = vld [vmem:[#allocation7 + $0x7c4] ss:$16 sps:$4 sm:$0xff]  }
 0x1df   :  { %v7351_v54 = vpack.c.bf16 %v1195_v63, %v1175_v39  ;;  %2206 = vmatprep.subr.bf16.mxu0 %v5987_v19  ;;  %v5996_v10 = vld [vmem:[#allocation7 + $0x7cc] ss:$16 sps:$4 sm:$0xff]   ;;  %v6000_v24 = vld [vmem:[#allocation7 + $0x7e8] ss:$16 sps:$4 sm:$0xff]   ;;  %v6005_v47 = vld [vmem:[#allocation7 + $0x4] ss:$16 sps:$4 sm:$0xff]  }
 0x1e0   :  { %v1194_v40 = vsel %vm156_vm1, %v1170_v30, %v7666_v52  ;;  %v5991_v30 = vld [vmem:[#allocation7 + $0x7c0] ss:$16 sps:$4 sm:$0xff]   ;;  %v6008_v12 = vld [vmem:[#allocation7 + $0xc] ss:$16 sps:$4 sm:$0xff]   ;;  %v6006_v59 = vld [vmem:[#allocation7 + $0x8] ss:$16 sps:$4 sm:$0xff]  }
 0x1e1   :  { %v7359_v3 = vpack.c.bf16 %v1194_v40, %v1174_v38  ;;  %2331 = vmatpush1.bf16.msra.mxu1 %v5982_v61  ;;  %v6003_v29 = vld [vmem:[#allocation7] ss:$16 sps:$4 sm:$0xff]   ;;  %v6011_v17 = vld [vmem:[#allocation7 + $0x24] ss:$16 sps:$4 sm:$0xff]   ;;  %v6014_v56 = vld [vmem:[#allocation7 + $0x2c] ss:$16 sps:$4 sm:$0xff]  }
 0x1e2   :  { %2332 = vmatprep.subr.bf16.mxu1 %v5990_v53  ;;  %2207 = vmatpush1.bf16.msra.mxu0 %v5985_v26  ;;  %v6009_v49 = vld [vmem:[#allocation7 + $0x20] ss:$16 sps:$4 sm:$0xff]   ;;  %v6012_v16 = vld [vmem:[#allocation7 + $0x28] ss:$16 sps:$4 sm:$0xff]   ;;  %v6017_v9 = vld [vmem:[#allocation7 + $0x44] ss:$16 sps:$4 sm:$0xff]  }
 0x1e3   :  { %2208 = vmatprep.subr.bf16.mxu0 %v5993_v41  ;;  %v6020_v39 = vld [vmem:[#allocation7 + $0x4c] ss:$16 sps:$4 sm:$0xff]   ;;  %v6023_v58 = vld [vmem:[#allocation7 + $0x64] ss:$16 sps:$4 sm:$0xff]   ;;  %v6024_v2 = vld [vmem:[#allocation7 + $0x68] ss:$16 sps:$4 sm:$0xff]  }
 0x1e4   :  { %v6026_v63 = vld [vmem:[#allocation7 + $0x6c] ss:$16 sps:$4 sm:$0xff]   ;;  %v6029_v4 = vld [vmem:[#allocation7 + $0x84] ss:$16 sps:$4 sm:$0xff]   ;;  %v6036_v6 = vld [vmem:[#allocation7 + $0xa8] ss:$16 sps:$4 sm:$0xff]  }
 0x1e5   :  { %2333 = vmatpush1.bf16.msra.mxu1 %v5988_v14  ;;  %v6032_v38 = vld [vmem:[#allocation7 + $0x8c] ss:$16 sps:$4 sm:$0xff]   ;;  %v6035_v52 = vld [vmem:[#allocation7 + $0xa4] ss:$16 sps:$4 sm:$0xff]   ;;  %v6039_v53 = vld [vmem:[#allocation7 + $0xc0] ss:$16 sps:$4 sm:$0xff]  }
 0x1e6   :  { %2334 = vmatprep.subr.bf16.mxu1 %v5996_v10  ;;  %2209 = vmatpush1.bf16.msra.mxu0 %v5991_v30  ;;  %v6038_v40 = vld [vmem:[#allocation7 + $0xac] ss:$16 sps:$4 sm:$0xff]   ;;  %v6041_v61 = vld [vmem:[#allocation7 + $0xc4] ss:$16 sps:$4 sm:$0xff]   ;;  %v6042_v26 = vld [vmem:[#allocation7 + $0xc8] ss:$16 sps:$4 sm:$0xff]  }
 0x1e7   :  { %2210 = vmatprep.subr.bf16.mxu0 %v5999_v1  ;;  %v6044_v19 = vld [vmem:[#allocation7 + $0xcc] ss:$16 sps:$4 sm:$0xff]   ;;  %v6045_v14 = vld [vmem:[#allocation7 + $0xe0] ss:$16 sps:$4 sm:$0xff]   ;;  %v6053_v41 = vld [vmem:[#allocation7 + $0x104] ss:$16 sps:$4 sm:$0xff]  }
 0x1e8   :  { %v6056_v10 = vld [vmem:[#allocation7 + $0x10c] ss:$16 sps:$4 sm:$0xff]   ;;  %v6051_v30 = vld [vmem:[#allocation7 + $0x100] ss:$16 sps:$4 sm:$0xff]   ;;  %v6059_v1 = vld [vmem:[#allocation7 + $0x124] ss:$16 sps:$4 sm:$0xff]  }
 0x1e9   :  { %2335 = vmatpush1.bf16.msra.mxu1 %v5994_v13  ;;  %v6054_v13 = vld [vmem:[#allocation7 + $0x108] ss:$16 sps:$4 sm:$0xff]  }
 0x1ea   :  { %2336 = vmatprep.subr.bf16.mxu1 %v6002_v42  ;;  %2211 = vmatpush1.bf16.msra.mxu0 %v5997_v32  ;;  %v6062_v42 = vld [vmem:[#allocation7 + $0x12c] ss:$16 sps:$4 sm:$0xff]   ;;  %v6057_v32 = vld [vmem:[#allocation7 + $0x120] ss:$16 sps:$4 sm:$0xff]  }
 0x1eb   :  { %3009 = vmatprep.subr.bf16.mxu0 %v6005_v47  ;;  %v6065_v47 = vld [vmem:[#allocation7 + $0x144] ss:$16 sps:$4 sm:$0xff]  }
 0x1ed   :  { %2337 = vmatpush1.bf16.msra.mxu1 %v6000_v24  ;;  %5072 = vmatmul.mubr.msk.bf16.vlgmr.msra.gmra.mrb[12].mxu0 %vm6832_vm4, %v6991_v37  ;;  %v6060_v24 = vld [vmem:[#allocation7 + $0x128] ss:$16 sps:$4 sm:$0xff]  }
 0x1ee   :  { %3135 = vmatprep.subr.bf16.mxu1 %v6008_v12  ;;  %5075 = vmatprep.mubr.msk.bf16.mxu0 %vm6914_vm6, %v7081_v36  ;;  %v6068_v12 = vld [vmem:[#allocation7 + $0x14c] ss:$16 sps:$4 sm:$0xff]  }
 0x1ef   :  { %3010 = vmatpush1.bf16.msra.mxu0 %v6003_v29  ;;  %v6063_v29 = vld [vmem:[#allocation7 + $0x140] ss:$16 sps:$4 sm:$0xff]  }
 0x1f0   :  { %5108 = vmatmul.mubr.msk.bf16.vlgmr.msra.gmra.mrb[12].mxu1 %vm6832_vm4, %v6991_v37  ;;  %3011 = vmatprep.subr.bf16.mxu0 %v6011_v17  ;;  %v6018_v37 = vld [vmem:[#allocation7 + $0x48] ss:$16 sps:$4 sm:$0xff]   ;;  %v6071_v17 = vld [vmem:[#allocation7 + $0x164] ss:$16 sps:$4 sm:$0xff]  }
 0x1f1   :  { %5111 = vmatprep.mubr.msk.bf16.mxu1 %vm6914_vm6, %v7081_v36  ;;  %3136 = vmatpush1.bf16.msra.mxu1 %v6006_v59  ;;  %v6021_v36 = vld [vmem:[#allocation7 + $0x60] ss:$16 sps:$4 sm:$0xff]   ;;  %v6066_v59 = vld [vmem:[#allocation7 + $0x148] ss:$16 sps:$4 sm:$0xff]  }
 0x1f2   :  { %3137 = vmatprep.subr.bf16.mxu1 %v6014_v56  ;;  %v6074_v56 = vld [vmem:[#allocation7 + $0x16c] ss:$16 sps:$4 sm:$0xff]  }
 0x1f3   :  { %3012 = vmatpush1.bf16.msra.mxu0 %v6009_v49  ;;  %v6069_v49 = vld [vmem:[#allocation7 + $0x160] ss:$16 sps:$4 sm:$0xff]  }
 0x1f4   :  { %3013 = vmatprep.subr.bf16.mxu0 %v6017_v9  ;;  %v6077_v9 = vld [vmem:[#allocation7 + $0x184] ss:$16 sps:$4 sm:$0xff]  }
 0x1f5   :  { %3138 = vmatpush1.bf16.msra.mxu1 %v6012_v16  ;;  %5078 = vmatmul.mubr.msk.bf16.gmra.mrb[16].mxu0 %vm6914_vm6, %v7056_v28  ;;  %v6072_v16 = vld [vmem:[#allocation7 + $0x168] ss:$16 sps:$4 sm:$0xff]  }
 0x1f6   :  { %3139 = vmatprep.subr.bf16.mxu1 %v6020_v39  ;;  %5081 = vmatprep.mubr.msk.bf16.mxu0 %vm7000_vm7, %v7122_v23  ;;  %v6080_v39 = vld [vmem:[#allocation7 + $0x18c] ss:$16 sps:$4 sm:$0xff]  }
 0x1f7   :  { %3014 = vmatpush1.bf16.msra.mxu0 %v6015_v44  ;;  %v6075_v44 = vld [vmem:[#allocation7 + $0x180] ss:$16 sps:$4 sm:$0xff]  }
 0x1f8   :  { %5114 = vmatmul.mubr.msk.bf16.gmra.mrb[16].mxu1 %vm6914_vm6, %v7056_v28  ;;  %3015 = vmatprep.subr.bf16.mxu0 %v6023_v58  ;;  %v6030_v28 = vld [vmem:[#allocation7 + $0x88] ss:$16 sps:$4 sm:$0xff]   ;;  %v6083_v58 = vld [vmem:[#allocation7 + $0x1a4] ss:$16 sps:$4 sm:$0xff]  }
 0x1f9   :  { %5117 = vmatprep.mubr.msk.bf16.mxu1 %vm7000_vm7, %v7122_v23  ;;  %3140 = vmatpush1.bf16.msra.mxu1 %v6018_v37  ;;  %v6033_v23 = vld [vmem:[#allocation7 + $0xa0] ss:$16 sps:$4 sm:$0xff]   ;;  %v6078_v37 = vld [vmem:[#allocation7 + $0x188] ss:$16 sps:$4 sm:$0xff]  }
 0x1fa   :  { %3141 = vmatprep.subr.bf16.mxu1 %v6026_v63  ;;  %v6086_v63 = vld [vmem:[#allocation7 + $0x1ac] ss:$16 sps:$4 sm:$0xff]  }
 0x1fb   :  { %3016 = vmatpush1.bf16.msra.mxu0 %v6021_v36  ;;  %v6081_v36 = vld [vmem:[#allocation7 + $0x1a0] ss:$16 sps:$4 sm:$0xff]  }
 0x1fc   :  { %3017 = vmatprep.subr.bf16.mxu0 %v6029_v4  ;;  %v6089_v4 = vld [vmem:[#allocation7 + $0x1c4] ss:$16 sps:$4 sm:$0xff]  }
 0x1fd   :  { %3142 = vmatpush1.bf16.msra.mxu1 %v6024_v2  ;;  %5084 = vmatmul.mubr.msk.bf16.gmra.mrb[20].mxu0 %vm7000_vm7, %v7113_v8  ;;  %v6084_v2 = vld [vmem:[#allocation7 + $0x1a8] ss:$16 sps:$4 sm:$0xff]  }
 0x1fe   :  { %3143 = vmatprep.subr.bf16.mxu1 %v6032_v38  ;;  %3041 = vmatprep.mubr.bf16.mxu0 %v7126_v7  ;;  %v6092_v38 = vld [vmem:[#allocation7 + $0x1cc] ss:$16 sps:$4 sm:$0xff]  }
 0x1ff   :  { %3018 = vmatpush1.bf16.msra.mxu0 %v6027_v50  ;;  %v6087_v50 = vld [vmem:[#allocation7 + $0x1c0] ss:$16 sps:$4 sm:$0xff]  }
 0x200   :  { %5120 = vmatmul.mubr.msk.bf16.gmra.mrb[20].mxu1 %vm7000_vm7, %v7113_v8  ;;  %3019 = vmatprep.subr.bf16.mxu0 %v6035_v52  ;;  %v6050_v8 = vld [vmem:[#allocation7 + $0xec] ss:$16 sps:$4 sm:$0xff]   ;;  %v6095_v52 = vld [vmem:[#allocation7 + $0x1e4] ss:$16 sps:$4 sm:$0xff]  }
 0x201   :  { %3167 = vmatprep.mubr.bf16.mxu1 %v7126_v7  ;;  %3144 = vmatpush1.bf16.msra.mxu1 %v6030_v28  ;;  %v6048_v7 = vld [vmem:[#allocation7 + $0xe8] ss:$16 sps:$4 sm:$0xff]  }
 0x202   :  { %3145 = vmatprep.subr.bf16.mxu1 %v6038_v40  ;;  %v6090_v28 = vld [vmem:[#allocation7 + $0x1c8] ss:$16 sps:$4 sm:$0xff]   ;;  %v6098_v40 = vld [vmem:[#allocation7 + $0x1ec] ss:$16 sps:$4 sm:$0xff]  }
 0x203   :  { %3020 = vmatpush1.bf16.msra.mxu0 %v6033_v23  ;;  %v6093_v23 = vld [vmem:[#allocation7 + $0x1e0] ss:$16 sps:$4 sm:$0xff]  }
 0x204   :  { %3021 = vmatprep.subr.bf16.mxu0 %v6041_v61  ;;  %v6101_v61 = vld [vmem:[#allocation7 + $0x204] ss:$16 sps:$4 sm:$0xff]  }
 0x205   :  { %3146 = vmatpush1.bf16.msra.mxu1 %v6036_v6  ;;  %v6096_v6 = vld [vmem:[#allocation7 + $0x1e8] ss:$16 sps:$4 sm:$0xff]  }
 0x206   :  { %3147 = vmatprep.subr.bf16.mxu1 %v6044_v19  ;;  %v6104_v19 = vld [vmem:[#allocation7 + $0x20c] ss:$16 sps:$4 sm:$0xff]  }
 0x207   :  { %3022 = vmatpush1.bf16.msra.mxu0 %v6039_v53  ;;  %v6099_v53 = vld [vmem:[#allocation7 + $0x200] ss:$16 sps:$4 sm:$0xff]  }
 0x208   :  { %3023 = vmatprep.subr.bf16.mxu0 %v6047_v0  ;;  %v6107_v0 = vld [vmem:[#allocation7 + $0x224] ss:$16 sps:$4 sm:$0xff]  }
 0x209   :  { %3148 = vmatpush1.bf16.msra.mxu1 %v6042_v26  ;;  %v6102_v26 = vld [vmem:[#allocation7 + $0x208] ss:$16 sps:$4 sm:$0xff]  }
 0x20a   :  { %3149 = vmatprep.subr.bf16.mxu1 %v6050_v8  ;;  %v6110_v8 = vld [vmem:[#allocation7 + $0x22c] ss:$16 sps:$4 sm:$0xff]  }
 0x20b   :  { %3024 = vmatpush1.bf16.msra.mxu0 %v6045_v14  ;;  %v6105_v14 = vld [vmem:[#allocation7 + $0x220] ss:$16 sps:$4 sm:$0xff]  }
 0x20c   :  { %3025 = vmatprep.subr.bf16.mxu0 %v6053_v41  ;;  %v6113_v41 = vld [vmem:[#allocation7 + $0x244] ss:$16 sps:$4 sm:$0xff]  }
 0x20d   :  { %3150 = vmatpush1.bf16.msra.mxu1 %v6048_v7  ;;  %v6108_v7 = vld [vmem:[#allocation7 + $0x228] ss:$16 sps:$4 sm:$0xff]  }
 0x20e   :  { %3151 = vmatprep.subr.bf16.mxu1 %v6056_v10  ;;  %v6116_v10 = vld [vmem:[#allocation7 + $0x24c] ss:$16 sps:$4 sm:$0xff]  }
 0x20f   :  { %3026 = vmatpush1.bf16.msra.mxu0 %v6051_v30  ;;  %v6111_v30 = vld [vmem:[#allocation7 + $0x240] ss:$16 sps:$4 sm:$0xff]  }
 0x210   :  { %3027 = vmatprep.subr.bf16.mxu0 %v6059_v1  ;;  %v6119_v1 = vld [vmem:[#allocation7 + $0x264] ss:$16 sps:$4 sm:$0xff]  }
 0x211   :  { %3152 = vmatpush1.bf16.msra.mxu1 %v6054_v13  ;;  %v6114_v13 = vld [vmem:[#allocation7 + $0x248] ss:$16 sps:$4 sm:$0xff]  }
 0x212   :  { %3153 = vmatprep.subr.bf16.mxu1 %v6062_v42  ;;  %v6120_v42 = vld [vmem:[#allocation7 + $0x268] ss:$16 sps:$4 sm:$0xff]  }
 0x213   :  { %3028 = vmatpush1.bf16.msra.mxu0 %v6057_v32  ;;  %v6125_v32 = vld [vmem:[#allocation7 + $0x284] ss:$16 sps:$4 sm:$0xff]  }
 0x214   :  { %3029 = vmatprep.subr.bf16.mxu0 %v6065_v47  ;;  %v6123_v47 = vld [vmem:[#allocation7 + $0x280] ss:$16 sps:$4 sm:$0xff]  }
 0x215   :  { %3154 = vmatpush1.bf16.msra.mxu1 %v6060_v24  ;;  %v6128_v24 = vld [vmem:[#allocation7 + $0x28c] ss:$16 sps:$4 sm:$0xff]  }
 0x216   :  { %3155 = vmatprep.subr.bf16.mxu1 %v6068_v12  ;;  %v6126_v12 = vld [vmem:[#allocation7 + $0x288] ss:$16 sps:$4 sm:$0xff]  }
 0x217   :  { %3030 = vmatpush1.bf16.msra.mxu0 %v6063_v29  ;;  %v6131_v29 = vld [vmem:[#allocation7 + $0x2a4] ss:$16 sps:$4 sm:$0xff]  }
 0x218   :  { %3031 = vmatprep.subr.bf16.mxu0 %v6071_v17  ;;  %v6137_v17 = vld [vmem:[#allocation7 + $0x2c4] ss:$16 sps:$4 sm:$0xff]  }
 0x219   :  { %3156 = vmatpush1.bf16.msra.mxu1 %v6066_v59  ;;  %v6132_v59 = vld [vmem:[#allocation7 + $0x2a8] ss:$16 sps:$4 sm:$0xff]  }
 0x21a   :  { %3157 = vmatprep.subr.bf16.mxu1 %v6074_v56  ;;  %v6140_v56 = vld [vmem:[#allocation7 + $0x2cc] ss:$16 sps:$4 sm:$0xff]  }
 0x21b   :  { %3032 = vmatpush1.bf16.msra.mxu0 %v6069_v49  ;;  %v6135_v49 = vld [vmem:[#allocation7 + $0x2c0] ss:$16 sps:$4 sm:$0xff]  }
 0x21c   :  { %3033 = vmatprep.subr.bf16.mxu0 %v6077_v9  ;;  %v6143_v9 = vld [vmem:[#allocation7 + $0x2e4] ss:$16 sps:$4 sm:$0xff]  }
 0x21d   :  { %3158 = vmatpush1.bf16.msra.mxu1 %v6072_v16  ;;  %v6138_v16 = vld [vmem:[#allocation7 + $0x2c8] ss:$16 sps:$4 sm:$0xff]  }
 0x21e   :  { %3159 = vmatprep.subr.bf16.mxu1 %v6080_v39  ;;  %v6141_v39 = vld [vmem:[#allocation7 + $0x2e0] ss:$16 sps:$4 sm:$0xff]  }
 0x21f   :  { %3034 = vmatpush1.bf16.msra.mxu0 %v6075_v44  ;;  %v6144_v44 = vld [vmem:[#allocation7 + $0x2e8] ss:$16 sps:$4 sm:$0xff]  }
 0x220   :  { %3035 = vmatprep.subr.bf16.mxu0 %v6083_v58  ;;  %v6147_v58 = vld [vmem:[#allocation7 + $0x300] ss:$16 sps:$4 sm:$0xff]  }
 0x221   :  { %3160 = vmatpush1.bf16.msra.mxu1 %v6078_v37  ;;  %v6149_v37 = vld [vmem:[#allocation7 + $0x304] ss:$16 sps:$4 sm:$0xff]  }
 0x222   :  { %3161 = vmatprep.subr.bf16.mxu1 %v6086_v63  ;;  %v6150_v63 = vld [vmem:[#allocation7 + $0x308] ss:$16 sps:$4 sm:$0xff]  }
 0x223   :  { %3036 = vmatpush1.bf16.msra.mxu0 %v6081_v36  ;;  %v6155_v36 = vld [vmem:[#allocation7 + $0x324] ss:$16 sps:$4 sm:$0xff]  }
 0x224   :  { %3037 = vmatprep.subr.bf16.mxu0 %v6089_v4  ;;  %v6153_v4 = vld [vmem:[#allocation7 + $0x320] ss:$16 sps:$4 sm:$0xff]  }
 0x225   :  { %3162 = vmatpush1.bf16.msra.mxu1 %v6084_v2  ;;  %v6158_v2 = vld [vmem:[#allocation7 + $0x32c] ss:$16 sps:$4 sm:$0xff]  }
 0x226   :  { %3163 = vmatprep.subr.bf16.mxu1 %v6092_v38  ;;  %v6156_v38 = vld [vmem:[#allocation7 + $0x328] ss:$16 sps:$4 sm:$0xff]  }
 0x227   :  { %3038 = vmatpush1.bf16.msra.mxu0 %v6087_v50  ;;  %v6161_v50 = vld [vmem:[#allocation7 + $0x344] ss:$16 sps:$4 sm:$0xff]  }
 0x228   :  { %3039 = vmatprep.subr.bf16.mxu0 %v6095_v52  ;;  %v6159_v52 = vld [vmem:[#allocation7 + $0x340] ss:$16 sps:$4 sm:$0xff]  }
 0x229   :  { %3164 = vmatpush1.bf16.msra.mxu1 %v6090_v28  ;;  %v6164_v28 = vld [vmem:[#allocation7 + $0x34c] ss:$16 sps:$4 sm:$0xff]  }
 0x22a   :  { %3165 = vmatprep.subr.bf16.mxu1 %v6098_v40  ;;  %v6162_v40 = vld [vmem:[#allocation7 + $0x348] ss:$16 sps:$4 sm:$0xff]  }
 0x22b   :  { %3040 = vmatpush1.bf16.msra.mxu0 %v6093_v23  ;;  %v6167_v23 = vld [vmem:[#allocation7 + $0x364] ss:$16 sps:$4 sm:$0xff]  }
 0x22c   :  { %3072 = vmatprep.subr.bf16.mxu0 %v6101_v61  ;;  %v6165_v61 = vld [vmem:[#allocation7 + $0x360] ss:$16 sps:$4 sm:$0xff]  }
 0x22d   :  { %3166 = vmatpush1.bf16.msra.mxu1 %v6096_v6  ;;  %v6170_v6 = vld [vmem:[#allocation7 + $0x36c] ss:$16 sps:$4 sm:$0xff]  }
 0x22e   :  { %3198 = vmatprep.subr.bf16.mxu1 %v6104_v19  ;;  %3042 = vmatmul.mubr.bf16.vlgmr.msra.gmra.mrb[12].mxu0 %v7022_v57  ;;  %v6168_v19 = vld [vmem:[#allocation7 + $0x368] ss:$16 sps:$4 sm:$0xff]  }
 0x22f   :  { %3051 = vmatprep.mubr.bf16.mxu0 %v7138_v46  ;;  %3073 = vmatpush1.bf16.msra.mxu0 %v6099_v53  ;;  %v6173_v53 = vld [vmem:[#allocation7 + $0x384] ss:$16 sps:$4 sm:$0xff]  }
 0x230   :  { %3168 = vmatmul.mubr.bf16.vlgmr.msra.gmra.mrb[12].mxu1 %v7022_v57  ;;  %3074 = vmatprep.subr.bf16.mxu0 %v6107_v0  ;;  %v6122_v57 = vld [vmem:[#allocation7 + $0x26c] ss:$16 sps:$4 sm:$0xff]   ;;  %v6171_v0 = vld [vmem:[#allocation7 + $0x380] ss:$16 sps:$4 sm:$0xff]  }
 0x231   :  { %3177 = vmatprep.mubr.bf16.mxu1 %v7138_v46  ;;  %3199 = vmatpush1.bf16.msra.mxu1 %v6102_v26  ;;  %v6117_v46 = vld [vmem:[#allocation7 + $0x260] ss:$16 sps:$4 sm:$0xff]   ;;  %v6176_v26 = vld [vmem:[#allocation7 + $0x38c] ss:$16 sps:$4 sm:$0xff]  }
 0x232   :  { %3200 = vmatprep.subr.bf16.mxu1 %v6110_v8  ;;  %v6174_v8 = vld [vmem:[#allocation7 + $0x388] ss:$16 sps:$4 sm:$0xff]  }
 0x233   :  { %3075 = vmatpush1.bf16.msra.mxu0 %v6105_v14  ;;  %v6179_v14 = vld [vmem:[#allocation7 + $0x3a4] ss:$16 sps:$4 sm:$0xff]  }
 0x234   :  { %3076 = vmatprep.subr.bf16.mxu0 %v6113_v41  ;;  %v6177_v41 = vld [vmem:[#allocation7 + $0x3a0] ss:$16 sps:$4 sm:$0xff]  }
 0x235   :  { %3201 = vmatpush1.bf16.msra.mxu1 %v6108_v7  ;;  %v6182_v7 = vld [vmem:[#allocation7 + $0x3ac] ss:$16 sps:$4 sm:$0xff]  }
 0x236   :  { %3202 = vmatprep.subr.bf16.mxu1 %v6116_v10  ;;  %3052 = vmatmul.mubr.bf16.gmra.mrb[16].mxu0 %v7155_v55  ;;  %v6180_v10 = vld [vmem:[#allocation7 + $0x3a8] ss:$16 sps:$4 sm:$0xff]  }
 0x237   :  { %3061 = vmatprep.mubr.bf16.mxu0 %v7168_v21  ;;  %3077 = vmatpush1.bf16.msra.mxu0 %v6111_v30  ;;  %v6185_v30 = vld [vmem:[#allocation7 + $0x3c4] ss:$16 sps:$4 sm:$0xff]  }
 0x238   :  { %3178 = vmatmul.mubr.bf16.gmra.mrb[16].mxu1 %v7155_v55  ;;  %3078 = vmatprep.subr.bf16.mxu0 %v6119_v1  ;;  %v6134_v55 = vld [vmem:[#allocation7 + $0x2ac] ss:$16 sps:$4 sm:$0xff]   ;;  %v6183_v1 = vld [vmem:[#allocation7 + $0x3c0] ss:$16 sps:$4 sm:$0xff]  }
 0x239   :  { %3187 = vmatprep.mubr.bf16.mxu1 %v7168_v21  ;;  %3203 = vmatpush1.bf16.msra.mxu1 %v6114_v13  ;;  %v6129_v21 = vld [vmem:[#allocation7 + $0x2a0] ss:$16 sps:$4 sm:$0xff]   ;;  %v6188_v13 = vld [vmem:[#allocation7 + $0x3cc] ss:$16 sps:$4 sm:$0xff]  }
 0x23a   :  { %3204 = vmatprep.subr.bf16.mxu1 %v6122_v57  ;;  %v6186_v57 = vld [vmem:[#allocation7 + $0x3c8] ss:$16 sps:$4 sm:$0xff]  }
 0x23b   :  { %3079 = vmatpush1.bf16.msra.mxu0 %v6117_v46  ;;  %v6191_v46 = vld [vmem:[#allocation7 + $0x3e4] ss:$16 sps:$4 sm:$0xff]  }
 0x23c   :  { %3080 = vmatprep.subr.bf16.mxu0 %v6125_v32  ;;  %v6189_v32 = vld [vmem:[#allocation7 + $0x3e0] ss:$16 sps:$4 sm:$0xff]  }
 0x23d   :  { %3205 = vmatpush1.bf16.msra.mxu1 %v6120_v42  ;;  %v6194_v42 = vld [vmem:[#allocation7 + $0x3ec] ss:$16 sps:$4 sm:$0xff]  }
 0x23e   :  { %3206 = vmatprep.subr.bf16.mxu1 %v6128_v24  ;;  %3062 = vmatmul.mubr.bf16.gmra.mrb[20].mxu0 %v7183_v34  ;;  %v6192_v24 = vld [vmem:[#allocation7 + $0x3e8] ss:$16 sps:$4 sm:$0xff]  }
 0x23f   :  { %3081 = vmatpush1.bf16.msra.mxu0 %v6123_v47  ;;  %3104 = vmatprep.mubr.bf16.mxu0 %v7195_v33  ;;  %v6197_v47 = vld [vmem:[#allocation7 + $0x804] ss:$16 sps:$4 sm:$0xff]  }
 0x240   :  { %3188 = vmatmul.mubr.bf16.gmra.mrb[20].mxu1 %v7183_v34  ;;  %3082 = vmatprep.subr.bf16.mxu0 %v6131_v29  ;;  %v6146_v34 = vld [vmem:[#allocation7 + $0x2ec] ss:$16 sps:$4 sm:$0xff]   ;;  %v6195_v29 = vld [vmem:[#allocation7 + $0x800] ss:$16 sps:$4 sm:$0xff]  }
 0x241   :  { %3207 = vmatpush1.bf16.msra.mxu1 %v6126_v12  ;;  %3230 = vmatprep.mubr.bf16.mxu1 %v7195_v33  ;;  %v6152_v33 = vld [vmem:[#allocation7 + $0x30c] ss:$16 sps:$4 sm:$0xff]  }
 0x242   :  { %3208 = vmatprep.subr.bf16.mxu1 %v6134_v55  ;;  %v6200_v12 = vld [vmem:[#allocation7 + $0x80c] ss:$16 sps:$4 sm:$0xff]   ;;  %v6198_v55 = vld [vmem:[#allocation7 + $0x808] ss:$16 sps:$4 sm:$0xff]  }
 0x243   :  { %3083 = vmatpush1.bf16.msra.mxu0 %v6129_v21  ;;  %v6203_v21 = vld [vmem:[#allocation7 + $0x824] ss:$16 sps:$4 sm:$0xff]  }
 0x244   :  { %3084 = vmatprep.subr.bf16.mxu0 %v6137_v17  ;;  %v6201_v17 = vld [vmem:[#allocation7 + $0x820] ss:$16 sps:$4 sm:$0xff]  }
 0x245   :  { %3209 = vmatpush1.bf16.msra.mxu1 %v6132_v59  ;;  %v6206_v59 = vld [vmem:[#allocation7 + $0x82c] ss:$16 sps:$4 sm:$0xff]  }
 0x246   :  { %3210 = vmatprep.subr.bf16.mxu1 %v6140_v56  ;;  %v6204_v56 = vld [vmem:[#allocation7 + $0x828] ss:$16 sps:$4 sm:$0xff]  }
 0x247   :  { %3085 = vmatpush1.bf16.msra.mxu0 %v6135_v49  ;;  %v6209_v49 = vld [vmem:[#allocation7 + $0x844] ss:$16 sps:$4 sm:$0xff]  }
 0x248   :  { %3086 = vmatprep.subr.bf16.mxu0 %v6143_v9  ;;  %v6207_v9 = vld [vmem:[#allocation7 + $0x840] ss:$16 sps:$4 sm:$0xff]  }
 0x249   :  { %3211 = vmatpush1.bf16.msra.mxu1 %v6138_v16  ;;  %v6212_v16 = vld [vmem:[#allocation7 + $0x84c] ss:$16 sps:$4 sm:$0xff]  }
 0x24a   :  { %3212 = vmatprep.subr.bf16.mxu1 %v6146_v34  ;;  %v6210_v34 = vld [vmem:[#allocation7 + $0x848] ss:$16 sps:$4 sm:$0xff]  }
 0x24b   :  { %3087 = vmatpush1.bf16.msra.mxu0 %v6141_v39  ;;  %v6215_v39 = vld [vmem:[#allocation7 + $0x864] ss:$16 sps:$4 sm:$0xff]  }
 0x24c   :  { %3088 = vmatprep.subr.bf16.mxu0 %v6149_v37  ;;  %v6221_v37 = vld [vmem:[#allocation7 + $0x884] ss:$16 sps:$4 sm:$0xff]  }
 0x24d   :  { %3213 = vmatpush1.bf16.msra.mxu1 %v6144_v44  ;;  %v6216_v44 = vld [vmem:[#allocation7 + $0x868] ss:$16 sps:$4 sm:$0xff]  }
 0x24e   :  { %3214 = vmatprep.subr.bf16.mxu1 %v6152_v33  ;;  %v6224_v33 = vld [vmem:[#allocation7 + $0x88c] ss:$16 sps:$4 sm:$0xff]  }
 0x24f   :  { %3089 = vmatpush1.bf16.msra.mxu0 %v6147_v58  ;;  %v6219_v58 = vld [vmem:[#allocation7 + $0x880] ss:$16 sps:$4 sm:$0xff]  }
 0x250   :  { %3090 = vmatprep.subr.bf16.mxu0 %v6155_v36  ;;  %v6227_v36 = vld [vmem:[#allocation7 + $0x8a4] ss:$16 sps:$4 sm:$0xff]  }
 0x251   :  { %3215 = vmatpush1.bf16.msra.mxu1 %v6150_v63  ;;  %v6222_v63 = vld [vmem:[#allocation7 + $0x888] ss:$16 sps:$4 sm:$0xff]  }
 0x252   :  { %3216 = vmatprep.subr.bf16.mxu1 %v6158_v2  ;;  %v6228_v2 = vld [vmem:[#allocation7 + $0x8a8] ss:$16 sps:$4 sm:$0xff]  }
 0x253   :  { %3091 = vmatpush1.bf16.msra.mxu0 %v6153_v4  ;;  %v6233_v4 = vld [vmem:[#allocation7 + $0x8c4] ss:$16 sps:$4 sm:$0xff]  }
 0x254   :  { %3092 = vmatprep.subr.bf16.mxu0 %v6161_v50  ;;  %v6231_v50 = vld [vmem:[#allocation7 + $0x8c0] ss:$16 sps:$4 sm:$0xff]  }
 0x255   :  { %3217 = vmatpush1.bf16.msra.mxu1 %v6156_v38  ;;  %v6236_v38 = vld [vmem:[#allocation7 + $0x8cc] ss:$16 sps:$4 sm:$0xff]  }
 0x256   :  { %3218 = vmatprep.subr.bf16.mxu1 %v6164_v28  ;;  %v6234_v28 = vld [vmem:[#allocation7 + $0x8c8] ss:$16 sps:$4 sm:$0xff]  }
 0x257   :  { %3093 = vmatpush1.bf16.msra.mxu0 %v6159_v52  ;;  %v6239_v52 = vld [vmem:[#allocation7 + $0x8e4] ss:$16 sps:$4 sm:$0xff]  }
 0x258   :  { %3094 = vmatprep.subr.bf16.mxu0 %v6167_v23  ;;  %v6245_v23 = vld [vmem:[#allocation7 + $0x904] ss:$16 sps:$4 sm:$0xff]  }
 0x259   :  { %3219 = vmatpush1.bf16.msra.mxu1 %v6162_v40  ;;  %v6237_v40 = vld [vmem:[#allocation7 + $0x8e0] ss:$16 sps:$4 sm:$0xff]  }
 0x25a   :  { %3220 = vmatprep.subr.bf16.mxu1 %v6170_v6  ;;  %v6248_v6 = vld [vmem:[#allocation7 + $0x90c] ss:$16 sps:$4 sm:$0xff]  }
 0x25b   :  { %3095 = vmatpush1.bf16.msra.mxu0 %v6165_v61  ;;  %v6243_v61 = vld [vmem:[#allocation7 + $0x900] ss:$16 sps:$4 sm:$0xff]  }
 0x25c   :  { %3096 = vmatprep.subr.bf16.mxu0 %v6173_v53  ;;  %v6251_v53 = vld [vmem:[#allocation7 + $0x924] ss:$16 sps:$4 sm:$0xff]  }
 0x25d   :  { %3221 = vmatpush1.bf16.msra.mxu1 %v6168_v19  ;;  %v6246_v19 = vld [vmem:[#allocation7 + $0x908] ss:$16 sps:$4 sm:$0xff]  }
 0x25e   :  { %3222 = vmatprep.subr.bf16.mxu1 %v6176_v26  ;;  %v6254_v26 = vld [vmem:[#allocation7 + $0x92c] ss:$16 sps:$4 sm:$0xff]  }
 0x25f   :  { %3097 = vmatpush1.bf16.msra.mxu0 %v6171_v0  ;;  %v6249_v0 = vld [vmem:[#allocation7 + $0x920] ss:$16 sps:$4 sm:$0xff]  }
 0x260   :  { %3098 = vmatprep.subr.bf16.mxu0 %v6179_v14  ;;  %v6257_v14 = vld [vmem:[#allocation7 + $0x944] ss:$16 sps:$4 sm:$0xff]  }
 0x261   :  { %3223 = vmatpush1.bf16.msra.mxu1 %v6174_v8  ;;  %v6252_v8 = vld [vmem:[#allocation7 + $0x928] ss:$16 sps:$4 sm:$0xff]  }
 0x262   :  { %3224 = vmatprep.subr.bf16.mxu1 %v6182_v7  ;;  %v6260_v7 = vld [vmem:[#allocation7 + $0x94c] ss:$16 sps:$4 sm:$0xff]  }
 0x263   :  { %3099 = vmatpush1.bf16.msra.mxu0 %v6177_v41  ;;  %v6255_v41 = vld [vmem:[#allocation7 + $0x940] ss:$16 sps:$4 sm:$0xff]  }
 0x264   :  { %3100 = vmatprep.subr.bf16.mxu0 %v6185_v30  ;;  %v6263_v30 = vld [vmem:[#allocation7 + $0x964] ss:$16 sps:$4 sm:$0xff]  }
 0x265   :  { %3225 = vmatpush1.bf16.msra.mxu1 %v6180_v10  ;;  %v6258_v10 = vld [vmem:[#allocation7 + $0x948] ss:$16 sps:$4 sm:$0xff]  }
 0x266   :  { %3226 = vmatprep.subr.bf16.mxu1 %v6188_v13  ;;  %v6266_v13 = vld [vmem:[#allocation7 + $0x96c] ss:$16 sps:$4 sm:$0xff]  }
 0x267   :  { %3101 = vmatpush1.bf16.msra.mxu0 %v6183_v1  ;;  %v6261_v1 = vld [vmem:[#allocation7 + $0x960] ss:$16 sps:$4 sm:$0xff]  }
 0x268   :  { %3102 = vmatprep.subr.bf16.mxu0 %v6191_v46  ;;  %v6269_v46 = vld [vmem:[#allocation7 + $0x984] ss:$16 sps:$4 sm:$0xff]  }
 0x269   :  { %3227 = vmatpush1.bf16.msra.mxu1 %v6186_v57  ;;  %v6264_v57 = vld [vmem:[#allocation7 + $0x968] ss:$16 sps:$4 sm:$0xff]  }
 0x26a   :  { %3228 = vmatprep.subr.bf16.mxu1 %v6194_v42  ;;  %v6272_v42 = vld [vmem:[#allocation7 + $0x98c] ss:$16 sps:$4 sm:$0xff]  }
 0x26b   :  { %3103 = vmatpush1.bf16.msra.mxu0 %v6189_v32  ;;  %v6267_v32 = vld [vmem:[#allocation7 + $0x980] ss:$16 sps:$4 sm:$0xff]  }
 0x26c   :  { %4030 = vmatprep.subr.bf16.mxu0 %v6197_v47  ;;  %v6275_v47 = vld [vmem:[#allocation7 + $0x9a4] ss:$16 sps:$4 sm:$0xff]  }
 0x26d   :  { %3229 = vmatpush1.bf16.msra.mxu1 %v6192_v24  ;;  %v6270_v24 = vld [vmem:[#allocation7 + $0x988] ss:$16 sps:$4 sm:$0xff]  }
 0x26e   :  { %4156 = vmatprep.subr.bf16.mxu1 %v6200_v12  ;;  %3105 = vmatmul.mubr.bf16.vlgmr.msra.gmra.mrb[12].mxu0 %v7153_v43  ;;  %v6278_v12 = vld [vmem:[#allocation7 + $0x9ac] ss:$16 sps:$4 sm:$0xff]  }
 0x26f   :  { %3114 = vmatprep.mubr.bf16.mxu0 %v7213_v51  ;;  %4031 = vmatpush1.bf16.msra.mxu0 %v6195_v29  ;;  %v6273_v29 = vld [vmem:[#allocation7 + $0x9a0] ss:$16 sps:$4 sm:$0xff]  }
 0x270   :  { %3231 = vmatmul.mubr.bf16.vlgmr.msra.gmra.mrb[12].mxu1 %v7153_v43  ;;  %4032 = vmatprep.subr.bf16.mxu0 %v6203_v21  ;;  %v6218_v43 = vld [vmem:[#allocation7 + $0x86c] ss:$16 sps:$4 sm:$0xff]   ;;  %v6281_v21 = vld [vmem:[#allocation7 + $0x9c4] ss:$16 sps:$4 sm:$0xff]  }
 0x271   :  { %3240 = vmatprep.mubr.bf16.mxu1 %v7213_v51  ;;  %4157 = vmatpush1.bf16.msra.mxu1 %v6198_v55  ;;  %v6213_v51 = vld [vmem:[#allocation7 + $0x860] ss:$16 sps:$4 sm:$0xff]   ;;  %v6276_v55 = vld [vmem:[#allocation7 + $0x9a8] ss:$16 sps:$4 sm:$0xff]  }
 0x272   :  { %4158 = vmatprep.subr.bf16.mxu1 %v6206_v59  ;;  %v6284_v59 = vld [vmem:[#allocation7 + $0x9cc] ss:$16 sps:$4 sm:$0xff]  }
 0x273   :  { %4033 = vmatpush1.bf16.msra.mxu0 %v6201_v17  ;;  %v6279_v17 = vld [vmem:[#allocation7 + $0x9c0] ss:$16 sps:$4 sm:$0xff]  }
 0x274   :  { %4034 = vmatprep.subr.bf16.mxu0 %v6209_v49  ;;  %v6287_v49 = vld [vmem:[#allocation7 + $0x9e4] ss:$16 sps:$4 sm:$0xff]  }
 0x275   :  { %4159 = vmatpush1.bf16.msra.mxu1 %v6204_v56  ;;  %v6282_v56 = vld [vmem:[#allocation7 + $0x9c8] ss:$16 sps:$4 sm:$0xff]  }
 0x276   :  { %3115 = vmatmul.mubr.bf16.gmra.mrb[16].mxu0 %v7226_v20  ;;  %4160 = vmatprep.subr.bf16.mxu1 %v6212_v16  ;;  %v6290_v16 = vld [vmem:[#allocation7 + $0x9ec] ss:$16 sps:$4 sm:$0xff]  }
 0x277   :  { %3124 = vmatprep.mubr.bf16.mxu0 %v7228_v5  ;;  %4035 = vmatpush1.bf16.msra.mxu0 %v6207_v9  ;;  %v6285_v9 = vld [vmem:[#allocation7 + $0x9e0] ss:$16 sps:$4 sm:$0xff]  }
 0x278   :  { %3241 = vmatmul.mubr.bf16.gmra.mrb[16].mxu1 %v7226_v20  ;;  %4036 = vmatprep.subr.bf16.mxu0 %v6215_v39  ;;  %v6230_v20 = vld [vmem:[#allocation7 + $0x8ac] ss:$16 sps:$4 sm:$0xff]   ;;  %v6293_v39 = vld [vmem:[#allocation7 + $0xa04] ss:$16 sps:$4 sm:$0xff]  }
 0x279   :  { %3250 = vmatprep.mubr.bf16.mxu1 %v7228_v5  ;;  %4161 = vmatpush1.bf16.msra.mxu1 %v6210_v34  ;;  %v6225_v5 = vld [vmem:[#allocation7 + $0x8a0] ss:$16 sps:$4 sm:$0xff]   ;;  %v6288_v34 = vld [vmem:[#allocation7 + $0x9e8] ss:$16 sps:$4 sm:$0xff]  }
 0x27a   :  { %4162 = vmatprep.subr.bf16.mxu1 %v6218_v43  ;;  %v6296_v43 = vld [vmem:[#allocation7 + $0xa0c] ss:$16 sps:$4 sm:$0xff]  }
 0x27b   :  { %4037 = vmatpush1.bf16.msra.mxu0 %v6213_v51  ;;  %v6291_v51 = vld [vmem:[#allocation7 + $0xa00] ss:$16 sps:$4 sm:$0xff]  }
 0x27c   :  { %4038 = vmatprep.subr.bf16.mxu0 %v6221_v37  ;;  %v6299_v37 = vld [vmem:[#allocation7 + $0xa24] ss:$16 sps:$4 sm:$0xff]  }
 0x27d   :  { %4163 = vmatpush1.bf16.msra.mxu1 %v6216_v44  ;;  %v6294_v44 = vld [vmem:[#allocation7 + $0xa08] ss:$16 sps:$4 sm:$0xff]  }
 0x27e   :  { %3125 = vmatmul.mubr.bf16.gmra.mrb[20].mxu0 %v7249_v11  ;;  %4164 = vmatprep.subr.bf16.mxu1 %v6224_v33  ;;  %v6302_v33 = vld [vmem:[#allocation7 + $0xa2c] ss:$16 sps:$4 sm:$0xff]  }
 0x27f   :  { %4062 = vmatprep.mubr.bf16.mxu0 %v7251_v22  ;;  %4039 = vmatpush1.bf16.msra.mxu0 %v6219_v58  ;;  %v6297_v58 = vld [vmem:[#allocation7 + $0xa20] ss:$16 sps:$4 sm:$0xff]  }
 0x280   :  { %3251 = vmatmul.mubr.bf16.gmra.mrb[20].mxu1 %v7249_v11  ;;  %4040 = vmatprep.subr.bf16.mxu0 %v6227_v36  ;;  %v6242_v11 = vld [vmem:[#allocation7 + $0x8ec] ss:$16 sps:$4 sm:$0xff]   ;;  %v6305_v36 = vld [vmem:[#allocation7 + $0xa44] ss:$16 sps:$4 sm:$0xff]  }
 0x281   :  { %4188 = vmatprep.mubr.bf16.mxu1 %v7251_v22  ;;  %4165 = vmatpush1.bf16.msra.mxu1 %v6222_v63  ;;  %v6240_v22 = vld [vmem:[#allocation7 + $0x8e8] ss:$16 sps:$4 sm:$0xff]  }
 0x282   :  { %4166 = vmatprep.subr.bf16.mxu1 %v6230_v20  ;;  %v6300_v63 = vld [vmem:[#allocation7 + $0xa28] ss:$16 sps:$4 sm:$0xff]   ;;  %v6308_v20 = vld [vmem:[#allocation7 + $0xa4c] ss:$16 sps:$4 sm:$0xff]  }
 0x283   :  { %4041 = vmatpush1.bf16.msra.mxu0 %v6225_v5  ;;  %v6303_v5 = vld [vmem:[#allocation7 + $0xa40] ss:$16 sps:$4 sm:$0xff]  }
 0x284   :  { %4042 = vmatprep.subr.bf16.mxu0 %v6233_v4  ;;  %v6311_v4 = vld [vmem:[#allocation7 + $0xa64] ss:$16 sps:$4 sm:$0xff]  }
 0x285   :  { %4167 = vmatpush1.bf16.msra.mxu1 %v6228_v2  ;;  %v6306_v2 = vld [vmem:[#allocation7 + $0xa48] ss:$16 sps:$4 sm:$0xff]  }
 0x286   :  { %4168 = vmatprep.subr.bf16.mxu1 %v6236_v38  ;;  %v6312_v38 = vld [vmem:[#allocation7 + $0xa68] ss:$16 sps:$4 sm:$0xff]  }
 0x287   :  { %4043 = vmatpush1.bf16.msra.mxu0 %v6231_v50  ;;  %v6317_v50 = vld [vmem:[#allocation7 + $0xa84] ss:$16 sps:$4 sm:$0xff]  }
 0x288   :  { %4044 = vmatprep.subr.bf16.mxu0 %v6239_v52  ;;  %v6315_v52 = vld [vmem:[#allocation7 + $0xa80] ss:$16 sps:$4 sm:$0xff]  }
 0x289   :  { %4169 = vmatpush1.bf16.msra.mxu1 %v6234_v28  ;;  %v6320_v28 = vld [vmem:[#allocation7 + $0xa8c] ss:$16 sps:$4 sm:$0xff]  }
 0x28a   :  { %4170 = vmatprep.subr.bf16.mxu1 %v6242_v11  ;;  %v6318_v11 = vld [vmem:[#allocation7 + $0xa88] ss:$16 sps:$4 sm:$0xff]  }
 0x28b   :  { %4045 = vmatpush1.bf16.msra.mxu0 %v6237_v40  ;;  %v6323_v40 = vld [vmem:[#allocation7 + $0xaa4] ss:$16 sps:$4 sm:$0xff]  }
 0x28c   :  { %4046 = vmatprep.subr.bf16.mxu0 %v6245_v23  ;;  %v6329_v23 = vld [vmem:[#allocation7 + $0xac4] ss:$16 sps:$4 sm:$0xff]  }
 0x28d   :  { %4171 = vmatpush1.bf16.msra.mxu1 %v6240_v22  ;;  %v6324_v22 = vld [vmem:[#allocation7 + $0xaa8] ss:$16 sps:$4 sm:$0xff]  }
 0x28e   :  { %4172 = vmatprep.subr.bf16.mxu1 %v6248_v6  ;;  %v6332_v6 = vld [vmem:[#allocation7 + $0xacc] ss:$16 sps:$4 sm:$0xff]  }
 0x28f   :  { %4047 = vmatpush1.bf16.msra.mxu0 %v6243_v61  ;;  %v6327_v61 = vld [vmem:[#allocation7 + $0xac0] ss:$16 sps:$4 sm:$0xff]  }
 0x290   :  { %4048 = vmatprep.subr.bf16.mxu0 %v6251_v53  ;;  %v6335_v53 = vld [vmem:[#allocation7 + $0xae4] ss:$16 sps:$4 sm:$0xff]  }
 0x291   :  { %4173 = vmatpush1.bf16.msra.mxu1 %v6246_v19  ;;  %v6330_v19 = vld [vmem:[#allocation7 + $0xac8] ss:$16 sps:$4 sm:$0xff]  }
 0x292   :  { %4174 = vmatprep.subr.bf16.mxu1 %v6254_v26  ;;  %v6333_v26 = vld [vmem:[#allocation7 + $0xae0] ss:$16 sps:$4 sm:$0xff]  }
 0x293   :  { %4049 = vmatpush1.bf16.msra.mxu0 %v6249_v0  ;;  %v6341_v0 = vld [vmem:[#allocation7 + $0xb04] ss:$16 sps:$4 sm:$0xff]  }
 0x294   :  { %4050 = vmatprep.subr.bf16.mxu0 %v6257_v14  ;;  %v6339_v14 = vld [vmem:[#allocation7 + $0xb00] ss:$16 sps:$4 sm:$0xff]  }
 0x295   :  { %4175 = vmatpush1.bf16.msra.mxu1 %v6252_v8  ;;  %v6344_v8 = vld [vmem:[#allocation7 + $0xb0c] ss:$16 sps:$4 sm:$0xff]  }
 0x296   :  { %4176 = vmatprep.subr.bf16.mxu1 %v6260_v7  ;;  %v6342_v7 = vld [vmem:[#allocation7 + $0xb08] ss:$16 sps:$4 sm:$0xff]  }
 0x297   :  { %4051 = vmatpush1.bf16.msra.mxu0 %v6255_v41  ;;  %v6347_v41 = vld [vmem:[#allocation7 + $0xb24] ss:$16 sps:$4 sm:$0xff]  }
 0x298   :  { %4052 = vmatprep.subr.bf16.mxu0 %v6263_v30  ;;  %v6345_v30 = vld [vmem:[#allocation7 + $0xb20] ss:$16 sps:$4 sm:$0xff]  }
 0x299   :  { %4177 = vmatpush1.bf16.msra.mxu1 %v6258_v10  ;;  %v6350_v10 = vld [vmem:[#allocation7 + $0xb2c] ss:$16 sps:$4 sm:$0xff]  }
 0x29a   :  { %4178 = vmatprep.subr.bf16.mxu1 %v6266_v13  ;;  %v6348_v13 = vld [vmem:[#allocation7 + $0xb28] ss:$16 sps:$4 sm:$0xff]  }
 0x29b   :  { %4053 = vmatpush1.bf16.msra.mxu0 %v6261_v1  ;;  %v6353_v1 = vld [vmem:[#allocation7 + $0xb44] ss:$16 sps:$4 sm:$0xff]  }
 0x29c   :  { %4054 = vmatprep.subr.bf16.mxu0 %v6269_v46  ;;  %v6351_v46 = vld [vmem:[#allocation7 + $0xb40] ss:$16 sps:$4 sm:$0xff]  }
 0x29d   :  { %4179 = vmatpush1.bf16.msra.mxu1 %v6264_v57  ;;  %v6356_v57 = vld [vmem:[#allocation7 + $0xb4c] ss:$16 sps:$4 sm:$0xff]  }
 0x29e   :  { %4180 = vmatprep.subr.bf16.mxu1 %v6272_v42  ;;  %v6354_v42 = vld [vmem:[#allocation7 + $0xb48] ss:$16 sps:$4 sm:$0xff]  }
 0x29f   :  { %4055 = vmatpush1.bf16.msra.mxu0 %v6267_v32  ;;  %v6359_v32 = vld [vmem:[#allocation7 + $0xb64] ss:$16 sps:$4 sm:$0xff]  }
 0x2a0   :  { %4056 = vmatprep.subr.bf16.mxu0 %v6275_v47  ;;  %v6357_v47 = vld [vmem:[#allocation7 + $0xb60] ss:$16 sps:$4 sm:$0xff]  }
 0x2a1   :  { %4181 = vmatpush1.bf16.msra.mxu1 %v6270_v24  ;;  %v6362_v24 = vld [vmem:[#allocation7 + $0xb6c] ss:$16 sps:$4 sm:$0xff]  }
 0x2a2   :  { %4182 = vmatprep.subr.bf16.mxu1 %v6278_v12  ;;  %v6360_v12 = vld [vmem:[#allocation7 + $0xb68] ss:$16 sps:$4 sm:$0xff]  }
 0x2a3   :  { %4057 = vmatpush1.bf16.msra.mxu0 %v6273_v29  ;;  %v6365_v29 = vld [vmem:[#allocation7 + $0xb84] ss:$16 sps:$4 sm:$0xff]  }
 0x2a4   :  { %4058 = vmatprep.subr.bf16.mxu0 %v6281_v21  ;;  %v6363_v21 = vld [vmem:[#allocation7 + $0xb80] ss:$16 sps:$4 sm:$0xff]  }
 0x2a5   :  { %4183 = vmatpush1.bf16.msra.mxu1 %v6276_v55  ;;  %v6368_v55 = vld [vmem:[#allocation7 + $0xb8c] ss:$16 sps:$4 sm:$0xff]  }
 0x2a6   :  { %4184 = vmatprep.subr.bf16.mxu1 %v6284_v59  ;;  %v6366_v59 = vld [vmem:[#allocation7 + $0xb88] ss:$16 sps:$4 sm:$0xff]  }
 0x2a7   :  { %4059 = vmatpush1.bf16.msra.mxu0 %v6279_v17  ;;  %v6371_v17 = vld [vmem:[#allocation7 + $0xba4] ss:$16 sps:$4 sm:$0xff]  }
 0x2a8   :  { %4060 = vmatprep.subr.bf16.mxu0 %v6287_v49  ;;  %v6369_v49 = vld [vmem:[#allocation7 + $0xba0] ss:$16 sps:$4 sm:$0xff]  }
 0x2a9   :  { %4185 = vmatpush1.bf16.msra.mxu1 %v6282_v56  ;;  %v6374_v56 = vld [vmem:[#allocation7 + $0xbac] ss:$16 sps:$4 sm:$0xff]  }
 0x2aa   :  { %4186 = vmatprep.subr.bf16.mxu1 %v6290_v16  ;;  %v6372_v16 = vld [vmem:[#allocation7 + $0xba8] ss:$16 sps:$4 sm:$0xff]  }
 0x2ab   :  { %4061 = vmatpush1.bf16.msra.mxu0 %v6285_v9  ;;  %v6377_v9 = vld [vmem:[#allocation7 + $0xbc4] ss:$16 sps:$4 sm:$0xff]  }
 0x2ac   :  { %4093 = vmatprep.subr.bf16.mxu0 %v6293_v39  ;;  %v6375_v39 = vld [vmem:[#allocation7 + $0xbc0] ss:$16 sps:$4 sm:$0xff]  }
 0x2ad   :  { %4187 = vmatpush1.bf16.msra.mxu1 %v6288_v34  ;;  %v6380_v34 = vld [vmem:[#allocation7 + $0xbcc] ss:$16 sps:$4 sm:$0xff]  }
 0x2ae   :  { %4219 = vmatprep.subr.bf16.mxu1 %v6296_v43  ;;  %4063 = vmatmul.mubr.bf16.vlgmr.msra.gmra.mrb[12].mxu0 %v6923_v62  ;;  %v6378_v43 = vld [vmem:[#allocation7 + $0xbc8] ss:$16 sps:$4 sm:$0xff]  }
 0x2af   :  { %4072 = vmatprep.mubr.bf16.mxu0 %v7265_v27  ;;  %4094 = vmatpush1.bf16.msra.mxu0 %v6291_v51  ;;  %v6383_v51 = vld [vmem:[#allocation7 + $0xbe4] ss:$16 sps:$4 sm:$0xff]  }
 0x2b0   :  { %4189 = vmatmul.mubr.bf16.vlgmr.msra.gmra.mrb[12].mxu1 %v6923_v62  ;;  %4095 = vmatprep.subr.bf16.mxu0 %v6299_v37  ;;  %v6314_v62 = vld [vmem:[#allocation7 + $0xa6c] ss:$16 sps:$4 sm:$0xff]   ;;  %v6381_v37 = vld [vmem:[#allocation7 + $0xbe0] ss:$16 sps:$4 sm:$0xff]  }
 0x2b1   :  { %4198 = vmatprep.mubr.bf16.mxu1 %v7265_v27  ;;  %4220 = vmatpush1.bf16.msra.mxu1 %v6294_v44  ;;  %v6309_v27 = vld [vmem:[#allocation7 + $0xa60] ss:$16 sps:$4 sm:$0xff]   ;;  %v6386_v44 = vld [vmem:[#allocation7 + $0xbec] ss:$16 sps:$4 sm:$0xff]  }
 0x2b2   :  { %4221 = vmatprep.subr.bf16.mxu1 %v6302_v33  ;;  %v6384_v33 = vld [vmem:[#allocation7 + $0xbe8] ss:$16 sps:$4 sm:$0xff]  }
 0x2b3   :  { %4096 = vmatpush1.bf16.msra.mxu0 %v6297_v58  ;;  %v6387_v58 = vld [vmem:[%s7604_s5 + $0x40] sm:$0xff]  }
 0x2b4   :  { %4097 = vmatprep.subr.bf16.mxu0 %v6305_v36  ;;  %v6389_v36 = vld [vmem:[%s7604_s5] sm:$0xff]  }
 0x2b5   :  { %4222 = vmatpush1.bf16.msra.mxu1 %v6300_v63  ;;  %v6388_v63 = vld [vmem:[%s7604_s5 + $0xc0] sm:$0xff]  }
 0x2b6   :  { %4073 = vmatmul.mubr.bf16.gmra.mrb[16].mxu0 %v7286_v15  ;;  %4223 = vmatprep.subr.bf16.mxu1 %v6308_v20  ;;  %v6390_v20 = vld [vmem:[%s7604_s5 + $0x80] sm:$0xff]  }
 0x2b7   :  { %4082 = vmatprep.mubr.bf16.mxu0 %v7301_v45  ;;  %4098 = vmatpush1.bf16.msra.mxu0 %v6303_v5  ;;  %v6391_v5 = vld [vmem:[%s7604_s5 + $0x48] sm:$0xff]  }
 0x2b8   :  { %4199 = vmatmul.mubr.bf16.gmra.mrb[16].mxu1 %v7286_v15  ;;  %4099 = vmatprep.subr.bf16.mxu0 %v6311_v4  ;;  %v6326_v15 = vld [vmem:[#allocation7 + $0xaac] ss:$16 sps:$4 sm:$0xff]  }
 0x2b9   :  { %4208 = vmatprep.mubr.bf16.mxu1 %v7301_v45  ;;  %4224 = vmatpush1.bf16.msra.mxu1 %v6306_v2  ;;  %v6321_v45 = vld [vmem:[#allocation7 + $0xaa0] ss:$16 sps:$4 sm:$0xff]  }
 0x2ba   :  { %4225 = vmatprep.subr.bf16.mxu1 %v6314_v62  ;;  %v6392_v2 = vld [vmem:[%s7604_s5 + $0xc8] sm:$0xff]  }
 0x2bb   :  { %4100 = vmatpush1.bf16.msra.mxu0 %v6309_v27  ;;  %v6393_v4 = vld [vmem:[%s7604_s5 + $0x8] sm:$0xff]   ;;  %v6395_v27 = vld [vmem:[%s7604_s5 + $0x50] sm:$0xff]  }
 0x2bc   :  { %4101 = vmatprep.subr.bf16.mxu0 %v6317_v50  ;;  %v6394_v62 = vld [vmem:[%s7604_s5 + $0x88] sm:$0xff]   ;;  %v6399_v50 = vld [vmem:[%s7604_s5 + $0x58] sm:$0xff]  }
 0x2bd   :  { %4226 = vmatpush1.bf16.msra.mxu1 %v6312_v38  ;;  %v6398_v38 = vld [vmem:[%s7604_s5 + $0x90] sm:$0xff]  }
 0x2be   :  { %4083 = vmatmul.mubr.bf16.gmra.mrb[20].mxu0 %v7315_v35  ;;  %4227 = vmatprep.subr.bf16.mxu1 %v6320_v28  ;;  %v6400_v28 = vld [vmem:[%s7604_s5 + $0xd8] sm:$0xff]  }
 0x2bf   :  { %4125 = vmatprep.mubr.bf16.mxu0 %v7329_v25  ;;  %4102 = vmatpush1.bf16.msra.mxu0 %v6315_v52  ;;  %v6401_v52 = vld [vmem:[%s7604_s5 + $0x18] sm:$0xff]  }
 0x2c0   :  { %4209 = vmatmul.mubr.bf16.gmra.mrb[20].mxu1 %v7315_v35  ;;  %4103 = vmatprep.subr.bf16.mxu0 %v6323_v40  ;;  %v6338_v35 = vld [vmem:[#allocation7 + $0xaec] ss:$16 sps:$4 sm:$0xff]   ;;  %v6403_v40 = vld [vmem:[%s7604_s5 + $0x60] sm:$0xff]  }
 0x2c1   :  { %4251 = vmatprep.mubr.bf16.mxu1 %v7329_v25  ;;  %4228 = vmatpush1.bf16.msra.mxu1 %v6318_v11  ;;  %v6336_v25 = vld [vmem:[#allocation7 + $0xae8] ss:$16 sps:$4 sm:$0xff]   ;;  %v6402_v11 = vld [vmem:[%s7604_s5 + $0x98] sm:$0xff]  }
 0x2c2   :  { %4229 = vmatprep.subr.bf16.mxu1 %v6326_v15  ;;  %v6406_v15 = vld [vmem:[%s7604_s5 + $0xa0] sm:$0xff]  }
 0x2c3   :  { %4104 = vmatpush1.bf16.msra.mxu0 %v6321_v45  ;;  %v6407_v45 = vld [vmem:[%s7604_s5 + $0x68] sm:$0xff]  }
 0x2c4   :  { %4105 = vmatprep.subr.bf16.mxu0 %v6329_v23  ;;  %v6409_v23 = vld [vmem:[%s7604_s5 + $0x28] sm:$0xff]  }
 0x2c5   :  { %4230 = vmatpush1.bf16.msra.mxu1 %v6324_v22  ;;  %v6408_v22 = vld [vmem:[%s7604_s5 + $0xe8] sm:$0xff]  }
 0x2c6   :  { %4231 = vmatprep.subr.bf16.mxu1 %v6332_v6  ;;  %v6410_v6 = vld [vmem:[%s7604_s5 + $0xa8] sm:$0xff]  }
 0x2c7   :  { %4106 = vmatpush1.bf16.msra.mxu0 %v6327_v61  ;;  %v6411_v61 = vld [vmem:[%s7604_s5 + $0x70] sm:$0xff]  }
 0x2c8   :  { %4107 = vmatprep.subr.bf16.mxu0 %v6335_v53  ;;  %v6414_v53 = vld [vmem:[%s7604_s5 + $0xb0] sm:$0xff]  }
 0x2c9   :  { %4232 = vmatpush1.bf16.msra.mxu1 %v6330_v19  ;;  %v6413_v19 = vld [vmem:[%s7604_s5 + $0x30] sm:$0xff]  }
 0x2ca   :  { %4233 = vmatprep.subr.bf16.mxu1 %v6338_v35  ;;  %v6415_v35 = vld [vmem:[%s7604_s5 + $0x78] sm:$0xff]  }
 0x2cb   :  { %4108 = vmatpush1.bf16.msra.mxu0 %v6333_v26  ;;  %v6416_v26 = vld [vmem:[%s7604_s5 + $0xf8] sm:$0xff]  }
 0x2cc   :  { %4109 = vmatprep.subr.bf16.mxu0 %v6341_v0  ;;  %v6418_v0 = vld [vmem:[%s7604_s5 + $0xb8] sm:$0xff]  }
 0x2cd   :  { %4234 = vmatpush1.bf16.msra.mxu1 %v6336_v25  ;;  %v6417_v25 = vld [vmem:[%s7604_s5 + $0x38] sm:$0xff]  }
 0x2ce   :  { %4235 = vmatprep.subr.bf16.mxu1 %v6344_v8  ;;  %v4306_v8 = vld [vmem:[#allocation9] sm:$0xf] }
 0x2cf   :  { %4110 = vmatpush1.bf16.msra.mxu0 %v6339_v14  ;;  %v7667_v14 = vsub.s32 0, %v6719_v60 }
 0x2d0   :  { %4111 = vmatprep.subr.bf16.mxu0 %v6347_v41  ;;  %v7668_v41 = vsub.s32 2, %v6719_v60 }
 0x2d1   :  { %4236 = vmatpush1.bf16.msra.mxu1 %v6342_v7  ;;  %v7537_v7 = vrot.slane %v4306_v8, %v7667_v14 }
 0x2d2   :  { %4237 = vmatprep.subr.bf16.mxu1 %v6350_v10  ;;  %v7541_v10 = vrot.slane %v4306_v8, %v7668_v41 }
 0x2d3   :  { %4112 = vmatpush1.bf16.msra.mxu0 %v6345_v30  ;;  %v7669_v30 = vsub.s32 1, %v6719_v60 }
 0x2d4   :  { %4113 = vmatprep.subr.bf16.mxu0 %v6353_v1  ;;  %v7670_v1 = vsub.s32 3, %v6719_v60 }
 0x2d5   :  { %4238 = vmatpush1.bf16.msra.mxu1 %v6348_v13  ;;  %v7545_v13 = vrot.slane %v4306_v8, %v7669_v30 }
 0x2d6   :  { %4239 = vmatprep.subr.bf16.mxu1 %v6356_v57  ;;  %v7549_v57 = vrot.slane %v4306_v8, %v7670_v1 }
 0x2d7   :  { %4114 = vmatpush1.bf16.msra.mxu0 %v6351_v46 }
 0x2d8   :  { %4115 = vmatprep.subr.bf16.mxu0 %v6359_v32 }
 0x2d9   :  { %4240 = vmatpush1.bf16.msra.mxu1 %v6354_v42 }
 0x2da   :  { %4241 = vmatprep.subr.bf16.mxu1 %v6362_v24 }
 0x2db   :  { %4116 = vmatpush1.bf16.msra.mxu0 %v6357_v47 }
 0x2dc   :  { %4117 = vmatprep.subr.bf16.mxu0 %v6365_v29 }
 0x2dd   :  { %4242 = vmatpush1.bf16.msra.mxu1 %v6360_v12 }
 0x2de   :  { %4243 = vmatprep.subr.bf16.mxu1 %v6368_v55 }
 0x2df   :  { %4118 = vmatpush1.bf16.msra.mxu0 %v6363_v21 }
 0x2e0   :  { %4119 = vmatprep.subr.bf16.mxu0 %v6371_v17 }
 0x2e1   :  { %4244 = vmatpush1.bf16.msra.mxu1 %v6366_v59 }
 0x2e2   :  { %4245 = vmatprep.subr.bf16.mxu1 %v6374_v56 }
 0x2e3   :  { %4120 = vmatpush1.bf16.msra.mxu0 %v6369_v49 }
 0x2e4   :  { %4121 = vmatprep.subr.bf16.mxu0 %v6377_v9 }
 0x2e5   :  { %4246 = vmatpush1.bf16.msra.mxu1 %v6372_v16 }
 0x2e6   :  { %4247 = vmatprep.subr.bf16.mxu1 %v6380_v34 }
 0x2e7   :  { %4122 = vmatpush1.bf16.msra.mxu0 %v6375_v39 }
 0x2e8   :  { %4123 = vmatprep.subr.bf16.mxu0 %v6383_v51 }
 0x2e9   :  { %4248 = vmatpush1.bf16.msra.mxu1 %v6378_v43 }
 0x2ea   :  { %4249 = vmatprep.subr.bf16.mxu1 %v6386_v44 }
 0x2eb   :  { %4124 = vmatpush1.bf16.msra.mxu0 %v6381_v37 }
 0x2ec   :  { %5416 = vmatprep.subr.bf16.mxu0 %v6387_v58 }
 0x2ed   :  { %4250 = vmatpush1.bf16.msra.mxu1 %v6384_v33 }
 0x2ee   :  { %5450 = vmatprep.subr.bf16.mxu1 %v6388_v63  ;;  %4126 = vmatmul.mubr.bf16.vlgmr.msra.gmra.mrb[12].mxu0 %v7074_v48 }
 0x2ef   :  { %4135 = vmatprep.mubr.bf16.mxu0 %v7331_v18  ;;  %5417 = vmatpush3.bf16.msra.mxu0 %v6389_v36 }
 0x2f0   :  { %4252 = vmatmul.mubr.bf16.vlgmr.msra.gmra.mrb[12].mxu1 %v7074_v48  ;;  %5418 = vmatprep.subr.bf16.mxu0 %v6391_v5  ;;  %v6396_v48 = vld [vmem:[%s7604_s5 + $0xd0] sm:$0xff]  }
 0x2f1   :  { %4261 = vmatprep.mubr.bf16.mxu1 %v7331_v18  ;;  %5451 = vmatpush3.bf16.msra.mxu1 %v6390_v20  ;;  %v6397_v18 = vld [vmem:[%s7604_s5 + $0x10] sm:$0xff]  }
 0x2f2   :  { %5452 = vmatprep.subr.bf16.mxu1 %v6392_v2 }
 0x2f3   :  { %5419 = vmatpush3.bf16.msra.mxu0 %v6393_v4 }
 0x2f4   :  { %5420 = vmatprep.subr.bf16.mxu0 %v6395_v27 }
 0x2f5   :  { %5453 = vmatpush3.bf16.msra.mxu1 %v6394_v62 }
 0x2f6   :  { %4136 = vmatmul.mubr.bf16.gmra.mrb[16].mxu0 %v7343_v31  ;;  %5454 = vmatprep.subr.bf16.mxu1 %v6396_v48 }
 0x2f7   :  { %4145 = vmatprep.mubr.bf16.mxu0 %v7351_v54  ;;  %5421 = vmatpush3.bf16.msra.mxu0 %v6397_v18 }
 0x2f8   :  { %4262 = vmatmul.mubr.bf16.gmra.mrb[16].mxu1 %v7343_v31  ;;  %5422 = vmatprep.subr.bf16.mxu0 %v6399_v50  ;;  %v6404_v31 = vld [vmem:[%s7604_s5 + $0xe0] sm:$0xff]  }
 0x2f9   :  { %4271 = vmatprep.mubr.bf16.mxu1 %v7351_v54  ;;  %5455 = vmatpush3.bf16.msra.mxu1 %v6398_v38  ;;  %v6405_v54 = vld [vmem:[%s7604_s5 + $0x20] sm:$0xff]  }
 0x2fa   :  { %5456 = vmatprep.subr.bf16.mxu1 %v6400_v28 }
 0x2fb   :  { %5423 = vmatpush3.bf16.msra.mxu0 %v6401_v52 }
 0x2fc   :  { %5424 = vmatprep.subr.bf16.mxu0 %v6403_v40 }
 0x2fd   :  { %5457 = vmatpush3.bf16.msra.mxu1 %v6402_v11 }
 0x2fe   :  { %4146 = vmatmul.mubr.bf16.gmra.mrb[20].mxu0 %v7359_v3  ;;  %5458 = vmatprep.subr.bf16.mxu1 %v6404_v31 }
 0x2ff   :  { %5425 = vmatpush3.bf16.msra.mxu0 %v6405_v54 }
 0x300   :  { %4272 = vmatmul.mubr.bf16.gmra.mrb[20].mxu1 %v7359_v3  ;;  %5426 = vmatprep.subr.bf16.mxu0 %v6407_v45  ;;  %v6412_v3 = vld [vmem:[%s7604_s5 + $0xf0] sm:$0xff]  }
 0x301   :  { %5459 = vmatpush3.bf16.msra.mxu1 %v6406_v15 }
 0x302   :  { %5460 = vmatprep.subr.bf16.mxu1 %v6408_v22 }
 0x303   :  { %5427 = vmatpush3.bf16.msra.mxu0 %v6409_v23 }
 0x304   :  { %5428 = vmatprep.subr.bf16.mxu0 %v6411_v61 }
 0x305   :  { %5461 = vmatpush3.bf16.msra.mxu1 %v6410_v6 }
 0x306   :  { %5462 = vmatprep.subr.bf16.mxu1 %v6412_v3 }
 0x307   :  { %5429 = vmatpush3.bf16.msra.mxu0 %v6413_v19 }
 0x308   :  { %5430 = vmatprep.subr.bf16.mxu0 %v6415_v35 }
 0x309   :  { %5463 = vmatpush3.bf16.msra.mxu1 %v6414_v53 }
 0x30a   :  { %5464 = vmatprep.subr.bf16.mxu1 %v6416_v26 }
 0x30b   :  { %5431 = vmatpush3.bf16.msra.mxu0 %v6417_v25 }
 0x30d   :  { %5465 = vmatpush3.bf16.msra.mxu1 %v6418_v0 }
 0x3c1   :  { %v4127_v46 = vpop.f32.mrb[12].mxu0 }
 0x3c2   :  { %v4328_v42 = vadd.f32 %v7537_v7, %v4127_v46  ;;  %v4129_v24 = vpop.f32.mrb[13].mxu0 }
 0x3c3   :  { %v4253_v32 = vpop.f32.mrb[12].mxu1  ;;  %v4329_v12 = vadd.f32 %v7545_v13, %v4129_v24  ;;  %v4131_v55 = vpop.f32.mrb[14].mxu0 }
 0x3c4   :  { %v4330_v47 = vadd.f32 %v7541_v10, %v4253_v32  ;;  %v4255_v29 = vpop.f32.mrb[13].mxu1  ;;  %v4332_v59 = vadd.f32 %v7537_v7, %v4131_v55  ;;  %v4133_v56 = vpop.f32.mrb[15].mxu0  ;;  %v4352_v9 = vmax.f32 %v4328_v42, 0.0 }
 0x3c5   :  { %v4331_v21 = vadd.f32 %v7549_v57, %v4255_v29  ;;  %v4257_v17 = vpop.f32.mrb[14].mxu1  ;;  %v4333_v49 = vadd.f32 %v7545_v13, %v4133_v56  ;;  %v4353_v51 = vmax.f32 %v4329_v12, 0.0 }
 0x3c6   :  { %v4334_v60 = vadd.f32 %v7541_v10, %v4257_v17  ;;  %v4259_v16 = vpop.f32.mrb[15].mxu1  ;;  %v4356_v34 = vmax.f32 %v4332_v59, 0.0  ;;  %v4354_v43 = vmax.f32 %v4330_v47, 0.0 }
 0x3c7   :  { %v4335_v39 = vadd.f32 %v7549_v57, %v4259_v16  ;;  %v4357_v37 = vmax.f32 %v4333_v49, 0.0  ;;  %v4355_v33 = vmax.f32 %v4331_v21, 0.0 }
 0x3c8   :  { %v4358_v44 = vmax.f32 %v4334_v60, 0.0  ;;  %v4376_v58 = vpack.c.bf16 %v4356_v34, %v4352_v9 }
 0x3c9   :  { %v4359_v63 = vmax.f32 %v4335_v39, 0.0  ;;  %v4377_v20 = vpack.c.bf16 %v4357_v37, %v4353_v51  ;;  %v4137_v5 = vpop.f32.mrb[16].mxu0 }
 0x3ca   :  { %v4378_v36 = vpack.c.bf16 %v4358_v44, %v4354_v43  ;;  %v4336_v4 = vadd.f32 %v7537_v7, %v4137_v5  ;;  %v4139_v27 = vpop.f32.mrb[17].mxu0 }
 0x3cb   :  { %v4379_v2 = vpack.c.bf16 %v4359_v63, %v4355_v33  ;;  %v4263_v62 = vpop.f32.mrb[16].mxu1  ;;  %v4337_v18 = vadd.f32 %v7545_v13, %v4139_v27  ;;  %v4141_v50 = vpop.f32.mrb[18].mxu0  ;;  %4683 = vmatprep.mubr.bf16.mxu0 %v4377_v20 }
 0x3cc   :  { %v4338_v48 = vadd.f32 %v7541_v10, %v4263_v62  ;;  %v4265_v38 = vpop.f32.mrb[17].mxu1  ;;  %v4340_v52 = vadd.f32 %v7537_v7, %v4141_v50  ;;  %v4143_v40 = vpop.f32.mrb[19].mxu0  ;;  %4684 = vmatmul.mubr.bf16.vlgmr.msra.gmra.mrb[24].mxu0 %v4376_v58  ;;  %v4360_v45 = vmax.f32 %v4336_v4, 0.0  ;;  %v5377_v58 = vld [vmem:[#allocation10] ss:$0 sm:$0xff] }
 0x3cd   :  { %v4339_v28 = vadd.f32 %v7549_v57, %v4265_v38  ;;  %v4267_v11 = vpop.f32.mrb[18].mxu1  ;;  %4740 = vmatprep.mubr.bf16.mxu1 %v4379_v2  ;;  %v4341_v54 = vadd.f32 %v7545_v13, %v4143_v40  ;;  %v4361_v61 = vmax.f32 %v4337_v18, 0.0 }
 0x3ce   :  { %v4342_v31 = vadd.f32 %v7541_v10, %v4267_v11  ;;  %v4269_v15 = vpop.f32.mrb[19].mxu1  ;;  %4741 = vmatmul.mubr.bf16.vlgmr.msra.gmra.mrb[24].mxu1 %v4378_v36  ;;  %v4364_v22 = vmax.f32 %v4340_v52, 0.0  ;;  %v4362_v6 = vmax.f32 %v4338_v48, 0.0 }
 0x3cf   :  { %v4343_v23 = vadd.f32 %v7549_v57, %v4269_v15  ;;  %v4365_v19 = vmax.f32 %v4341_v54, 0.0  ;;  %v4363_v53 = vmax.f32 %v4339_v28, 0.0 }
 0x3d0   :  { %v4366_v3 = vmax.f32 %v4342_v31, 0.0  ;;  %v4380_v35 = vpack.c.bf16 %v4364_v22, %v4360_v45 }
 0x3d1   :  { %v4367_v26 = vmax.f32 %v4343_v23, 0.0  ;;  %v4381_v0 = vpack.c.bf16 %v4365_v19, %v4361_v61  ;;  %v4147_v8 = vpop.f32.mrb[20].mxu0 }
 0x3d2   :  { %v4382_v25 = vpack.c.bf16 %v4366_v3, %v4362_v6  ;;  %v4344_v41 = vadd.f32 %v7537_v7, %v4147_v8  ;;  %v4149_v1 = vpop.f32.mrb[21].mxu0 }
 0x3d3   :  { %v4383_v14 = vpack.c.bf16 %v4367_v26, %v4363_v53  ;;  %v4273_v30 = vpop.f32.mrb[20].mxu1  ;;  %v4345_v42 = vadd.f32 %v7545_v13, %v4149_v1  ;;  %v4151_v24 = vpop.f32.mrb[22].mxu0  ;;  %4691 = vmatprep.mubr.bf16.mxu0 %v4381_v0 }
 0x3d4   :  { %v4346_v46 = vadd.f32 %v7541_v10, %v4273_v30  ;;  %v4275_v32 = vpop.f32.mrb[21].mxu1  ;;  %v4348_v12 = vadd.f32 %v7537_v7, %v4151_v24  ;;  %v4153_v55 = vpop.f32.mrb[23].mxu0  ;;  %4692 = vmatmul.mubr.bf16.gmra.mrb[28].mxu0 %v4380_v35  ;;  %v4368_v56 = vmax.f32 %v4344_v41, 0.0 }
 0x3d5   :  { %v4347_v47 = vadd.f32 %v7549_v57, %v4275_v32  ;;  %v4277_v29 = vpop.f32.mrb[22].mxu1  ;;  %4748 = vmatprep.mubr.bf16.mxu1 %v4383_v14  ;;  %v4349_v59 = vadd.f32 %v7545_v13, %v4153_v55  ;;  %v4369_v9 = vmax.f32 %v4345_v42, 0.0 }
 0x3d6   :  { %v4350_v21 = vadd.f32 %v7541_v10, %v4277_v29  ;;  %v4279_v17 = vpop.f32.mrb[23].mxu1  ;;  %4749 = vmatmul.mubr.bf16.gmra.mrb[28].mxu1 %v4382_v25  ;;  %v4372_v60 = vmax.f32 %v4348_v12, 0.0  ;;  %v4370_v16 = vmax.f32 %v4346_v46, 0.0 }
 0x3d7   :  { %v4351_v49 = vadd.f32 %v7549_v57, %v4279_v17  ;;  %v4373_v39 = vmax.f32 %v4349_v59, 0.0  ;;  %v4371_v43 = vmax.f32 %v4347_v47, 0.0 }
 0x3d8   :  { %v4374_v34 = vmax.f32 %v4350_v21, 0.0  ;;  %v4384_v7 = vpack.c.bf16 %v4372_v60, %v4368_v56 }
 0x3d9   :  { %v4375_v51 = vmax.f32 %v4351_v49, 0.0  ;;  %v4385_v37 = vpack.c.bf16 %v4373_v39, %v4369_v9 }
 0x3da   :  { %v4386_v44 = vpack.c.bf16 %v4374_v34, %v4370_v16 }
 0x3db   :  { %v4387_v33 = vpack.c.bf16 %v4375_v51, %v4371_v43  ;;  %4699 = vmatprep.mubr.bf16.mxu0 %v4385_v37 }
 0x3dc   :  { %4700 = vmatmul.mubr.bf16.gmra.mrb[32].mxu0 %v4384_v7 }
 0x3dd   :  { %4756 = vmatprep.mubr.bf16.mxu1 %v4387_v33 }
 0x3de   :  { %4757 = vmatmul.mubr.bf16.gmra.mrb[32].mxu1 %v4386_v44 }
 0x49f   :  { %v5432_v10 = vpop.f32.mrb[24].mxu0 }
 0x4a0   :  { %v5433_v63 = vpop.f32.mrb[25].mxu0 }
 0x4a1   :  { %v5466_v13 = vpop.f32.mrb[24].mxu1  ;;  %v5434_v36 = vadd.f32 %v5433_v63, %v5432_v10  ;;  %v5435_v20 = vpop.f32.mrb[26].mxu0 }
 0x4a2   :  { %v5467_v57 = vpop.f32.mrb[25].mxu1  ;;  %v5436_v4 = vpop.f32.mrb[27].mxu0 }
 0x4a3   :  { %v5468_v5 = vadd.f32 %v5467_v57, %v5466_v13  ;;  %v5469_v2 = vpop.f32.mrb[26].mxu1  ;;  %v4686_v62 = vadd.f32 %v5434_v36, %v5377_v58  ;;  %v5437_v27 = vadd.f32 %v5436_v4, %v5435_v20 }
 0x4a4   :  { %v5470_v48 = vpop.f32.mrb[27].mxu1 }
 0x4a5   :  { %v5471_v18 = vadd.f32 %v5470_v48, %v5469_v2  ;;  %v4743_v38 = vadd.f32 %v5468_v5, %v4686_v62  ;;  %v4689_v50 = vadd.f32 %v5437_v27, %v5377_v58 }
 0x4a7   :  { %v5410_v28 = vmul.f32 -0.1, %v4743_v38  ;;  %v4746_v52 = vadd.f32 %v5471_v18, %v4689_v50  ;;  %v5438_v11 = vpop.f32.mrb[28].mxu0 }
 0x4a8   :  { %v5439_v31 = vpop.f32.mrb[29].mxu0 }
 0x4a9   :  { %v5472_v40 = vpop.f32.mrb[28].mxu1  ;;  %v4777_v54 = vmul.f32 1.442695, %v5410_v28  ;;  %v5411_v15 = vmul.f32 -0.1, %v4746_v52  ;;  %v5440_v45 = vadd.f32 %v5439_v31, %v5438_v11  ;;  %v5441_v23 = vpop.f32.mrb[30].mxu0 }
 0x4aa   :  { %v5473_v22 = vpop.f32.mrb[29].mxu1  ;;  %v5442_v3 = vpop.f32.mrb[31].mxu0 }
 0x4ab   :  { %v5474_v6 = vadd.f32 %v5473_v22, %v5472_v40  ;;  %v5475_v61 = vpop.f32.mrb[30].mxu1  ;;  %6422 = vpow2.f32 %v4777_v54  ;;  %v4779_v19 = vmul.f32 1.442695, %v5411_v15  ;;  %v4694_v53 = vadd.f32 %v5440_v45, %v5377_v58 }
 0x4ac   :  { %v5443_v35 = vadd.f32 %v5442_v3, %v5441_v23  ;;  %v5476_v26 = vpop.f32.mrb[31].mxu1 }
 0x4ad   :  { %v5477_v25 = vadd.f32 %v5476_v26, %v5475_v61  ;;  %6424 = vpow2.f32 %v4779_v19  ;;  %v4751_v0 = vadd.f32 %v5474_v6, %v4694_v53 }
 0x4ae   :  { %v4697_v8 = vadd.f32 %v5443_v35, %v5377_v58 }
 0x4af   :  { %v5412_v14 = vmul.f32 -0.1, %v4751_v0  ;;  %v5444_v30 = vpop.f32.mrb[32].mxu0 }
 0x4b0   :  { %v4754_v41 = vadd.f32 %v5477_v25, %v4697_v8  ;;  %v5445_v46 = vpop.f32.mrb[33].mxu0 }
 0x4b1   :  { %v5478_v1 = vpop.f32.mrb[32].mxu1  ;;  %v4781_v42 = vmul.f32 1.442695, %v5412_v14  ;;  %v5446_v24 = vadd.f32 %v5445_v46, %v5444_v30  ;;  %v5447_v12 = vpop.f32.mrb[34].mxu0 }
 0x4b2   :  { %v5413_v32 = vmul.f32 -0.1, %v4754_v41  ;;  %v5479_v47 = vpop.f32.mrb[33].mxu1  ;;  %v5448_v21 = vpop.f32.mrb[35].mxu0 }
 0x4b3   :  { %v5480_v29 = vadd.f32 %v5479_v47, %v5478_v1  ;;  %v5481_v55 = vpop.f32.mrb[34].mxu1  ;;  %6426 = vpow2.f32 %v4781_v42  ;;  %v4702_v17 = vadd.f32 %v5446_v24, %v5377_v58  ;;  %v5449_v56 = vadd.f32 %v5448_v21, %v5447_v12 }
 0x4b4   :  { %v4783_v59 = vmul.f32 1.442695, %v5413_v32  ;;  %v5482_v60 = vpop.f32.mrb[35].mxu1 }
 0x4b5   :  { %v5483_v49 = vadd.f32 %v5482_v60, %v5481_v55  ;;  %v6423_v16 = vpop.eup %6422  ;;  %v4759_v9 = vadd.f32 %v5480_v29, %v4702_v17  ;;  %v4705_v34 = vadd.f32 %v5449_v56, %v5377_v58 }
 0x4b6   :  { %6428 = vpow2.f32 %v4783_v59  ;;  %v4789_v39 = vadd.f32 1.0, %v6423_v16 }
 0x4b7   :  { %v6425_v43 = vpop.eup %6424  ;;  %v5414_v7 = vmul.f32 -0.1, %v4759_v9  ;;  %v4762_v51 = vadd.f32 %v5483_v49, %v4705_v34 }
 0x4b8   :  { %6430 = vrcp.f32 %v4789_v39  ;;  %v4790_v44 = vadd.f32 1.0, %v6425_v43 }
 0x4b9   :  { %v4785_v37 = vmul.f32 1.442695, %v5414_v7  ;;  %v5415_v33 = vmul.f32 -0.1, %v4762_v51 }
 0x4ba   :  { %6432 = vrcp.f32 %v4790_v44 }
 0x4bb   :  { %6434 = vpow2.f32 %v4785_v37  ;;  %v4787_v10 = vmul.f32 1.442695, %v5415_v33 }
 0x4bd   :  { %v6427_v13 = vpop.eup %6426  ;;  %6436 = vpow2.f32 %v4787_v10 }
 0x4be   :  { %v4791_v63 = vadd.f32 1.0, %v6427_v13 }
 0x4c0   :  { %v6429_v36 = vpop.eup %6428  ;;  %6438 = vrcp.f32 %v4791_v63 }
 0x4c1   :  { %v4792_v57 = vadd.f32 1.0, %v6429_v36 }
 0x4c2   :  { %v6431_v20 = vpop.eup %6430 }
 0x4c3   :  { %6440 = vrcp.f32 %v4792_v57  ;;  %4808 = vst.msk [vmem:[%s7606_s7] sm:$0xff] %vm4807_vm8, %v6431_v20 }
 0x4c4   :  { %v6433_v58 = vpop.eup %6432 }
 0x4c5   :  { %v6435_v5 = vpop.eup %6434  ;;  %4809 = vst.msk [vmem:[%s7606_s7 + $0x8] sm:$0xff] %vm4807_vm8, %v6433_v58 }
 0x4c6   :  { %v4793_v2 = vadd.f32 1.0, %v6435_v5 }
 0x4c7   :  { %v6437_v4 = vpop.eup %6436 }
 0x4c8   :  { %6442 = vrcp.f32 %v4793_v2  ;;  %v4794_v62 = vadd.f32 1.0, %v6437_v4 }
 0x4ca   :  { %v6439_v27 = vpop.eup %6438  ;;  %6444 = vrcp.f32 %v4794_v62 }
 0x4cb   :  { %4810 = vst.msk [vmem:[%s7606_s7 + $0x10] sm:$0xff] %vm4807_vm8, %v6439_v27 }
 0x4cd   :  { %v6441_v48 = vpop.eup %6440 }
 0x4ce   :  { %4811 = vst.msk [vmem:[%s7606_s7 + $0x18] sm:$0xff] %vm4807_vm8, %v6441_v48 }
 0x4d2   :  { %v6443_v18 = vpop.eup %6442 }
 0x4d3   :  { %4812 = vst.msk [vmem:[%s7606_s7 + $0x20] sm:$0xff] %vm4807_vm8, %v6443_v18 }
 0x4d4   :  { %v6445_v38 = vpop.eup %6444 }
 0x4d5   :  { %4813 = vst.msk [vmem:[%s7606_s7 + $0x28] sm:$0xff] %vm4807_vm8, %v6445_v38 }
 0x4d6   :  { %4818 = vsyncpa [#allocation3], 1 }
 0x4d7   :  { %4819 = vsyncpa [#allocation5], 1 }
 0x4d8   :  { %4820 = vsyncpa [#allocation8], 1 }
 0x4d9   :  { %4821 = vsyncpa [#allocation11], 1 }

</bundles_post_ra>
